<compile_context>
chip_gen: v6e
topology: v6e:2x2x1
jax: 0.10.0
libtpu: 0.0.40
codegen_flags: <defaults>
</compile_context>

<pallas_src>
import jax
import jax.numpy as jnp
from jax.experimental import pallas as pl
from jax.experimental.pallas import tpu as pltpu


def _round_up(v, m):
    return -(-v // m) * m


def cbam_kernel(x_ref, w1_ref, w2_ref, ws_ref, o_ref):
    # x_ref:  (C, L, Bt) VMEM tile — batch on the lane axis.
    # w1_ref: (Cr, C)  == fc1.weight (Conv1d(C,  Cr, 1), no bias), kernel dim squeezed.
    # w2_ref: (C, Cr)  == fc2.weight (Conv1d(Cr, C,  1), no bias), kernel dim squeezed.
    # ws_ref: (2,) SMEM — spatial Conv1d(2, 1, 1) weights [w_avg, w_max].
    hp = jax.lax.Precision.HIGHEST

    x = x_ref[...]                          # (C, L, Bt) f32
    w1 = w1_ref[...]                        # (Cr, C)
    w2 = w2_ref[...]                        # (C, Cr)
    w_avg = ws_ref[0]
    w_max = ws_ref[1]

    # ---------------- ChannelAttention ----------------
    # AdaptiveAvgPool1d(1) / AdaptiveMaxPool1d(1): sublane (XLU) reduce over L.
    avg_p = jnp.mean(x, axis=1)             # (C, Bt)
    max_p = jnp.max(x, axis=1)              # (C, Bt)

    # fc1 on the MXU, ReLU each branch; fc2 applied once by linearity (exact).
    h = (jnp.maximum(jnp.dot(w1, avg_p,
                             preferred_element_type=jnp.float32,
                             precision=hp), 0.0)
         + jnp.maximum(jnp.dot(w1, max_p,
                               preferred_element_type=jnp.float32,
                               precision=hp), 0.0))            # (Cr, Bt)
    ca_pre = jnp.dot(w2, h, preferred_element_type=jnp.float32,
                     precision=hp)                             # (C, Bt)
    ca = jax.nn.sigmoid(ca_pre)                                # EUP sigmoid
    y = ca[:, None, :] * x                                     # (C, L, Bt)

    # ---------------- SpatialAttention ----------------
    avg_c = jnp.mean(y, axis=0, keepdims=True)                 # (1, L, Bt) mean over C
    max_c = jnp.max(y, axis=0, keepdims=True)                  # (1, L, Bt) max over C
    # Conv1d(2, 1, kernel_size=1, no bias): weighted sum of the two maps.
    sa = jax.nn.sigmoid(w_avg * avg_c + w_max * max_c)         # (1, L, Bt)

    o_ref[...] = (sa * y).astype(o_ref.dtype)                  # (C, L, Bt)


def cbam_pallas(x, w1, w2, ws):
    """x: (B, C, L) f32; w1: (Cr, C); w2: (C, Cr); ws: (2,)."""
    x = jnp.asarray(x, jnp.float32)
    B, C, L = x.shape
    Cr = w1.shape[0]
    w1 = jnp.asarray(w1, jnp.float32)
    w2 = jnp.asarray(w2, jnp.float32)
    ws = jnp.asarray(ws, jnp.float32)

    # Layout plumbing (wrapper-side, via XLA): batch onto the lane axis.
    xt = jnp.transpose(x, (1, 2, 0))        # (C, L, B)

    LANE, SUB = 128, 8
    # Padded VMEM bytes per batch-lane column: sublane-padded L, f32.
    col_bytes = C * _round_up(L, SUB) * 4
    # Double-buffered input + output => 4 pipeline buffers; ~6 MiB budget
    # leaves headroom for in-kernel temporaries under v5e's 16 MiB scoped
    # default (and well under v6e/v7x's 32 MiB scoped / v7x's 64 MiB physical).
    budget = 6 << 20
    bt_max = max(LANE, (budget // (4 * col_bytes)) // LANE * LANE)
    # v7x megacore: cap the tile so batches large enough for >= 2 lane tiles
    # produce nblk >= 2 and the "parallel" axis feeds both TensorCores.
    bt = min(bt_max, max(LANE, _round_up(pl.cdiv(B, 2), LANE)))

    nblk = pl.cdiv(B, bt)
    b_pad = nblk * bt
    if b_pad != B:
        # Zero-pad whole batch lanes; per-sample reductions never cross lanes,
        # so padding cannot contaminate real samples, and padded outputs are
        # sliced off below.
        xt = jnp.pad(xt, ((0, 0), (0, 0), (0, b_pad - B)))

    out = pl.pallas_call(
        cbam_kernel,
        out_shape=jax.ShapeDtypeStruct((C, L, b_pad), jnp.float32),
        grid_spec=pl.GridSpec(
            grid=(nblk,),
            in_specs=[
                pl.BlockSpec((C, L, bt), lambda i: (0, 0, i)),      # x tile
                pl.BlockSpec((Cr, C), lambda i: (0, 0)),            # fc1.weight
                pl.BlockSpec((C, Cr), lambda i: (0, 0)),            # fc2.weight
                pl.BlockSpec(memory_space=pltpu.MemorySpace.SMEM),  # spatial w
            ],
            out_specs=pl.BlockSpec((C, L, bt), lambda i: (0, 0, i)),
        ),
        compiler_params=pltpu.CompilerParams(
            # Independent batch tiles: shards across v7x's two TensorCores;
            # measured no-op on single-TC v5e/v6e.
            dimension_semantics=("parallel",)),
    )(xt, w1, w2, ws)

    out = out[:, :, :B] if b_pad != B else out
    return jnp.transpose(out, (2, 0, 1))    # back to (B, C, L)


def cbam_ref(x, w1, w2, ws):
    """Pure-JAX reference mirroring the PyTorch forward exactly."""
    hp = jax.lax.Precision.HIGHEST
    avg = jnp.mean(x, axis=2, keepdims=True)              # AdaptiveAvgPool1d(1)
    mx = jnp.max(x, axis=2, keepdims=True)                 # AdaptiveMaxPool1d(1)

    def mlp(v):                                            # fc2(relu(fc1(v)))
        h = jnp.einsum("rc,bci->bri", w1, v, precision=hp)
        h = jnp.maximum(h, 0.0)
        return jnp.einsum("cr,bri->bci", w2, h, precision=hp)

    ca = jax.nn.sigmoid(mlp(avg) + mlp(mx))                # (B, C, 1)
    y = ca * x
    avg_c = jnp.mean(y, axis=1, keepdims=True)             # (B, 1, L)
    max_c = jnp.max(y, axis=1, keepdims=True)              # (B, 1, L)
    sa = jax.nn.sigmoid(ws[0] * avg_c + ws[1] * max_c)     # Conv1d(2,1,1)
    return sa * y


if __name__ == "__main__":
    B, C, L = 2, 62, 16          # CBAM defaults: in_channels=62, ratio=5
    ratio = 5
    Cr = C // ratio              # 12

    key = jax.random.PRNGKey(0)
    kx, k1, k2, ks = jax.random.split(key, 4)

    x = jax.random.normal(kx, (B, C, L), dtype=jnp.float32)

    # Deterministic kaiming_normal_-style inits (std = sqrt(2 / fan_in)).
    w1 = jax.random.normal(k1, (Cr, C), dtype=jnp.float32) * jnp.sqrt(2.0 / C)
    w2 = jax.random.normal(k2, (C, Cr), dtype=jnp.float32) * jnp.sqrt(2.0 / Cr)
    ws = jax.random.normal(ks, (2,), dtype=jnp.float32) * jnp.sqrt(2.0 / 2.0)

    out = jax.block_until_ready(cbam_pallas(x, w1, w2, ws))
    ref = cbam_ref(x, w1, w2, ws)

    assert out.shape == (B, C, L)
    assert jnp.allclose(out, ref, rtol=1e-5, atol=1e-5), "mismatch vs reference"
    print("KERNEL_OK")
</pallas_src>

<mosaic_0001>
module attributes {stable_mosaic.version = 11 : i64} {
  func.func @cbam_kernel(%arg0: i32, %arg1: memref<62x16x128xf32, #tpu.memory_space<vmem>>, %arg2: memref<12x62xf32, #tpu.memory_space<vmem>>, %arg3: memref<62x12xf32, #tpu.memory_space<vmem>>, %arg4: memref<2xf32, #tpu.memory_space<smem>>, %arg5: memref<62x16x128xf32, #tpu.memory_space<vmem>>) attributes {dimension_semantics = [#tpu.dimension_semantics<parallel>], iteration_bounds = array<i64: 1>, scalar_prefetch = 0 : i64, scratch_operands = 0 : i64, tpu.core_type = #tpu.core_type<tc>, window_params = [{transform_indices = @transform_0, window_bounds = array<i64: 62, 16, 128>}, {pipeline_mode = #tpu.pipeline_mode<synchronous>, transform_indices = @transform_1, window_bounds = array<i64: 12, 62>}, {pipeline_mode = #tpu.pipeline_mode<synchronous>, transform_indices = @transform_2, window_bounds = array<i64: 62, 12>}, {transform_indices = @transform_3, window_bounds = array<i64: 2>}, {transform_indices = @transform_4, window_bounds = array<i64: 62, 16, 128>}]} {
    %c0 = arith.constant 0 : index
    %c0_0 = arith.constant 0 : index
    %c0_1 = arith.constant 0 : index
    %0 = vector.load %arg1[%c0, %c0_0, %c0_1] : memref<62x16x128xf32, #tpu.memory_space<vmem>>, vector<62x16x128xf32>
    %c0_2 = arith.constant 0 : index
    %c0_3 = arith.constant 0 : index
    %1 = vector.load %arg2[%c0_2, %c0_3] : memref<12x62xf32, #tpu.memory_space<vmem>>, vector<12x62xf32>
    %c0_4 = arith.constant 0 : index
    %c0_5 = arith.constant 0 : index
    %2 = vector.load %arg3[%c0_4, %c0_5] : memref<62x12xf32, #tpu.memory_space<vmem>>, vector<62x12xf32>
    %c0_6 = arith.constant 0 : index
    %3 = memref.load %arg4[%c0_6] : memref<2xf32, #tpu.memory_space<smem>>
    %c1 = arith.constant 1 : index
    %4 = memref.load %arg4[%c1] : memref<2xf32, #tpu.memory_space<smem>>
    %cst = arith.constant dense<0.000000e+00> : vector<62x128xf32>
    %5 = vector.multi_reduction <add>, %0, %cst [1] : vector<62x16x128xf32> to vector<62x128xf32>
    %cst_7 = arith.constant 1.600000e+01 : f32
    %6 = vector.broadcast %cst_7 : f32 to vector<62x128xf32>
    %7 = arith.divf %5, %6 : vector<62x128xf32>
    %cst_8 = arith.constant dense<0xFF800000> : vector<62x128xf32>
    %8 = vector.multi_reduction <maximumf>, %0, %cst_8 [1] : vector<62x16x128xf32> to vector<62x128xf32>
    %cst_9 = arith.constant dense<0.000000e+00> : vector<12x128xf32>
    %9 = tpu.matmul %1, %7, %cst_9 {dimension_numbers = #tpu.dot_dimension_numbers<[1], [0], [0], [1], [0, 0, 1, 1], [], []>, precision = #tpu.contract_precision<fp32>} : vector<12x62xf32>, vector<62x128xf32>, vector<12x128xf32> -> vector<12x128xf32>
    %cst_10 = arith.constant 0.000000e+00 : f32
    %10 = vector.broadcast %cst_10 : f32 to vector<12x128xf32>
    %11 = arith.maximumf %9, %10 : vector<12x128xf32>
    %cst_11 = arith.constant dense<0.000000e+00> : vector<12x128xf32>
    %12 = tpu.matmul %1, %8, %cst_11 {dimension_numbers = #tpu.dot_dimension_numbers<[1], [0], [0], [1], [0, 0, 1, 1], [], []>, precision = #tpu.contract_precision<fp32>} : vector<12x62xf32>, vector<62x128xf32>, vector<12x128xf32> -> vector<12x128xf32>
    %cst_12 = arith.constant 0.000000e+00 : f32
    %13 = vector.broadcast %cst_12 : f32 to vector<12x128xf32>
    %14 = arith.maximumf %12, %13 : vector<12x128xf32>
    %15 = arith.addf %11, %14 : vector<12x128xf32>
    %cst_13 = arith.constant dense<0.000000e+00> : vector<62x128xf32>
    %16 = tpu.matmul %2, %15, %cst_13 {dimension_numbers = #tpu.dot_dimension_numbers<[1], [0], [0], [1], [0, 0, 1, 1], [], []>, precision = #tpu.contract_precision<fp32>} : vector<62x12xf32>, vector<12x128xf32>, vector<62x128xf32> -> vector<62x128xf32>
    %17 = arith.negf %16 : vector<62x128xf32>
    %18 = math.exp %17 : vector<62x128xf32>
    %cst_14 = arith.constant 1.000000e+00 : f32
    %19 = vector.broadcast %cst_14 : f32 to vector<62x128xf32>
    %20 = arith.addf %19, %18 : vector<62x128xf32>
    %21 = arith.divf %19, %20 : vector<62x128xf32>
    %22 = vector.shape_cast %21 : vector<62x128xf32> to vector<62x1x128xf32>
    %23 = vector.broadcast %22 : vector<62x1x128xf32> to vector<62x16x128xf32>
    %24 = arith.mulf %23, %0 : vector<62x16x128xf32>
    %cst_15 = arith.constant dense<0.000000e+00> : vector<16x128xf32>
    %25 = vector.multi_reduction <add>, %24, %cst_15 [0] : vector<62x16x128xf32> to vector<16x128xf32>
    %26 = vector.shape_cast %25 : vector<16x128xf32> to vector<1x16x128xf32>
    %cst_16 = arith.constant 6.200000e+01 : f32
    %27 = vector.broadcast %cst_16 : f32 to vector<1x16x128xf32>
    %28 = arith.divf %26, %27 : vector<1x16x128xf32>
    %cst_17 = arith.constant dense<0xFF800000> : vector<16x128xf32>
    %29 = vector.multi_reduction <maximumf>, %24, %cst_17 [0] : vector<62x16x128xf32> to vector<16x128xf32>
    %30 = vector.shape_cast %29 : vector<16x128xf32> to vector<1x16x128xf32>
    %31 = vector.broadcast %3 : f32 to vector<1x16x128xf32>
    %32 = arith.mulf %31, %28 : vector<1x16x128xf32>
    %33 = vector.broadcast %4 : f32 to vector<1x16x128xf32>
    %34 = arith.mulf %33, %30 : vector<1x16x128xf32>
    %35 = arith.addf %32, %34 : vector<1x16x128xf32>
    %36 = arith.negf %35 : vector<1x16x128xf32>
    %37 = math.exp %36 : vector<1x16x128xf32>
    %cst_18 = arith.constant 1.000000e+00 : f32
    %38 = vector.broadcast %cst_18 : f32 to vector<1x16x128xf32>
    %39 = arith.addf %38, %37 : vector<1x16x128xf32>
    %40 = arith.divf %38, %39 : vector<1x16x128xf32>
    %41 = vector.broadcast %40 : vector<1x16x128xf32> to vector<62x16x128xf32>
    %42 = arith.mulf %41, %24 : vector<62x16x128xf32>
    %c0_19 = arith.constant 0 : index
    %c0_20 = arith.constant 0 : index
    %c0_21 = arith.constant 0 : index
    %43 = vector.load %arg5[%c0_19, %c0_20, %c0_21] : memref<62x16x128xf32, #tpu.memory_space<vmem>>, vector<62x16x128xf32>
    tpu.vector_store %arg5[%c0_19, %c0_20, %c0_21], %42 {strides = array<i32>} : memref<62x16x128xf32, #tpu.memory_space<vmem>>, vector<62x16x128xf32>,
    return
  }
  func.func @transform_0(%arg0: i32) -> (i32, i32, i32) {
    %c0_i32 = arith.constant 0 : i32
    %c0_i32_0 = arith.constant 0 : i32
    %c0_i32_1 = arith.constant 0 : i32
    return %c0_i32, %c0_i32_0, %arg0 : i32, i32, i32
  }
  func.func @transform_1(%arg0: i32) -> (i32, i32) {
    %c0_i32 = arith.constant 0 : i32
    %c0_i32_0 = arith.constant 0 : i32
    %c0_i32_1 = arith.constant 0 : i32
    return %c0_i32, %c0_i32_0 : i32, i32
  }
  func.func @transform_2(%arg0: i32) -> (i32, i32) {
    %c0_i32 = arith.constant 0 : i32
    %c0_i32_0 = arith.constant 0 : i32
    %c0_i32_1 = arith.constant 0 : i32
    return %c0_i32, %c0_i32_0 : i32, i32
  }
  func.func @transform_3(%arg0: i32) -> i32 {
    %c0_i32 = arith.constant 0 : i32
    %c0_i32_0 = arith.constant 0 : i32
    return %c0_i32 : i32
  }
  func.func @transform_4(%arg0: i32) -> (i32, i32, i32) {
    %c0_i32 = arith.constant 0 : i32
    %c0_i32_0 = arith.constant 0 : i32
    %c0_i32_1 = arith.constant 0 : i32
    return %c0_i32, %c0_i32_0, %arg0 : i32, i32, i32
  }
}

</mosaic_0001>

<bundles_post_ra>
// kernel: tpu_custom_call.1
= control target key start
LH: loop header
LB: loop body
LE: loop exit
PB: predicated region body
PF: predicated region fallthrough
CT: control target
= control target key end

     0   :  { %9 = vsyncpa [#allocation3], 0  ;;  %s7233_s0 = inlined_call_operand.hbm [shape: f32[62,16,128], index: 0, kind: input, shape index: {}]   ;;  %s7234_s1 = inlined_call_operand.vmem [shape: f32[12,62], index: 1, kind: input, shape index: {}]   ;;  %s7235_s2 = inlined_call_operand.vmem [shape: f32[62,12], index: 2, kind: input, shape index: {}]   ;;  %s7236_s3 = inlined_call_operand.vmem [shape: f32[2], index: 3, kind: input, shape index: {}]   ;;  %s7237_s4 = inlined_call_operand.hbm [shape: f32[62,16,128], index: 4, kind: output, shape index: {}]  }
   0x1   :  { %10 = vsyncpa [#allocation5], 0 }
   0x2   :  { %11 = vsyncpa [#allocation4], 0  ;;  %s5612_s15 = smov [#allocation2]   ;;  %s34_s19 = sshll.u32 %s7236_s3, 4  ;;  %s35_s19 = int_to_ptr.vmem [resolvable:$true] %s34_s19 }
   0x3   :  { %s17_s16 = sshll.u32 %s5612_s15, 4  ;;  %s18_s16 = int_to_ptr.vmem [resolvable:$true] %s17_s16 }
   0x4   :  { %s5562_s20 = scalar_lea.vmem %s18_s16, 15872  ;;  %p5567_p1 = scmp.lt.s32.totalorder %s18_s16, %s18_s16 }
   0x5   :  { %p5563_p0 = scmp.ne.s32.totalorder %s18_s16, %s5562_s20  ;;  %p5568_p2 = scmp.lt.s32.totalorder %s5562_s20, %s5562_s20 }
   0x7   :  { %p5569_p3 = por %p5568_p2, %p5567_p1 }
   0x9   :  { %p5570_p4 = pnand %p5569_p3, %p5563_p0 }
   0xb   :  { %5573 = shalt.err (!%p5570_p4)
}
   0xc   :  { %s5613_s21 = smov 128   ;;  %s5614_s22 = smov 8  }
   0xd   :  { %23 = dma.hbm_to_vmem [thread:$0]  %s7233_s0, 15872, %s18_s16, [#allocation3], %s5613_s21, %s5613_s21, %s5614_s22  }
   0xe   :  { %s5574_s25 = scalar_lea.vmem %s35_s19, 16  ;;  %p5579_p6 = scmp.lt.s32.totalorder %s35_s19, %s35_s19 }
   0xf   :  { %p5575_p5 = scmp.ne.s32.totalorder %s35_s19, %s5574_s25  ;;  %p5580_p7 = scmp.lt.s32.totalorder %s5574_s25, %s5574_s25 }
  0x11   :  { %p5581_p8 = por %p5580_p7, %p5579_p6 }
  0x13   :  { %p5582_p9 = pnand %p5581_p8, %p5575_p5 }
  0x15   :  { %5585 = shalt.err (!%p5582_p9)
}
  0x16   :  { %s5615_s3 = smov [#allocation6]  }
  0x17   :  { %37 = dma.vmem_to_smem %s35_s19, 16, %s5615_s3, [#allocation5]  }
  0x18   :  { %5606 = dma.done.wait [#allocation3], 15872  }
  0x19   :  { %5607 = vsyncadd [#allocation3], 4294951424 }
  0x1a   :  { %5608 = dma.done.wait [#allocation5], 16  }
  0x1b   :  { %5609 = vsyncadd [#allocation5], 4294967280 }
  0x1c   :  { %44 = sfence }
  0x1d   :  { %v157_v0 = vld [vmem:[#allocation2 + $0x380] sm:$0xff]  ;;  %v158_v1 = vld [vmem:[#allocation2 + $0x388] sm:$0xff]  ;;  %v159_v2 = vld [vmem:[#allocation2 + $0x390] sm:$0xff]  ;;  %vm1174_vm0 = vcmask 1041409   ;;  %vm1176_vm1 = vcmask 1042434   ;;  %vm1178_vm2 = vcmask 1043459  }
  0x1e   :  { %v160_v3 = vld [vmem:[#allocation2 + $0x398] sm:$0xff]  ;;  %v161_v4 = vld [vmem:[#allocation2 + $0x3a0] sm:$0xff]  ;;  %v162_v5 = vld [vmem:[#allocation2 + $0x3a8] sm:$0xff]  ;;  %v573_v6 = vadd.f32 %v158_v1, %v157_v0  ;;  %vm1180_vm3 = vcmask 1044484   ;;  %vm1182_vm4 = vcmask 1045509   ;;  %vm1249_vm5 = vcmask 1045504  }
  0x1f   :  { %v163_v7 = vld [vmem:[#allocation2 + $0x3b0] sm:$0xff]  ;;  %v164_v8 = vld [vmem:[#allocation2 + $0x3b8] sm:$0xff]  ;;  %v165_v9 = vld [vmem:[#allocation2 + $0x3c0] sm:$0xff]  ;;  %v580_v10 = vadd.f32 %v160_v3, %v159_v2  ;;  %v587_v11 = vadd.f32 %v162_v5, %v161_v4  ;;  %vm1184_vm6 = vcmask 1046534   ;;  %vm1186_vm7 = vcmask 1047559   ;;  %s4745_s18 = sld [smem:[#allocation6 + $0x1]] }
  0x20   :  { %v166_v12 = vld [vmem:[#allocation2 + $0x3c8] sm:$0xff]  ;;  %v167_v13 = vld [vmem:[#allocation2 + $0x3d0] sm:$0xff]  ;;  %v168_v14 = vld [vmem:[#allocation2 + $0x3d8] sm:$0xff]  ;;  %v574_v15 = vrot.slane %v573_v6, 4  ;;  %v594_v16 = vadd.f32 %v164_v8, %v163_v7  ;;  %vm1242_vm8 = vcmask 506880   ;;  %vm2543_vm9 = vcmask 97280  }
  0x21   :  { %v581_v17 = vrot.slane %v580_v10, 4  ;;  %v588_v18 = vrot.slane %v587_v11, 4  ;;  %v601_v19 = vadd.f32 %v166_v12, %v165_v9  ;;  %v608_v20 = vadd.f32 %v168_v14, %v167_v13  ;;  %v141_v21 = vld [vmem:[#allocation2 + $0x300] sm:$0xff]  ;;  %v142_v22 = vld [vmem:[#allocation2 + $0x308] sm:$0xff]  ;;  %v143_v23 = vld [vmem:[#allocation2 + $0x310] sm:$0xff]  ;;  %s5617_s19 = smov [#allocation7]  }
  0x22   :  { %v575_v24 = vadd.f32 %v574_v15, %v573_v6  ;;  %v595_v25 = vrot.slane %v594_v16, 4  ;;  %v144_v26 = vld [vmem:[#allocation2 + $0x318] sm:$0xff]  ;;  %v517_v27 = vadd.f32 %v142_v22, %v141_v21  ;;  %v145_v0 = vld [vmem:[#allocation2 + $0x320] sm:$0xff]  ;;  %v146_v1 = vld [vmem:[#allocation2 + $0x328] sm:$0xff]  ;;  %vm2568_vm10 = vcmask 1043456   ;;  %s4732_s20 = sshll.u32 %s5617_s19, 4  ;;  %s4733_s20 = int_to_ptr.vmem [resolvable:$true] %s4732_s20 }
  0x23   :  { %v582_v28 = vadd.f32 %v581_v17, %v580_v10  ;;  %v589_v29 = vadd.f32 %v588_v18, %v587_v11  ;;  %v602_v30 = vrot.slane %v601_v19, 4  ;;  %v609_v31 = vrot.slane %v608_v20, 4  ;;  %v147_v4 = vld [vmem:[#allocation2 + $0x330] sm:$0xff]  ;;  %v148_v5 = vld [vmem:[#allocation2 + $0x338] sm:$0xff]  ;;  %v149_v12 = vld [vmem:[#allocation2 + $0x340] sm:$0xff]  ;;  %s5586_s23 = scalar_lea.vmem %s4733_s20, 15872  ;;  %p5591_p11 = scmp.lt.s32.totalorder %s4733_s20, %s4733_s20 }
  0x24   :  { %v576_v32 = vrot.slane %v575_v24, 2  ;;  %v596_v33 = vadd.f32 %v595_v25, %v594_v16  ;;  %v518_v34 = vrot.slane %v517_v27, 4  ;;  %v524_v35 = vadd.f32 %v144_v26, %v143_v23  ;;  %v150_v13 = vld [vmem:[#allocation2 + $0x348] sm:$0xff]  ;;  %v151_v14 = vld [vmem:[#allocation2 + $0x350] sm:$0xff]  ;;  %v152_v16 = vld [vmem:[#allocation2 + $0x358] sm:$0xff]  ;;  %p5587_p10 = scmp.ne.s32.totalorder %s4733_s20, %s5586_s23  ;;  %p5592_p12 = scmp.lt.s32.totalorder %s5586_s23, %s5586_s23 }
  0x25   :  { %v583_v36 = vrot.slane %v582_v28, 2  ;;  %v590_v37 = vrot.slane %v589_v29, 2  ;;  %v603_v38 = vadd.f32 %v602_v30, %v601_v19  ;;  %v610_v39 = vadd.f32 %v609_v31, %v608_v20  ;;  %v153_v17 = vld [vmem:[#allocation2 + $0x360] sm:$0xff]  ;;  %v154_v18 = vld [vmem:[#allocation2 + $0x368] sm:$0xff]  ;;  %v155_v25 = vld [vmem:[#allocation2 + $0x370] sm:$0xff] }
  0x26   :  { %v577_v40 = vadd.f32 %v576_v32, %v575_v24  ;;  %v597_v41 = vrot.slane %v596_v33, 2  ;;  %v519_v42 = vadd.f32 %v518_v34, %v517_v27  ;;  %v525_v43 = vrot.slane %v524_v35, 4  ;;  %v156_v26 = vld [vmem:[#allocation2 + $0x378] sm:$0xff]  ;;  %p5593_p13 = por %p5592_p12, %p5591_p11 }
  0x27   :  { %v584_v44 = vadd.f32 %v583_v36, %v582_v28  ;;  %v591_v45 = vadd.f32 %v590_v37, %v589_v29  ;;  %v604_v46 = vrot.slane %v603_v38, 2  ;;  %v611_v47 = vrot.slane %v610_v39, 2 }
  0x28   :  { %v578_v48 = vrot.slane %v577_v40, 1  ;;  %v598_v49 = vadd.f32 %v597_v41, %v596_v33  ;;  %v520_v50 = vrot.slane %v519_v42, 2  ;;  %v526_v51 = vadd.f32 %v525_v43, %v524_v35  ;;  %p5594_p0 = pnand %p5593_p13, %p5587_p10 }
  0x29   :  { %v585_v52 = vrot.slane %v584_v44, 1  ;;  %v592_v53 = vrot.slane %v591_v45, 1  ;;  %v605_v54 = vadd.f32 %v604_v46, %v603_v38  ;;  %v612_v55 = vadd.f32 %v611_v47, %v610_v39 }
  0x2a   :  { %v579_v56 = vadd.f32 %v578_v48, %v577_v40  ;;  %v599_v57 = vrot.slane %v598_v49, 1  ;;  %v521_v58 = vadd.f32 %v520_v50, %v519_v42  ;;  %v527_v59 = vrot.slane %v526_v51, 2 }
  0x2b   :  { %v586_v60 = vadd.f32 %v585_v52, %v584_v44  ;;  %v593_v61 = vadd.f32 %v592_v53, %v591_v45  ;;  %v606_v62 = vrot.slane %v605_v54, 1  ;;  %v613_v63 = vrot.slane %v612_v55, 1  ;;  %v125_v52 = vld [vmem:[#allocation2 + $0x280] sm:$0xff]  ;;  %v126_v53 = vld [vmem:[#allocation2 + $0x288] sm:$0xff] }
  0x2c   :  { %v600_v2 = vadd.f32 %v599_v57, %v598_v49  ;;  %v672_v3 = vmul.f32 0.0625, %v579_v56  ;;  %v522_v6 = vrot.slane %v521_v58, 1  ;;  %v528_v7 = vadd.f32 %v527_v59, %v526_v51 }
  0x2d   :  { %v607_v8 = vadd.f32 %v606_v62, %v605_v54  ;;  %v614_v9 = vadd.f32 %v613_v63, %v612_v55  ;;  %v673_v10 = vmul.f32 0.0625, %v586_v60  ;;  %v674_v11 = vmul.f32 0.0625, %v593_v61 }
  0x2e   :  { %v675_v15 = vmul.f32 0.0625, %v600_v2  ;;  %v523_v19 = vadd.f32 %v522_v6, %v521_v58  ;;  %v529_v20 = vrot.slane %v528_v7, 1  ;;  %v531_v21 = vadd.f32 %v146_v1, %v145_v0  ;;  %v127_v1 = vld [vmem:[#allocation2 + $0x290] sm:$0xff]  ;;  %v128_v2 = vld [vmem:[#allocation2 + $0x298] sm:$0xff] }
  0x2f   :  { %v676_v22 = vmul.f32 0.0625, %v607_v8  ;;  %v677_v23 = vmul.f32 0.0625, %v614_v9  ;;  %v1230_v24 = vsel %vm1174_vm0, %v673_v10, %v672_v3  ;;  %v538_v27 = vadd.f32 %v148_v5, %v147_v4 }
  0x30   :  { %v1231_v28 = vsel %vm1176_vm1, %v674_v11, %v1230_v24  ;;  %v530_v29 = vadd.f32 %v529_v20, %v528_v7  ;;  %v532_v30 = vrot.slane %v531_v21, 4  ;;  %v545_v31 = vadd.f32 %v150_v13, %v149_v12  ;;  %v130_v24 = vld [vmem:[#allocation2 + $0x2a8] sm:$0xff] }
  0x31   :  { %v1232_v32 = vsel %vm1178_vm2, %v675_v15, %v1231_v28  ;;  %v539_v33 = vrot.slane %v538_v27, 4  ;;  %v552_v34 = vadd.f32 %v152_v16, %v151_v14  ;;  %v559_v35 = vadd.f32 %v154_v18, %v153_v17 }
  0x32   :  { %v1233_v36 = vsel %vm1180_vm3, %v676_v22, %v1232_v32  ;;  %v533_v37 = vadd.f32 %v532_v30, %v531_v21  ;;  %v546_v38 = vrot.slane %v545_v31, 4  ;;  %v566_v39 = vadd.f32 %v156_v26, %v155_v25  ;;  %v131_v25 = vld [vmem:[#allocation2 + $0x2b0] sm:$0xff]  ;;  %v132_v30 = vld [vmem:[#allocation2 + $0x2b8] sm:$0xff]  ;;  %v134_v32 = vld [vmem:[#allocation2 + $0x2c8] sm:$0xff] }
  0x33   :  { %v1234_v40 = vsel %vm1182_vm4, %v677_v23, %v1233_v36  ;;  %v540_v41 = vadd.f32 %v539_v33, %v538_v27  ;;  %v553_v42 = vrot.slane %v552_v34, 4  ;;  %v560_v43 = vrot.slane %v559_v35, 4  ;;  %v129_v23 = vld [vmem:[#allocation2 + $0x2a0] sm:$0xff] }
  0x34   :  { %v5658_v44 = vsel %vm1249_vm5, %v1234_v40, 0  ;;  %v534_v45 = vrot.slane %v533_v37, 2  ;;  %v547_v46 = vadd.f32 %v546_v38, %v545_v31  ;;  %v567_v47 = vrot.slane %v566_v39, 4  ;;  %v133_v31 = vld [vmem:[#allocation2 + $0x2c0] sm:$0xff]  ;;  %v136_v38 = vld [vmem:[#allocation2 + $0x2d8] sm:$0xff] }
  0x35   :  { %v5661_v48 = vand.u32 4294901760, %v5658_v44  ;;  %v541_v49 = vrot.slane %v540_v41, 2  ;;  %v554_v50 = vadd.f32 %v553_v42, %v552_v34  ;;  %v561_v51 = vadd.f32 %v560_v43, %v559_v35 }
  0x36   :  { %v535_v54 = vadd.f32 %v534_v45, %v533_v37  ;;  %v548_v55 = vrot.slane %v547_v46, 2  ;;  %v568_v56 = vadd.f32 %v567_v47, %v566_v39  ;;  %v664_v57 = vmul.f32 0.0625, %v523_v19  ;;  %v135_v37 = vld [vmem:[#allocation2 + $0x2d0] sm:$0xff] }
  0x37   :  { %4936 = vmatprep.subr.mxu0 %v5661_v48  ;;  %v542_v58 = vadd.f32 %v541_v49, %v540_v41  ;;  %v555_v59 = vrot.slane %v554_v50, 2  ;;  %v562_v60 = vrot.slane %v561_v51, 2  ;;  %v665_v61 = vmul.f32 0.0625, %v530_v29 }
  0x38   :  { %4937 = vmatpush3.msra.mxu0 %v5661_v48  ;;  %v536_v62 = vrot.slane %v535_v54, 1  ;;  %v549_v63 = vadd.f32 %v548_v55, %v547_v46  ;;  %v569_v0 = vrot.slane %v568_v56, 2  ;;  %v461_v3 = vadd.f32 %v126_v53, %v125_v52  ;;  %v138_v52 = vld [vmem:[#allocation2 + $0x2e8] sm:$0xff] }
  0x39   :  { %v543_v4 = vrot.slane %v542_v58, 1  ;;  %v556_v5 = vadd.f32 %v555_v59, %v554_v50  ;;  %v563_v6 = vadd.f32 %v562_v60, %v561_v51  ;;  %v1223_v7 = vsel %vm1174_vm0, %v665_v61, %v664_v57  ;;  %v137_v51 = vld [vmem:[#allocation2 + $0x2e0] sm:$0xff]  ;;  %v139_v57 = vld [vmem:[#allocation2 + $0x2f0] sm:$0xff] }
  0x3a   :  { %v537_v8 = vadd.f32 %v536_v62, %v535_v54  ;;  %v550_v9 = vrot.slane %v549_v63, 1  ;;  %v570_v10 = vadd.f32 %v569_v0, %v568_v56  ;;  %v462_v11 = vrot.slane %v461_v3, 4 }
  0x3b   :  { %v544_v12 = vadd.f32 %v543_v4, %v542_v58  ;;  %v557_v13 = vrot.slane %v556_v5, 1  ;;  %v564_v14 = vrot.slane %v563_v6, 1  ;;  %v468_v15 = vadd.f32 %v128_v2, %v127_v1  ;;  %v140_v58 = vld [vmem:[#allocation2 + $0x2f8] sm:$0xff] }
  0x3c   :  { %v551_v16 = vadd.f32 %v550_v9, %v549_v63  ;;  %v571_v17 = vrot.slane %v570_v10, 1  ;;  %v666_v18 = vmul.f32 0.0625, %v537_v8  ;;  %v463_v19 = vadd.f32 %v462_v11, %v461_v3 }
  0x3d   :  { %v558_v20 = vadd.f32 %v557_v13, %v556_v5  ;;  %v565_v21 = vadd.f32 %v564_v14, %v563_v6  ;;  %v667_v22 = vmul.f32 0.0625, %v544_v12  ;;  %v469_v26 = vrot.slane %v468_v15, 4  ;;  %v109_v6 = vld [vmem:[#allocation2 + $0x200] sm:$0xff] }
  0x3e   :  { %v572_v27 = vadd.f32 %v571_v17, %v570_v10  ;;  %v668_v28 = vmul.f32 0.0625, %v551_v16  ;;  %v1224_v29 = vsel %vm1176_vm1, %v666_v18, %v1223_v7  ;;  %v464_v33 = vrot.slane %v463_v19, 2  ;;  %v110_v7 = vld [vmem:[#allocation2 + $0x208] sm:$0xff] }
  0x3f   :  { %v669_v34 = vmul.f32 0.0625, %v558_v20  ;;  %v670_v35 = vmul.f32 0.0625, %v565_v21  ;;  %v1225_v36 = vsel %vm1178_vm2, %v667_v22, %v1224_v29  ;;  %v470_v39 = vadd.f32 %v469_v26, %v468_v15 }
  0x40   :  { %v671_v40 = vmul.f32 0.0625, %v572_v27  ;;  %v1226_v41 = vsel %vm1180_vm3, %v668_v28, %v1225_v36  ;;  %v465_v42 = vadd.f32 %v464_v33, %v463_v19  ;;  %v475_v43 = vadd.f32 %v130_v24, %v129_v23  ;;  %v111_v27 = vld [vmem:[#allocation2 + $0x210] sm:$0xff]  ;;  %v112_v28 = vld [vmem:[#allocation2 + $0x218] sm:$0xff] }
  0x41   :  { %v1227_v45 = vsel %vm1182_vm4, %v669_v34, %v1226_v41  ;;  %v471_v46 = vrot.slane %v470_v39, 2  ;;  %v482_v47 = vadd.f32 %v132_v30, %v131_v25  ;;  %v489_v49 = vadd.f32 %v134_v32, %v133_v31 }
  0x42   :  { %v1228_v50 = vsel %vm1184_vm6, %v670_v35, %v1227_v45  ;;  %v466_v53 = vrot.slane %v465_v42, 1  ;;  %v476_v54 = vrot.slane %v475_v43, 4  ;;  %v496_v55 = vadd.f32 %v136_v38, %v135_v37 }
  0x43   :  { %v5672_v56 = vsel %vm1186_vm7, %v671_v40, %v1228_v50  ;;  %v472_v59 = vadd.f32 %v471_v46, %v470_v39  ;;  %v483_v60 = vrot.slane %v482_v47, 4  ;;  %v490_v61 = vrot.slane %v489_v49, 4  ;;  %v113_v46 = vld [vmem:[#allocation2 + $0x220] sm:$0xff] }
  0x44   :  { %v5675_v62 = vand.u32 4294901760, %v5672_v56  ;;  %v467_v63 = vadd.f32 %v466_v53, %v465_v42  ;;  %v477_v0 = vadd.f32 %v476_v54, %v475_v43  ;;  %v497_v1 = vrot.slane %v496_v55, 4  ;;  %v115_v53 = vld [vmem:[#allocation2 + $0x230] sm:$0xff]  ;;  %v116_v54 = vld [vmem:[#allocation2 + $0x238] sm:$0xff] }
  0x45   :  { %v473_v2 = vrot.slane %v472_v59, 1  ;;  %v484_v3 = vadd.f32 %v483_v60, %v482_v47  ;;  %v491_v4 = vadd.f32 %v490_v61, %v489_v49  ;;  %v503_v5 = vadd.f32 %v138_v52, %v137_v51  ;;  %v114_v47 = vld [vmem:[#allocation2 + $0x228] sm:$0xff] }
  0x46   :  { %4938 = vmatprep.subr.mxu0 %v5675_v62  ;;  %v478_v8 = vrot.slane %v477_v0, 2  ;;  %v498_v9 = vadd.f32 %v497_v1, %v496_v55  ;;  %v510_v10 = vadd.f32 %v140_v58, %v139_v57  ;;  %v656_v11 = vmul.f32 0.0625, %v467_v63  ;;  %v118_v1 = vld [vmem:[#allocation2 + $0x248] sm:$0xff] }
  0x47   :  { %4939 = vmatpush3.msra.mxu0 %v5675_v62  ;;  %v474_v12 = vadd.f32 %v473_v2, %v472_v59  ;;  %v485_v13 = vrot.slane %v484_v3, 2  ;;  %v492_v14 = vrot.slane %v491_v4, 2  ;;  %v504_v15 = vrot.slane %v503_v5, 4 }
  0x48   :  { %v479_v16 = vadd.f32 %v478_v8, %v477_v0  ;;  %v499_v17 = vrot.slane %v498_v9, 2  ;;  %v511_v18 = vrot.slane %v510_v10, 4  ;;  %v405_v19 = vadd.f32 %v110_v7, %v109_v6  ;;  %v117_v0 = vld [vmem:[#allocation2 + $0x240] sm:$0xff]  ;;  %v119_v6 = vld [vmem:[#allocation2 + $0x250] sm:$0xff]  ;;  %v120_v7 = vld [vmem:[#allocation2 + $0x258] sm:$0xff] }
  0x49   :  { %v486_v20 = vadd.f32 %v485_v13, %v484_v3  ;;  %v493_v21 = vadd.f32 %v492_v14, %v491_v4  ;;  %v505_v22 = vadd.f32 %v504_v15, %v503_v5  ;;  %v657_v23 = vmul.f32 0.0625, %v474_v12  ;;  %v121_v12 = vld [vmem:[#allocation2 + $0x260] sm:$0xff]  ;;  %v122_v13 = vld [vmem:[#allocation2 + $0x268] sm:$0xff] }
  0x4a   :  { %v480_v24 = vrot.slane %v479_v16, 1  ;;  %v500_v25 = vadd.f32 %v499_v17, %v498_v9  ;;  %v512_v26 = vadd.f32 %v511_v18, %v510_v10  ;;  %v406_v29 = vrot.slane %v405_v19, 4 }
  0x4b   :  { %v487_v30 = vrot.slane %v486_v20, 1  ;;  %v494_v31 = vrot.slane %v493_v21, 1  ;;  %v506_v32 = vrot.slane %v505_v22, 2  ;;  %v1216_v33 = vsel %vm1174_vm0, %v657_v23, %v656_v11 }
  0x4c   :  { %v481_v34 = vadd.f32 %v480_v24, %v479_v16  ;;  %v501_v35 = vrot.slane %v500_v25, 1  ;;  %v513_v36 = vrot.slane %v512_v26, 2  ;;  %v407_v37 = vadd.f32 %v406_v29, %v405_v19 }
  0x4d   :  { %v488_v38 = vadd.f32 %v487_v30, %v486_v20  ;;  %v495_v39 = vadd.f32 %v494_v31, %v493_v21  ;;  %v507_v40 = vadd.f32 %v506_v32, %v505_v22  ;;  %v412_v41 = vadd.f32 %v112_v28, %v111_v27  ;;  %v123_v21 = vld [vmem:[#allocation2 + $0x270] sm:$0xff]  ;;  %v124_v22 = vld [vmem:[#allocation2 + $0x278] sm:$0xff] }
  0x4e   :  { %v502_v42 = vadd.f32 %v501_v35, %v500_v25  ;;  %v514_v43 = vadd.f32 %v513_v36, %v512_v26  ;;  %v658_v45 = vmul.f32 0.0625, %v481_v34  ;;  %v408_v49 = vrot.slane %v407_v37, 2 }
  0x4f   :  { %v508_v50 = vrot.slane %v507_v40, 1  ;;  %v659_v51 = vmul.f32 0.0625, %v488_v38  ;;  %v660_v52 = vmul.f32 0.0625, %v495_v39  ;;  %v413_v55 = vrot.slane %v412_v41, 4  ;;  %v93_v38 = vld [vmem:[#allocation2 + $0x180] sm:$0xff]  ;;  %v94_v39 = vld [vmem:[#allocation2 + $0x188] sm:$0xff] }
  0x50   :  { %v515_v57 = vrot.slane %v514_v43, 1  ;;  %v661_v58 = vmul.f32 0.0625, %v502_v42  ;;  %v1217_v59 = vsel %vm1176_vm1, %v658_v45, %v1216_v33  ;;  %v409_v60 = vadd.f32 %v408_v49, %v407_v37 }
  0x51   :  { %v509_v61 = vadd.f32 %v508_v50, %v507_v40  ;;  %v1218_v63 = vsel %vm1178_vm2, %v659_v51, %v1217_v59  ;;  %v414_v2 = vadd.f32 %v413_v55, %v412_v41  ;;  %v419_v3 = vadd.f32 %v114_v47, %v113_v46  ;;  %v95_v59 = vld [vmem:[#allocation2 + $0x190] sm:$0xff] }
  0x52   :  { %v516_v4 = vadd.f32 %v515_v57, %v514_v43  ;;  %v1219_v5 = vsel %vm1180_vm3, %v660_v52, %v1218_v63  ;;  %v410_v8 = vrot.slane %v409_v60, 1  ;;  %v426_v9 = vadd.f32 %v116_v54, %v115_v53 }
  0x53   :  { %v662_v10 = vmul.f32 0.0625, %v509_v61  ;;  %v1220_v11 = vsel %vm1182_vm4, %v661_v58, %v1219_v5  ;;  %v415_v14 = vrot.slane %v414_v2, 2  ;;  %v420_v15 = vrot.slane %v419_v3, 4 }
  0x54   :  { %v663_v16 = vmul.f32 0.0625, %v516_v4  ;;  %v411_v17 = vadd.f32 %v410_v8, %v409_v60  ;;  %v427_v18 = vrot.slane %v426_v9, 4  ;;  %v433_v19 = vadd.f32 %v118_v1, %v117_v0  ;;  %v96_v60 = vld [vmem:[#allocation2 + $0x198] sm:$0xff] }
  0x55   :  { %v1221_v20 = vsel %vm1184_vm6, %v662_v10, %v1220_v11  ;;  %v416_v23 = vadd.f32 %v415_v14, %v414_v2  ;;  %v421_v24 = vadd.f32 %v420_v15, %v419_v3  ;;  %v440_v25 = vadd.f32 %v120_v7, %v119_v6  ;;  %v97_v14 = vld [vmem:[#allocation2 + $0x1a0] sm:$0xff]  ;;  %v98_v15 = vld [vmem:[#allocation2 + $0x1a8] sm:$0xff] }
  0x56   :  { %v5686_v26 = vsel %vm1186_vm7, %v663_v16, %v1221_v20  ;;  %v428_v27 = vadd.f32 %v427_v18, %v426_v9  ;;  %v434_v28 = vrot.slane %v433_v19, 4  ;;  %v447_v29 = vadd.f32 %v122_v13, %v121_v12  ;;  %v99_v18 = vld [vmem:[#allocation2 + $0x1b0] sm:$0xff] }
  0x57   :  { %v5689_v30 = vand.u32 4294901760, %v5686_v26  ;;  %v417_v31 = vrot.slane %v416_v23, 1  ;;  %v422_v32 = vrot.slane %v421_v24, 2  ;;  %v441_v33 = vrot.slane %v440_v25, 4 }
  0x58   :  { %v429_v34 = vrot.slane %v428_v27, 2  ;;  %v435_v35 = vadd.f32 %v434_v28, %v433_v19  ;;  %v448_v36 = vrot.slane %v447_v29, 4  ;;  %v454_v37 = vadd.f32 %v124_v22, %v123_v21  ;;  %v100_v19 = vld [vmem:[#allocation2 + $0x1b8] sm:$0xff]  ;;  %v101_v28 = vld [vmem:[#allocation2 + $0x1c0] sm:$0xff] }
  0x59   :  { %4940 = vmatprep.subr.mxu0 %v5689_v30  ;;  %v418_v40 = vadd.f32 %v417_v31, %v416_v23  ;;  %v423_v41 = vadd.f32 %v422_v32, %v421_v24  ;;  %v442_v42 = vadd.f32 %v441_v33, %v440_v25  ;;  %v648_v43 = vmul.f32 0.0625, %v411_v17 }
  0x5a   :  { %4941 = vmatpush3.msra.mxu0 %v5689_v30  ;;  %v430_v45 = vadd.f32 %v429_v34, %v428_v27  ;;  %v436_v46 = vrot.slane %v435_v35, 2  ;;  %v449_v47 = vadd.f32 %v448_v36, %v447_v29  ;;  %v455_v49 = vrot.slane %v454_v37, 4  ;;  %v102_v29 = vld [vmem:[#allocation2 + $0x1c8] sm:$0xff] }
  0x5b   :  { %v424_v50 = vrot.slane %v423_v41, 1  ;;  %v443_v51 = vrot.slane %v442_v42, 2  ;;  %v649_v52 = vmul.f32 0.0625, %v418_v40  ;;  %v349_v53 = vadd.f32 %v94_v39, %v93_v38  ;;  %v104_v38 = vld [vmem:[#allocation2 + $0x1d8] sm:$0xff] }
  0x5c   :  { %v431_v54 = vrot.slane %v430_v45, 1  ;;  %v437_v55 = vadd.f32 %v436_v46, %v435_v35  ;;  %v450_v57 = vrot.slane %v449_v47, 2  ;;  %v456_v58 = vadd.f32 %v455_v49, %v454_v37  ;;  %v103_v37 = vld [vmem:[#allocation2 + $0x1d0] sm:$0xff] }
  0x5d   :  { %v425_v61 = vadd.f32 %v424_v50, %v423_v41  ;;  %v444_v63 = vadd.f32 %v443_v51, %v442_v42  ;;  %v1209_v0 = vsel %vm1174_vm0, %v649_v52, %v648_v43  ;;  %v350_v1 = vrot.slane %v349_v53, 4  ;;  %v105_v41 = vld [vmem:[#allocation2 + $0x1e0] sm:$0xff]  ;;  %v106_v42 = vld [vmem:[#allocation2 + $0x1e8] sm:$0xff]  ;;  %v107_v52 = vld [vmem:[#allocation2 + $0x1f0] sm:$0xff] }
  0x5e   :  { %v432_v2 = vadd.f32 %v431_v54, %v430_v45  ;;  %v438_v3 = vrot.slane %v437_v55, 1  ;;  %v451_v4 = vadd.f32 %v450_v57, %v449_v47  ;;  %v457_v5 = vrot.slane %v456_v58, 2 }
  0x5f   :  { %v445_v6 = vrot.slane %v444_v63, 1  ;;  %v650_v7 = vmul.f32 0.0625, %v425_v61  ;;  %v351_v8 = vadd.f32 %v350_v1, %v349_v53  ;;  %v356_v9 = vadd.f32 %v96_v60, %v95_v59  ;;  %v108_v53 = vld [vmem:[#allocation2 + $0x1f8] sm:$0xff] }
  0x60   :  { %v439_v10 = vadd.f32 %v438_v3, %v437_v55  ;;  %v452_v11 = vrot.slane %v451_v4, 1  ;;  %v458_v12 = vadd.f32 %v457_v5, %v456_v58  ;;  %v651_v13 = vmul.f32 0.0625, %v432_v2 }
  0x61   :  { %v446_v16 = vadd.f32 %v445_v6, %v444_v63  ;;  %v1210_v17 = vsel %vm1176_vm1, %v650_v7, %v1209_v0  ;;  %v352_v20 = vrot.slane %v351_v8, 2  ;;  %v357_v21 = vrot.slane %v356_v9, 4 }
  0x62   :  { %v453_v22 = vadd.f32 %v452_v11, %v451_v4  ;;  %v459_v23 = vrot.slane %v458_v12, 1  ;;  %v652_v24 = vmul.f32 0.0625, %v439_v10  ;;  %v1211_v25 = vsel %vm1178_vm2, %v651_v13, %v1210_v17 }
  0x63   :  { %v653_v27 = vmul.f32 0.0625, %v446_v16  ;;  %v353_v31 = vadd.f32 %v352_v20, %v351_v8  ;;  %v358_v32 = vadd.f32 %v357_v21, %v356_v9  ;;  %v363_v33 = vadd.f32 %v98_v15, %v97_v14 }
  0x64   :  { %v460_v34 = vadd.f32 %v459_v23, %v458_v12  ;;  %v654_v35 = vmul.f32 0.0625, %v453_v22  ;;  %v1212_v36 = vsel %vm1180_vm3, %v652_v24, %v1211_v25  ;;  %v370_v39 = vadd.f32 %v100_v19, %v99_v18  ;;  %v77_v24 = vld [vmem:[#allocation2 + $0x100] sm:$0xff]  ;;  %v78_v25 = vld [vmem:[#allocation2 + $0x108] sm:$0xff] }
  0x65   :  { %v1213_v40 = vsel %vm1182_vm4, %v653_v27, %v1212_v36  ;;  %v354_v43 = vrot.slane %v353_v31, 1  ;;  %v359_v45 = vrot.slane %v358_v32, 2  ;;  %v364_v46 = vrot.slane %v363_v33, 4 }
  0x66   :  { %v655_v47 = vmul.f32 0.0625, %v460_v34  ;;  %v1214_v49 = vsel %vm1184_vm6, %v654_v35, %v1213_v40  ;;  %v371_v50 = vrot.slane %v370_v39, 4  ;;  %v377_v51 = vadd.f32 %v102_v29, %v101_v28 }
  0x67   :  { %v355_v54 = vadd.f32 %v354_v43, %v353_v31  ;;  %v360_v55 = vadd.f32 %v359_v45, %v358_v32  ;;  %v365_v57 = vadd.f32 %v364_v46, %v363_v33  ;;  %v384_v58 = vadd.f32 %v104_v38, %v103_v37  ;;  %v79_v38 = vld [vmem:[#allocation2 + $0x110] sm:$0xff]  ;;  %v80_v45 = vld [vmem:[#allocation2 + $0x118] sm:$0xff]  ;;  %v81_v46 = vld [vmem:[#allocation2 + $0x120] sm:$0xff] }
  0x68   :  { %v5700_v59 = vsel %vm1186_vm7, %v655_v47, %v1214_v49  ;;  %v372_v60 = vadd.f32 %v371_v50, %v370_v39  ;;  %v378_v61 = vrot.slane %v377_v51, 4  ;;  %v391_v63 = vadd.f32 %v106_v42, %v105_v41  ;;  %v82_v47 = vld [vmem:[#allocation2 + $0x128] sm:$0xff] }
  0x69   :  { %v5703_v0 = vand.u32 4294901760, %v5700_v59  ;;  %v361_v1 = vrot.slane %v360_v55, 1  ;;  %v366_v2 = vrot.slane %v365_v57, 2  ;;  %v385_v3 = vrot.slane %v384_v58, 4 }
  0x6a   :  { %v373_v4 = vrot.slane %v372_v60, 2  ;;  %v379_v5 = vadd.f32 %v378_v61, %v377_v51  ;;  %v392_v6 = vrot.slane %v391_v63, 4  ;;  %v398_v7 = vadd.f32 %v108_v53, %v107_v52  ;;  %v83_v52 = vld [vmem:[#allocation2 + $0x130] sm:$0xff]  ;;  %v84_v53 = vld [vmem:[#allocation2 + $0x138] sm:$0xff] }
  0x6b   :  { %4942 = vmatprep.subr.mxu0 %v5703_v0  ;;  %v362_v8 = vadd.f32 %v361_v1, %v360_v55  ;;  %v367_v9 = vadd.f32 %v366_v2, %v365_v57  ;;  %v386_v10 = vadd.f32 %v385_v3, %v384_v58  ;;  %v640_v11 = vmul.f32 0.0625, %v355_v54  ;;  %v86_v1 = vld [vmem:[#allocation2 + $0x148] sm:$0xff] }
  0x6c   :  { %4943 = vmatpush3.msra.mxu0 %v5703_v0  ;;  %v374_v12 = vadd.f32 %v373_v4, %v372_v60  ;;  %v380_v13 = vrot.slane %v379_v5, 2  ;;  %v393_v14 = vadd.f32 %v392_v6, %v391_v63  ;;  %v399_v15 = vrot.slane %v398_v7, 4  ;;  %v85_v63 = vld [vmem:[#allocation2 + $0x140] sm:$0xff] }
  0x6d   :  { %v368_v16 = vrot.slane %v367_v9, 1  ;;  %v387_v17 = vrot.slane %v386_v10, 2  ;;  %v641_v18 = vmul.f32 0.0625, %v362_v8  ;;  %v5709_v19 = vsub.f32 %v5658_v44, %v5661_v48  ;;  %v87_v8 = vld [vmem:[#allocation2 + $0x150] sm:$0xff] }
  0x6e   :  { %v375_v20 = vrot.slane %v374_v12, 1  ;;  %v381_v21 = vadd.f32 %v380_v13, %v379_v5  ;;  %v394_v22 = vrot.slane %v393_v14, 2  ;;  %v400_v23 = vadd.f32 %v399_v15, %v398_v7  ;;  %v90_v13 = vld [vmem:[#allocation2 + $0x168] sm:$0xff] }
  0x6f   :  { %v369_v27 = vadd.f32 %v368_v16, %v367_v9  ;;  %v388_v28 = vadd.f32 %v387_v17, %v386_v10  ;;  %v1202_v29 = vsel %vm1174_vm0, %v641_v18, %v640_v11  ;;  %v5713_v31 = vand.u32 4294901760, %v5709_v19  ;;  %v88_v9 = vld [vmem:[#allocation2 + $0x158] sm:$0xff] }
  0x70   :  { %v376_v32 = vadd.f32 %v375_v20, %v374_v12  ;;  %v382_v33 = vrot.slane %v381_v21, 1  ;;  %v395_v34 = vadd.f32 %v394_v22, %v393_v14  ;;  %v401_v35 = vrot.slane %v400_v23, 2  ;;  %v89_v12 = vld [vmem:[#allocation2 + $0x160] sm:$0xff] }
  0x71   :  { %v389_v36 = vrot.slane %v388_v28, 1  ;;  %v642_v44 = vmul.f32 0.0625, %v369_v27  ;;  %v1365_v37 = vsub.f32 %v5709_v19, %v5713_v31  ;;  %v293_v39 = vadd.f32 %v78_v25, %v77_v24 }
  0x72   :  { %v383_v40 = vadd.f32 %v382_v33, %v381_v21  ;;  %v396_v41 = vrot.slane %v395_v34, 1  ;;  %v402_v42 = vadd.f32 %v401_v35, %v400_v23  ;;  %v643_v43 = vmul.f32 0.0625, %v376_v32 }
  0x73   :  { %v390_v49 = vadd.f32 %v389_v36, %v388_v28  ;;  %v1203_v50 = vsel %vm1176_vm1, %v642_v44, %v1202_v29  ;;  %v1366_v51 = vand.u32 4294901760, %v1365_v37  ;;  %v294_v54 = vrot.slane %v293_v39, 4  ;;  %v91_v28 = vld [vmem:[#allocation2 + $0x170] sm:$0xff]  ;;  %v92_v29 = vld [vmem:[#allocation2 + $0x178] sm:$0xff] }
  0x74   :  { %v397_v55 = vadd.f32 %v396_v41, %v395_v34  ;;  %v403_v57 = vrot.slane %v402_v42, 1  ;;  %v644_v58 = vmul.f32 0.0625, %v383_v40  ;;  %v1204_v60 = vsel %vm1178_vm2, %v643_v43, %v1203_v50 }
  0x75   :  { %v645_v61 = vmul.f32 0.0625, %v390_v49  ;;  %4955 = vmatprep.subr.mxu1 %v1366_v51  ;;  %v295_v2 = vadd.f32 %v294_v54, %v293_v39  ;;  %v300_v3 = vadd.f32 %v80_v45, %v79_v38  ;;  %v307_v4 = vadd.f32 %v82_v47, %v81_v46 }
  0x76   :  { %v404_v5 = vadd.f32 %v403_v57, %v402_v42  ;;  %v646_v6 = vmul.f32 0.0625, %v397_v55  ;;  %v1205_v7 = vsel %vm1180_vm3, %v644_v58, %v1204_v60  ;;  %4956 = vmatpush3.msra.mxu1 %v1366_v51  ;;  %v314_v10 = vadd.f32 %v84_v53, %v83_v52 }
  0x77   :  { %v1206_v11 = vsel %vm1182_vm4, %v645_v61, %v1205_v7  ;;  %v296_v14 = vrot.slane %v295_v2, 2  ;;  %v301_v15 = vrot.slane %v300_v3, 4  ;;  %v308_v16 = vrot.slane %v307_v4, 4 }
  0x78   :  { %v647_v17 = vmul.f32 0.0625, %v404_v5  ;;  %v1207_v18 = vsel %vm1184_vm6, %v646_v6, %v1206_v11  ;;  %v315_v20 = vrot.slane %v314_v10, 4  ;;  %v321_v21 = vadd.f32 %v86_v1, %v85_v63 }
  0x79   :  { %v297_v22 = vadd.f32 %v296_v14, %v295_v2  ;;  %v302_v23 = vadd.f32 %v301_v15, %v300_v3  ;;  %v309_v24 = vadd.f32 %v308_v16, %v307_v4  ;;  %v328_v25 = vadd.f32 %v88_v9, %v87_v8  ;;  %v61_v8 = vld [vmem:[#allocation2 + $0x80] sm:$0xff]  ;;  %v62_v9 = vld [vmem:[#allocation2 + $0x88] sm:$0xff] }
  0x7a   :  { %v5723_v27 = vsel %vm1186_vm7, %v647_v17, %v1207_v18  ;;  %v316_v32 = vadd.f32 %v315_v20, %v314_v10  ;;  %v322_v33 = vrot.slane %v321_v21, 4  ;;  %v335_v34 = vadd.f32 %v90_v13, %v89_v12  ;;  %v63_v18 = vld [vmem:[#allocation2 + $0x90] sm:$0xff] }
  0x7b   :  { %v5726_v35 = vand.u32 4294901760, %v5723_v27  ;;  %v298_v36 = vrot.slane %v297_v22, 1  ;;  %v303_v44 = vrot.slane %v302_v23, 2  ;;  %v310_v37 = vrot.slane %v309_v24, 2 }
  0x7c   :  { %v317_v38 = vrot.slane %v316_v32, 2  ;;  %v323_v39 = vadd.f32 %v322_v33, %v321_v21  ;;  %v329_v40 = vrot.slane %v328_v25, 4  ;;  %v336_v41 = vrot.slane %v335_v34, 4 }
  0x7d   :  { %4944 = vmatprep.subr.mxu0 %v5726_v35  ;;  %v299_v42 = vadd.f32 %v298_v36, %v297_v22  ;;  %v304_v43 = vadd.f32 %v303_v44, %v302_v23  ;;  %v311_v45 = vadd.f32 %v310_v37, %v309_v24  ;;  %v342_v46 = vadd.f32 %v92_v29, %v91_v28  ;;  %v64_v22 = vld [vmem:[#allocation2 + $0x98] sm:$0xff]  ;;  %v65_v23 = vld [vmem:[#allocation2 + $0xa0] sm:$0xff]  ;;  %v66_v24 = vld [vmem:[#allocation2 + $0xa8] sm:$0xff] }
  0x7e   :  { %4945 = vmatpush3.msra.mxu0 %v5726_v35  ;;  %v318_v47 = vadd.f32 %v317_v38, %v316_v32  ;;  %v324_v49 = vrot.slane %v323_v39, 2  ;;  %v330_v50 = vadd.f32 %v329_v40, %v328_v25  ;;  %v337_v51 = vadd.f32 %v336_v41, %v335_v34  ;;  %v67_v34 = vld [vmem:[#allocation2 + $0xb0] sm:$0xff]  ;;  %v68_v36 = vld [vmem:[#allocation2 + $0xb8] sm:$0xff]  ;;  %v69_v44 = vld [vmem:[#allocation2 + $0xc0] sm:$0xff] }
  0x7f   :  { %v305_v52 = vrot.slane %v304_v43, 1  ;;  %v312_v53 = vrot.slane %v311_v45, 1  ;;  %v343_v54 = vrot.slane %v342_v46, 4  ;;  %v632_v55 = vmul.f32 0.0625, %v299_v42  ;;  %v70_v40 = vld [vmem:[#allocation2 + $0xc8] sm:$0xff]  ;;  %v71_v41 = vld [vmem:[#allocation2 + $0xd0] sm:$0xff] }
  0x80   :  { %v319_v57 = vrot.slane %v318_v47, 1  ;;  %v325_v58 = vadd.f32 %v324_v49, %v323_v39  ;;  %v331_v60 = vrot.slane %v330_v50, 2  ;;  %v338_v61 = vrot.slane %v337_v51, 2  ;;  %v72_v42 = vld [vmem:[#allocation2 + $0xd8] sm:$0xff] }
  0x81   :  { %v306_v63 = vadd.f32 %v305_v52, %v304_v43  ;;  %v313_v1 = vadd.f32 %v312_v53, %v311_v45  ;;  %v344_v2 = vadd.f32 %v343_v54, %v342_v46  ;;  %v5732_v3 = vsub.f32 %v5672_v56, %v5675_v62 }
  0x82   :  { %v320_v4 = vadd.f32 %v319_v57, %v318_v47  ;;  %v326_v5 = vrot.slane %v325_v58, 1  ;;  %v332_v6 = vadd.f32 %v331_v60, %v330_v50  ;;  %v339_v7 = vadd.f32 %v338_v61, %v337_v51  ;;  %v74_v57 = vld [vmem:[#allocation2 + $0xe8] sm:$0xff] }
  0x83   :  { %v345_v10 = vrot.slane %v344_v2, 2  ;;  %v633_v11 = vmul.f32 0.0625, %v306_v63  ;;  %v634_v12 = vmul.f32 0.0625, %v313_v1  ;;  %v5735_v13 = vand.u32 4294901760, %v5732_v3 }
  0x84   :  { %v327_v14 = vadd.f32 %v326_v5, %v325_v58  ;;  %v333_v15 = vrot.slane %v332_v6, 1  ;;  %v340_v16 = vrot.slane %v339_v7, 1  ;;  %v635_v17 = vmul.f32 0.0625, %v320_v4 }
  0x85   :  { %v346_v20 = vadd.f32 %v345_v10, %v344_v2  ;;  %v1195_v56 = vsel %vm1174_vm0, %v633_v11, %v632_v55  ;;  %v1372_v21 = vsub.f32 %v5732_v3, %v5735_v13  ;;  %v237_v25 = vadd.f32 %v62_v9, %v61_v8  ;;  %v73_v55 = vld [vmem:[#allocation2 + $0xe0] sm:$0xff]  ;;  %v75_v10 = vld [vmem:[#allocation2 + $0xf0] sm:$0xff]  ;;  %v76_v11 = vld [vmem:[#allocation2 + $0xf8] sm:$0xff] }
  0x86   :  { %v334_v28 = vadd.f32 %v333_v15, %v332_v6  ;;  %v341_v29 = vadd.f32 %v340_v16, %v339_v7  ;;  %v636_v32 = vmul.f32 0.0625, %v327_v14  ;;  %v1196_v33 = vsel %vm1176_vm1, %v634_v12, %v1195_v56 }
  0x87   :  { %v347_v37 = vrot.slane %v346_v20, 1  ;;  %v1197_v38 = vsel %vm1178_vm2, %v635_v17, %v1196_v33  ;;  %v1373_v39 = vand.u32 4294901760, %v1372_v21  ;;  %v238_v43 = vrot.slane %v237_v25, 4 }
  0x88   :  { %v637_v45 = vmul.f32 0.0625, %v334_v28  ;;  %v638_v46 = vmul.f32 0.0625, %v341_v29  ;;  %v1198_v47 = vsel %vm1180_vm3, %v636_v32, %v1197_v38  ;;  %v244_v49 = vadd.f32 %v64_v22, %v63_v18 }
  0x89   :  { %v348_v50 = vadd.f32 %v347_v37, %v346_v20  ;;  %4957 = vmatprep.subr.mxu1 %v1373_v39  ;;  %v239_v51 = vadd.f32 %v238_v43, %v237_v25  ;;  %v251_v52 = vadd.f32 %v66_v24, %v65_v23  ;;  %v258_v53 = vadd.f32 %v68_v36, %v67_v34 }
  0x8a   :  { %v1199_v54 = vsel %vm1182_vm4, %v637_v45, %v1198_v47  ;;  %4958 = vmatpush3.msra.mxu1 %v1373_v39  ;;  %v245_v58 = vrot.slane %v244_v49, 4  ;;  %v265_v60 = vadd.f32 %v70_v40, %v69_v44  ;;  %v272_v61 = vadd.f32 %v72_v42, %v71_v41 }
  0x8b   :  { %v639_v63 = vmul.f32 0.0625, %v348_v50  ;;  %v1200_v1 = vsel %vm1184_vm6, %v638_v46, %v1199_v54  ;;  %v240_v2 = vrot.slane %v239_v51, 2  ;;  %v252_v4 = vrot.slane %v251_v52, 4 }
  0x8c   :  { %v246_v5 = vadd.f32 %v245_v58, %v244_v49  ;;  %v259_v6 = vrot.slane %v258_v53, 4  ;;  %v266_v7 = vrot.slane %v265_v60, 4  ;;  %v273_v8 = vrot.slane %v272_v61, 4 }
  0x8d   :  { %v5746_v9 = vsel %vm1186_vm7, %v639_v63, %v1200_v1  ;;  %v241_v12 = vadd.f32 %v240_v2, %v239_v51  ;;  %v253_v14 = vadd.f32 %v252_v4, %v251_v52  ;;  %v279_v15 = vadd.f32 %v74_v57, %v73_v55  ;;  %v46_v4 = vld [vmem:[#allocation2 + $0x8] sm:$0xff] }
  0x8e   :  { %v5749_v16 = vand.u32 4294901760, %v5746_v9  ;;  %v247_v17 = vrot.slane %v246_v5, 2  ;;  %v260_v18 = vadd.f32 %v259_v6, %v258_v53  ;;  %v267_v20 = vadd.f32 %v266_v7, %v265_v60  ;;  %v45_v60 = vld [vmem:[#allocation2] sm:$0xff]  ;;  %v48_v6 = vld [vmem:[#allocation2 + $0x18] sm:$0xff] }
  0x8f   :  { %v242_v56 = vrot.slane %v241_v12, 1  ;;  %v254_v21 = vrot.slane %v253_v14, 2  ;;  %v274_v22 = vadd.f32 %v273_v8, %v272_v61  ;;  %v280_v23 = vrot.slane %v279_v15, 4 }
  0x90   :  { %4946 = vmatprep.subr.mxu0 %v5749_v16  ;;  %v248_v24 = vadd.f32 %v247_v17, %v246_v5  ;;  %v261_v25 = vrot.slane %v260_v18, 2  ;;  %v268_v28 = vrot.slane %v267_v20, 2  ;;  %v286_v29 = vadd.f32 %v76_v11, %v75_v10  ;;  %v47_v5 = vld [vmem:[#allocation2 + $0x10] sm:$0xff]  ;;  %v49_v11 = vld [vmem:[#allocation2 + $0x20] sm:$0xff] }
  0x91   :  { %4947 = vmatpush3.msra.mxu0 %v5749_v16  ;;  %v243_v32 = vadd.f32 %v242_v56, %v241_v12  ;;  %v255_v33 = vadd.f32 %v254_v21, %v253_v14  ;;  %v275_v34 = vrot.slane %v274_v22, 2  ;;  %v281_v36 = vadd.f32 %v280_v23, %v279_v15  ;;  %v50_v12 = vld [vmem:[#allocation2 + $0x28] sm:$0xff]  ;;  %v53_v23 = vld [vmem:[#allocation2 + $0x40] sm:$0xff] }
  0x92   :  { %v249_v44 = vrot.slane %v248_v24, 1  ;;  %v262_v37 = vadd.f32 %v261_v25, %v260_v18  ;;  %v269_v38 = vadd.f32 %v268_v28, %v267_v20  ;;  %v287_v39 = vrot.slane %v286_v29, 4  ;;  %v51_v20 = vld [vmem:[#allocation2 + $0x30] sm:$0xff] }
  0x93   :  { %v256_v40 = vrot.slane %v255_v33, 1  ;;  %v276_v41 = vadd.f32 %v275_v34, %v274_v22  ;;  %v282_v42 = vrot.slane %v281_v36, 2  ;;  %v624_v43 = vmul.f32 0.0625, %v243_v32  ;;  %v52_v22 = vld [vmem:[#allocation2 + $0x38] sm:$0xff]  ;;  %v55_v34 = vld [vmem:[#allocation2 + $0x50] sm:$0xff] }
  0x94   :  { %v250_v45 = vadd.f32 %v249_v44, %v248_v24  ;;  %v263_v46 = vrot.slane %v262_v37, 1  ;;  %v270_v47 = vrot.slane %v269_v38, 1  ;;  %v288_v49 = vadd.f32 %v287_v39, %v286_v29  ;;  %v54_v24 = vld [vmem:[#allocation2 + $0x48] sm:$0xff]  ;;  %v57_v39 = vld [vmem:[#allocation2 + $0x60] sm:$0xff] }
  0x95   :  { %v257_v50 = vadd.f32 %v256_v40, %v255_v33  ;;  %v277_v51 = vrot.slane %v276_v41, 1  ;;  %v283_v52 = vadd.f32 %v282_v42, %v281_v36  ;;  %v5755_v53 = vsub.f32 %v5686_v26, %v5689_v30  ;;  %v56_v36 = vld [vmem:[#allocation2 + $0x58] sm:$0xff]  ;;  %v58_v40 = vld [vmem:[#allocation2 + $0x68] sm:$0xff] }
  0x96   :  { %v264_v54 = vadd.f32 %v263_v46, %v262_v37  ;;  %v271_v55 = vadd.f32 %v270_v47, %v269_v38  ;;  %v289_v57 = vrot.slane %v288_v49, 2  ;;  %v625_v58 = vmul.f32 0.0625, %v250_v45 }
  0x97   :  { %v278_v61 = vadd.f32 %v277_v51, %v276_v41  ;;  %v284_v63 = vrot.slane %v283_v52, 1  ;;  %v626_v1 = vmul.f32 0.0625, %v257_v50  ;;  %v5758_v2 = vand.u32 4294901760, %v5755_v53 }
  0x98   :  { %v290_v7 = vadd.f32 %v289_v57, %v288_v49  ;;  %v627_v8 = vmul.f32 0.0625, %v264_v54  ;;  %v628_v10 = vmul.f32 0.0625, %v271_v55  ;;  %v1188_v26 = vsel %vm1174_vm0, %v625_v58, %v624_v43 }
  0x99   :  { %v285_v14 = vadd.f32 %v284_v63, %v283_v52  ;;  %v629_v15 = vmul.f32 0.0625, %v278_v61  ;;  %v1189_v17 = vsel %vm1176_vm1, %v626_v1, %v1188_v26  ;;  %v1379_v18 = vsub.f32 %v5755_v53, %v5758_v2  ;;  %v59_v61 = vld [vmem:[#allocation2 + $0x70] sm:$0xff]  ;;  %v60_v63 = vld [vmem:[#allocation2 + $0x78] sm:$0xff] }
  0x9a   :  { %v291_v56 = vrot.slane %v290_v7, 1  ;;  %v1190_v21 = vsel %vm1178_vm2, %v627_v8, %v1189_v17  ;;  %v181_v25 = vadd.f32 %v46_v4, %v45_v60  ;;  %v188_v28 = vadd.f32 %v48_v6, %v47_v5 }
  0x9b   :  { %v630_v29 = vmul.f32 0.0625, %v285_v14  ;;  %v1191_v32 = vsel %vm1180_vm3, %v628_v10, %v1190_v21  ;;  %v1380_v33 = vand.u32 4294901760, %v1379_v18  ;;  %v195_v44 = vadd.f32 %v50_v12, %v49_v11 }
  0x9c   :  { %v292_v37 = vadd.f32 %v291_v56, %v290_v7  ;;  %v1192_v38 = vsel %vm1182_vm4, %v629_v15, %v1191_v32  ;;  %v182_v41 = vrot.slane %v181_v25, 4  ;;  %v189_v42 = vrot.slane %v188_v28, 4 }
  0x9d   :  { %v1193_v43 = vsel %vm1184_vm6, %v630_v29, %v1192_v38  ;;  %4959 = vmatprep.subr.mxu1 %v1380_v33  ;;  %v196_v45 = vrot.slane %v195_v44, 4  ;;  %v202_v46 = vadd.f32 %v52_v22, %v51_v20  ;;  %v209_v47 = vadd.f32 %v54_v24, %v53_v23 }
  0x9e   :  { %v631_v49 = vmul.f32 0.0625, %v292_v37  ;;  %4960 = vmatpush3.msra.mxu1 %v1380_v33  ;;  %v183_v50 = vadd.f32 %v182_v41, %v181_v25  ;;  %v190_v51 = vadd.f32 %v189_v42, %v188_v28  ;;  %v216_v52 = vadd.f32 %v56_v36, %v55_v34 }
  0x9f   :  { %v197_v54 = vadd.f32 %v196_v45, %v195_v44  ;;  %v203_v55 = vrot.slane %v202_v46, 4  ;;  %v210_v57 = vrot.slane %v209_v47, 4  ;;  %v223_v58 = vadd.f32 %v58_v40, %v57_v39 }
  0xa0   :  { %v5769_v60 = vsel %vm1186_vm7, %v631_v49, %v1193_v43  ;;  %v184_v1 = vrot.slane %v183_v50, 2  ;;  %v191_v4 = vrot.slane %v190_v51, 2  ;;  %v217_v5 = vrot.slane %v216_v52, 4 }
  0xa1   :  { %v5772_v6 = vand.u32 4294901760, %v5769_v60  ;;  %v198_v7 = vrot.slane %v197_v54, 2  ;;  %v204_v8 = vadd.f32 %v203_v55, %v202_v46  ;;  %v211_v10 = vadd.f32 %v210_v57, %v209_v47  ;;  %v169_v55 = vld [vmem:[%s7234_s1] sm:$0xff]  ;;  %v170_v57 = vld [vmem:[%s7234_s1 + $0x8] sm:$0xf] }
  0xa2   :  { %v185_v26 = vadd.f32 %v184_v1, %v183_v50  ;;  %v192_v11 = vadd.f32 %v191_v4, %v190_v51  ;;  %v218_v12 = vadd.f32 %v217_v5, %v216_v52  ;;  %v224_v14 = vrot.slane %v223_v58, 4 }
  0xa3   :  { %4948 = vmatprep.subr.mxu0 %v5772_v6  ;;  %v199_v15 = vadd.f32 %v198_v7, %v197_v54  ;;  %v205_v17 = vrot.slane %v204_v8, 2  ;;  %v212_v18 = vrot.slane %v211_v10, 2  ;;  %v230_v20 = vadd.f32 %v60_v63, %v59_v61 }
  0xa4   :  { %4949 = vmatpush3.msra.mxu0 %v5772_v6  ;;  %v186_v56 = vrot.slane %v185_v26, 1  ;;  %v193_v21 = vrot.slane %v192_v11, 1  ;;  %v219_v22 = vrot.slane %v218_v12, 2  ;;  %v225_v23 = vadd.f32 %v224_v14, %v223_v58 }
  0xa5   :  { %v200_v24 = vrot.slane %v199_v15, 1  ;;  %v206_v25 = vadd.f32 %v205_v17, %v204_v8  ;;  %v213_v28 = vadd.f32 %v212_v18, %v211_v10  ;;  %v231_v29 = vrot.slane %v230_v20, 4 }
  0xa6   :  { %v187_v32 = vadd.f32 %v186_v56, %v185_v26  ;;  %v194_v33 = vadd.f32 %v193_v21, %v192_v11  ;;  %v220_v34 = vadd.f32 %v219_v22, %v218_v12  ;;  %v226_v36 = vrot.slane %v225_v23, 2 }
  0xa7   :  { %v201_v44 = vadd.f32 %v200_v24, %v199_v15  ;;  %v207_v37 = vrot.slane %v206_v25, 1  ;;  %v214_v38 = vrot.slane %v213_v28, 1  ;;  %v232_v39 = vadd.f32 %v231_v29, %v230_v20 }
  0xa8   :  { %v221_v40 = vrot.slane %v220_v34, 1  ;;  %v227_v41 = vadd.f32 %v226_v36, %v225_v23  ;;  %v616_v42 = vmul.f32 0.0625, %v187_v32  ;;  %v617_v43 = vmul.f32 0.0625, %v194_v33  ;;  %v5306_v33 = vld [vmem:[#allocation2 + $0x380] sm:$0xff] }
  0xa9   :  { %v208_v45 = vadd.f32 %v207_v37, %v206_v25  ;;  %v215_v46 = vadd.f32 %v214_v38, %v213_v28  ;;  %v233_v47 = vrot.slane %v232_v39, 2  ;;  %v618_v49 = vmul.f32 0.0625, %v201_v44  ;;  %v5308_v44 = vld [vmem:[#allocation2 + $0x390] sm:$0xff]  ;;  %v5309_v37 = vld [vmem:[#allocation2 + $0x398] sm:$0xff] }
  0xaa   :  { %v222_v50 = vadd.f32 %v221_v40, %v220_v34  ;;  %v228_v51 = vrot.slane %v227_v41, 1  ;;  %v1175_v52 = vsel %vm1174_vm0, %v617_v43, %v616_v42  ;;  %v5779_v54 = vsub.f32 %v5700_v59, %v5703_v0  ;;  %v5307_v34 = vld [vmem:[#allocation2 + $0x388] sm:$0xff] }
  0xab   :  { %v234_v58 = vadd.f32 %v233_v47, %v232_v39  ;;  %v619_v61 = vmul.f32 0.0625, %v208_v45  ;;  %v620_v63 = vmul.f32 0.0625, %v215_v46  ;;  %v1177_v1 = vsel %vm1176_vm1, %v618_v49, %v1175_v52 }
  0xac   :  { %v229_v4 = vadd.f32 %v228_v51, %v227_v41  ;;  %v621_v5 = vmul.f32 0.0625, %v222_v50  ;;  %v5789_v7 = vand.u32 4294901760, %v5779_v54  ;;  %v1244_v10 = vsel %vm1242_vm8, %v169_v55, 0 }
  0xad   :  { %v235_v59 = vrot.slane %v234_v58, 1  ;;  %v1179_v8 = vsel %vm1178_vm2, %v619_v61, %v1177_v1  ;;  %v1247_v26 = vsel %vm1242_vm8, %v170_v57, 0  ;;  %v5795_v15 = vand.u32 4294901760, %v1244_v10 }
  0xae   :  { %v622_v11 = vmul.f32 0.0625, %v229_v4  ;;  %v1181_v12 = vsel %vm1180_vm3, %v620_v63, %v1179_v8  ;;  %v1386_v14 = vsub.f32 %v5779_v54, %v5789_v7  ;;  %v5798_v20 = vand.u32 4294901760, %v1247_v26  ;;  %v5310_v4 = vld [vmem:[#allocation2 + $0x3a0] sm:$0xff] }
  0xaf   :  { %v236_v17 = vadd.f32 %v235_v59, %v234_v58  ;;  %v1183_v18 = vsel %vm1182_vm4, %v621_v5, %v1181_v12  ;;  %v5802_v56 = vsub.f32 %v5723_v27, %v5726_v35  ;;  %v5806_v23 = vsub.f32 %v1244_v10, %v5795_v15  ;;  %4971 = vmatprep.mubr.f32.mxu1 %v5795_v15  ;;  %v5311_v5 = vld [vmem:[#allocation2 + $0x3a8] sm:$0xff] }
  0xb0   :  { %v1185_v21 = vsel %vm1184_vm6, %v622_v11, %v1183_v18  ;;  %v1387_v22 = vand.u32 4294901760, %v1386_v14  ;;  %v5810_v24 = vsub.f32 %v5746_v9, %v5749_v16  ;;  %v5817_v29 = vsub.f32 %v1247_v26, %v5798_v20  ;;  %v5312_v26 = vld [vmem:[#allocation2 + $0x3b0] sm:$0xff]  ;;  %v5313_v11 = vld [vmem:[#allocation2 + $0x3b8] sm:$0xff]  ;;  %v5314_v14 = vld [vmem:[#allocation2 + $0x3c0] sm:$0xff] }
  0xb1   :  { %v623_v25 = vmul.f32 0.0625, %v236_v17  ;;  %v5814_v28 = vand.u32 4294901760, %v5802_v56  ;;  %v5821_v27 = vsub.f32 %v5769_v60, %v5772_v6  ;;  %v5824_v32 = vand.u32 4294901760, %v5806_v23  ;;  %v5315_v17 = vld [vmem:[#allocation2 + $0x3c8] sm:$0xff] }
  0xb2   :  { %4961 = vmatprep.subr.mxu1 %v1387_v22  ;;  %v5827_v9 = vand.u32 4294901760, %v5810_v24  ;;  %v1070_v36 = vmax.f32 %v5306_v33, %v5307_v34  ;;  %v1077_v38 = vmax.f32 %v5308_v44, %v5309_v37  ;;  %v5833_v40 = vand.u32 4294901760, %v5817_v29  ;;  %v5317_v33 = vld [vmem:[#allocation2 + $0x3d8] sm:$0xff]  ;;  %v5319_v44 = vld [vmem:[#allocation2 + $0x308] sm:$0xff] }
  0xb3   :  { %v1187_v39 = vsel %vm1186_vm7, %v623_v25, %v1185_v21  ;;  %4962 = vmatpush3.msra.mxu1 %v1387_v22  ;;  %v1393_v60 = vsub.f32 %v5802_v56, %v5814_v28  ;;  %v5836_v41 = vand.u32 4294901760, %v5821_v27  ;;  %v1328_v43 = vsub.f32 %v5806_v23, %v5824_v32  ;;  %v5316_v25 = vld [vmem:[#allocation2 + $0x3d0] sm:$0xff] }
  0xb4   :  { %v5838_v42 = vand.u32 4294901760, %v1187_v39  ;;  %v1400_v45 = vsub.f32 %v5810_v24, %v5827_v9  ;;  %v1071_v46 = vrot.slane %v1070_v36, 4  ;;  %v1338_v49 = vsub.f32 %v5817_v29, %v5833_v40 }
  0xb5   :  { %v1394_v47 = vand.u32 4294901760, %v1393_v60  ;;  %v1407_v50 = vsub.f32 %v5821_v27, %v5836_v41  ;;  %v1078_v51 = vrot.slane %v1077_v38, 4  ;;  %v5849_v52 = vand.u32 4294901760, %v1328_v43 }
  0xb6   :  { %4950 = vmatprep.subr.mxu0 %v5838_v42  ;;  %v1401_v55 = vand.u32 4294901760, %v1400_v45  ;;  %v5852_v57 = vsub.f32 %v1187_v39, %v5838_v42  ;;  %v1072_v58 = vmax.f32 %v1070_v36, %v1071_v46  ;;  %v5855_v61 = vand.u32 4294901760, %v1338_v49  ;;  %v5318_v36 = vld [vmem:[#allocation2 + $0x300] sm:$0xff] }
  0xb7   :  { %4951 = vmatpush3.msra.mxu0 %v5838_v42  ;;  %4963 = vmatprep.subr.mxu1 %v1394_v47  ;;  %v1408_v63 = vand.u32 4294901760, %v1407_v50  ;;  %v1079_v1 = vmax.f32 %v1077_v38, %v1078_v51  ;;  %v1084_v59 = vmax.f32 %v5310_v4, %v5311_v5  ;;  %v1091_v12 = vmax.f32 %v5312_v26, %v5313_v11  ;;  %v5320_v11 = vld [vmem:[#allocation2 + $0x310] sm:$0xff] }
  0xb8   :  { %4952 = vmatprep.mubr.f32.mxu0 %v5849_v52  ;;  %4974 = vmatprep.subr.mxu0 %v5709_v19  ;;  %v5860_v8 = vand.u32 4294901760, %v5852_v57  ;;  %v1073_v10 = vrot.slane %v1072_v58, 2  ;;  %v1098_v18 = vmax.f32 %v5314_v14, %v5315_v17  ;;  %v1105_v34 = vmax.f32 %v5316_v25, %v5317_v33  ;;  %v5322_v25 = vld [vmem:[#allocation2 + $0x320] sm:$0xff]  ;;  %v5323_v33 = vld [vmem:[#allocation2 + $0x328] sm:$0xff] }
  0xb9   :  { %4953 = vmatmul.mubr.f32.vlgmr.msra.gmra.mxu0 %v5855_v61  ;;  %4964 = vmatpush3.msra.mxu1 %v1394_v47  ;;  %v1080_v21 = vrot.slane %v1079_v1, 2  ;;  %v1085_v22 = vrot.slane %v1084_v59, 4  ;;  %v1014_v37 = vmax.f32 %v5318_v36, %v5319_v44  ;;  %v1092_v60 = vrot.slane %v1091_v12, 4 }
  0xba   :  { %4975 = vmatpush3.msra.mxu0 %v5709_v19  ;;  %4965 = vmatprep.subr.mxu1 %v1401_v55  ;;  %v1414_v38 = vsub.f32 %v5852_v57, %v5860_v8  ;;  %v1074_v39 = vmax.f32 %v1072_v58, %v1073_v10  ;;  %v1099_v43 = vrot.slane %v1098_v18, 4  ;;  %v1106_v47 = vrot.slane %v1105_v34, 4 }
  0xbb   :  { %4976 = vmatprep.subr.mxu0 %v5732_v3  ;;  %4966 = vmatpush3.msra.mxu1 %v1401_v55  ;;  %v1081_v45 = vmax.f32 %v1079_v1, %v1080_v21  ;;  %v1086_v46 = vmax.f32 %v1084_v59, %v1085_v22  ;;  %v1015_v49 = vrot.slane %v1014_v37, 4  ;;  %v1093_v19 = vmax.f32 %v1091_v12, %v1092_v60 }
  0xbc   :  { %4977 = vmatpush3.msra.mxu0 %v5732_v3  ;;  %4967 = vmatprep.subr.mxu1 %v1408_v63  ;;  %v1415_v50 = vand.u32 4294901760, %v1414_v38  ;;  %v1075_v51 = vrot.slane %v1074_v39, 1  ;;  %v1100_v4 = vmax.f32 %v1098_v18, %v1099_v43  ;;  %v1107_v10 = vmax.f32 %v1105_v34, %v1106_v47  ;;  %v5321_v3 = vld [vmem:[#allocation2 + $0x318] sm:$0xff] }
  0xbd   :  { %4978 = vmatprep.subr.mxu0 %v5755_v53  ;;  %4968 = vmatpush3.msra.mxu1 %v1408_v63  ;;  %v1082_v58 = vrot.slane %v1081_v45, 1  ;;  %v1087_v5 = vrot.slane %v1086_v46, 2  ;;  %v1016_v26 = vmax.f32 %v1014_v37, %v1015_v49  ;;  %v1094_v1 = vrot.slane %v1093_v19, 2  ;;  %v5324_v49 = vld [vmem:[#allocation2 + $0x330] sm:$0xff] }
  0xbe   :  { %4979 = vmatpush3.msra.mxu0 %v5755_v53  ;;  %4969 = vmatprep.subr.mxu1 %v1415_v50  ;;  %v1076_v55 = vmax.f32 %v1074_v39, %v1075_v51  ;;  %v1101_v59 = vrot.slane %v1100_v4, 2  ;;  %v1021_v14 = vmax.f32 %v5320_v11, %v5321_v3  ;;  %v1108_v18 = vrot.slane %v1107_v10, 2  ;;  %v5326_v11 = vld [vmem:[#allocation2 + $0x340] sm:$0xff]  ;;  %v5327_v3 = vld [vmem:[#allocation2 + $0x348] sm:$0xff] }
  0xbf   :  { %4980 = vmatprep.subr.mxu0 %v5779_v54  ;;  %4970 = vmatpush3.msra.mxu1 %v1415_v50  ;;  %v1083_v12 = vmax.f32 %v1081_v45, %v1082_v58  ;;  %v1088_v17 = vmax.f32 %v1086_v46, %v1087_v5  ;;  %v1017_v63 = vrot.slane %v1016_v26, 2  ;;  %v1095_v21 = vmax.f32 %v1093_v19, %v1094_v1  ;;  %v5325_v50 = vld [vmem:[#allocation2 + $0x338] sm:$0xff] }
  0xc0   :  { %4981 = vmatpush3.msra.mxu0 %v5779_v54  ;;  %4972 = vmatmul.mubr.f32.vlgmr.msra.gmra.mxu1 %v5798_v20  ;;  %v1102_v53 = vmax.f32 %v1100_v4, %v1101_v59  ;;  %v1022_v22 = vrot.slane %v1021_v14, 4  ;;  %v1028_v34 = vmax.f32 %v5322_v25, %v5323_v33  ;;  %v1109_v44 = vmax.f32 %v1107_v10, %v1108_v18  ;;  %v5328_v18 = vld [vmem:[#allocation2 + $0x350] sm:$0xff] }
  0xc1   :  { %4982 = vmatprep.subr.mxu0 %v5802_v56  ;;  %4993 = vmatprep.subr.mxu1 %v5661_v48  ;;  %v1089_v36 = vrot.slane %v1088_v17, 1  ;;  %v1945_v37 = vsel %vm1174_vm0, %v1083_v12, %v1076_v55  ;;  %v1018_v38 = vmax.f32 %v1016_v26, %v1017_v63  ;;  %v1096_v54 = vrot.slane %v1095_v21, 1  ;;  %v5329_v63 = vld [vmem:[#allocation2 + $0x358] sm:$0xff] }
  0xc2   :  { %4983 = vmatpush3.msra.mxu0 %v5802_v56  ;;  %4994 = vmatpush3.msra.mxu1 %v5661_v48  ;;  %v1103_v39 = vrot.slane %v1102_v53, 1  ;;  %v1023_v60 = vmax.f32 %v1021_v14, %v1022_v22  ;;  %v1029_v43 = vrot.slane %v1028_v34, 4  ;;  %v1110_v46 = vrot.slane %v1109_v44, 1 }
  0xc3   :  { %4984 = vmatprep.subr.mxu0 %v5810_v24  ;;  %4995 = vmatprep.subr.mxu1 %v5675_v62  ;;  %v1090_v45 = vmax.f32 %v1088_v17, %v1089_v36  ;;  %v1019_v47 = vrot.slane %v1018_v38, 1  ;;  %v1035_v51 = vmax.f32 %v5324_v49, %v5325_v50  ;;  %v1097_v56 = vmax.f32 %v1095_v21, %v1096_v54  ;;  %v5330_v36 = vld [vmem:[#allocation2 + $0x360] sm:$0xff] }
  0xc4   :  { %4985 = vmatpush3.msra.mxu0 %v5810_v24  ;;  %4996 = vmatpush3.msra.mxu1 %v5675_v62  ;;  %v1104_v19 = vmax.f32 %v1102_v53, %v1103_v39  ;;  %v1024_v4 = vrot.slane %v1023_v60, 2  ;;  %v1030_v58 = vmax.f32 %v1028_v34, %v1029_v43  ;;  %v1111_v5 = vmax.f32 %v1109_v44, %v1110_v46  ;;  %v5331_v44 = vld [vmem:[#allocation2 + $0x368] sm:$0xff]  ;;  %v5332_v46 = vld [vmem:[#allocation2 + $0x370] sm:$0xff] }
  0xc5   :  { %4986 = vmatprep.subr.mxu0 %v5821_v27  ;;  %4997 = vmatprep.subr.mxu1 %v5689_v30  ;;  %v1946_v10 = vsel %vm1176_vm1, %v1090_v45, %v1945_v37  ;;  %v1020_v26 = vmax.f32 %v1018_v38, %v1019_v47  ;;  %v1036_v55 = vrot.slane %v1035_v51, 4  ;;  %v1042_v14 = vmax.f32 %v5326_v11, %v5327_v3  ;;  %v5333_v47 = vld [vmem:[#allocation2 + $0x378] sm:$0xff] }
  0xc6   :  { %4987 = vmatpush3.msra.mxu0 %v5821_v27  ;;  %4998 = vmatpush3.msra.mxu1 %v5689_v30  ;;  %v1947_v24 = vsel %vm1178_vm2, %v1097_v56, %v1946_v10  ;;  %v1025_v1 = vmax.f32 %v1023_v60, %v1024_v4  ;;  %v1031_v59 = vrot.slane %v1030_v58, 2  ;;  %v1049_v21 = vmax.f32 %v5328_v18, %v5329_v63  ;;  %v5335_v4 = vld [vmem:[#allocation2 + $0x288] sm:$0xff]  ;;  %v5337_v11 = vld [vmem:[#allocation2 + $0x298] sm:$0xff] }
  0xc7   :  { %4988 = vmatprep.subr.mxu0 %v5852_v57  ;;  %4999 = vmatprep.subr.mxu1 %v5703_v0  ;;  %v1948_v12 = vsel %vm1180_vm3, %v1104_v19, %v1947_v24  ;;  %v1037_v17 = vmax.f32 %v1035_v51, %v1036_v55  ;;  %v1043_v25 = vrot.slane %v1042_v14, 4  ;;  %v1056_v37 = vmax.f32 %v5330_v36, %v5331_v44  ;;  %v5334_v19 = vld [vmem:[#allocation2 + $0x280] sm:$0xff] }
  0xc8   :  { %4989 = vmatpush3.msra.mxu0 %v5852_v57  ;;  %4990 = vmatprep.mubr.f32.mxu0 %v5806_v23  ;;  %v1949_v27 = vsel %vm1182_vm4, %v1111_v5, %v1948_v12  ;;  %v1026_v53 = vrot.slane %v1025_v1, 1  ;;  %v1032_v22 = vmax.f32 %v1030_v58, %v1031_v59  ;;  %v1050_v34 = vrot.slane %v1049_v21, 4 }
  0xc9   :  { %5000 = vmatpush3.msra.mxu1 %v5703_v0  ;;  %4991 = vmatmul.mubr.f32.vlgmr.msra.gmra.mxu0 %v5817_v29  ;;  %v1038_v33 = vrot.slane %v1037_v17, 2  ;;  %v5899_v57 = vsel %vm1249_vm5, %v1949_v27, 0  ;;  %v1044_v39 = vmax.f32 %v1042_v14, %v1043_v25  ;;  %v1057_v45 = vrot.slane %v1056_v37, 4  ;;  %v5338_v27 = vld [vmem:[#allocation2 + $0x2a0] sm:$0xff] }
  0xca   :  { %5001 = vmatprep.subr.mxu1 %v5726_v35  ;;  %5012 = vmatprep.subr.mxu0 %v5713_v31  ;;  %v1027_v38 = vmax.f32 %v1025_v1, %v1026_v53  ;;  %v1033_v54 = vrot.slane %v1032_v22, 1  ;;  %v1051_v43 = vmax.f32 %v1049_v21, %v1050_v34  ;;  %v1063_v49 = vmax.f32 %v5332_v46, %v5333_v47  ;;  %v5339_v53 = vld [vmem:[#allocation2 + $0x2a8] sm:$0xff] }
  0xcb   :  { %5002 = vmatpush3.msra.mxu1 %v5726_v35  ;;  %5013 = vmatpush3.msra.mxu0 %v5713_v31  ;;  %v1039_v60 = vmax.f32 %v1037_v17, %v1038_v33  ;;  %v1045_v51 = vrot.slane %v1044_v39, 2  ;;  %v958_v58 = vmax.f32 %v5334_v19, %v5335_v4  ;;  %v1058_v10 = vmax.f32 %v1056_v37, %v1057_v45  ;;  %v5341_v45 = vld [vmem:[#allocation2 + $0x2b8] sm:$0xff] }
  0xcc   :  { %5003 = vmatprep.subr.mxu1 %v5749_v16  ;;  %5014 = vmatprep.subr.mxu0 %v5735_v13  ;;  %v1034_v50 = vmax.f32 %v1032_v22, %v1033_v54  ;;  %v1938_v56 = vsel %vm1174_vm0, %v1027_v38, %v1020_v26  ;;  %v1052_v5 = vrot.slane %v1051_v43, 2  ;;  %v1064_v55 = vrot.slane %v1063_v49, 4  ;;  %v5336_v26 = vld [vmem:[#allocation2 + $0x290] sm:$0xff] }
  0xcd   :  { %5004 = vmatpush3.msra.mxu1 %v5749_v16  ;;  %5015 = vmatpush3.msra.mxu0 %v5735_v13  ;;  %v1040_v31 = vrot.slane %v1039_v60, 1  ;;  %v1046_v24 = vmax.f32 %v1044_v39, %v1045_v51  ;;  %v959_v59 = vrot.slane %v958_v58, 4  ;;  %v965_v3 = vmax.f32 %v5336_v26, %v5337_v11 }
  0xce   :  { %5005 = vmatprep.subr.mxu1 %v5772_v6  ;;  %5016 = vmatprep.subr.mxu0 %v5758_v2  ;;  %v1939_v1 = vsel %vm1176_vm1, %v1034_v50, %v1938_v56  ;;  %v1053_v14 = vmax.f32 %v1051_v43, %v1052_v5  ;;  %v1059_v12 = vrot.slane %v1058_v10, 2  ;;  %v1065_v17 = vmax.f32 %v1063_v49, %v1064_v55  ;;  %v5340_v43 = vld [vmem:[#allocation2 + $0x2b0] sm:$0xff]  ;;  %v5343_v5 = vld [vmem:[#allocation2 + $0x2c8] sm:$0xff] }
  0xcf   :  { %5006 = vmatpush3.msra.mxu1 %v5772_v6  ;;  %5017 = vmatpush3.msra.mxu0 %v5758_v2  ;;  %v1041_v13 = vmax.f32 %v1039_v60, %v1040_v31  ;;  %v1047_v18 = vrot.slane %v1046_v24, 1  ;;  %v960_v63 = vmax.f32 %v958_v58, %v959_v59  ;;  %v966_v21 = vrot.slane %v965_v3, 4  ;;  %v5342_v31 = vld [vmem:[#allocation2 + $0x2c0] sm:$0xff] }
  0xd0   :  { %5007 = vmatprep.subr.mxu1 %v5838_v42  ;;  %5018 = vmatprep.subr.mxu0 %v5789_v7  ;;  %v972_v22 = vmax.f32 %v5338_v27, %v5339_v53  ;;  %v1054_v25 = vrot.slane %v1053_v14, 1  ;;  %v1060_v2 = vmax.f32 %v1058_v10, %v1059_v12  ;;  %v1066_v33 = vrot.slane %v1065_v17, 2  ;;  %v5345_v12 = vld [vmem:[#allocation2 + $0x2d8] sm:$0xff] }
  0xd1   :  { %5008 = vmatpush3.msra.mxu1 %v5838_v42  ;;  %5009 = vmatprep.mubr.f32.mxu1 %v5824_v32  ;;  %v1940_v34 = vsel %vm1178_vm2, %v1041_v13, %v1939_v1  ;;  %v1048_v36 = vmax.f32 %v1046_v24, %v1047_v18  ;;  %v961_v44 = vrot.slane %v960_v63, 2  ;;  %v967_v37 = vmax.f32 %v965_v3, %v966_v21  ;;  %v5346_v18 = vld [vmem:[#allocation2 + $0x2e0] sm:$0xff] }
  0xd2   :  { %5019 = vmatpush3.msra.mxu0 %v5789_v7  ;;  %5010 = vmatmul.mubr.f32.vlgmr.msra.gmra.mxu1 %v5833_v40  ;;  %v973_v38 = vrot.slane %v972_v22, 4  ;;  %v1055_v54 = vmax.f32 %v1053_v14, %v1054_v25  ;;  %v1061_v39 = vrot.slane %v1060_v2, 1  ;;  %v1067_v60 = vmax.f32 %v1065_v17, %v1066_v33  ;;  %v5344_v14 = vld [vmem:[#allocation2 + $0x2d0] sm:$0xff] }
  0xd3   :  { %5020 = vmatprep.subr.mxu0 %v5814_v28  ;;  %5031 = vmatprep.subr.mxu1 %v5661_v48  ;;  %v979_v46 = vmax.f32 %v5340_v43, %v5341_v45  ;;  %v1941_v7 = vsel %vm1180_vm3, %v1048_v36, %v1940_v34  ;;  %v962_v47 = vmax.f32 %v960_v63, %v961_v44  ;;  %v968_v49 = vrot.slane %v967_v37, 2  ;;  %v5347_v63 = vld [vmem:[#allocation2 + $0x2e8] sm:$0xff]  ;;  %v5348_v33 = vld [vmem:[#allocation2 + $0x2f0] sm:$0xff]  ;;  %v5349_v34 = vld [vmem:[#allocation2 + $0x2f8] sm:$0xff] }
  0xd4   :  { %5021 = vmatpush3.msra.mxu0 %v5814_v28  ;;  %5032 = vmatpush3.msra.mxu1 %v5661_v48  ;;  %v974_v50 = vmax.f32 %v972_v22, %v973_v38  ;;  %v1062_v51 = vmax.f32 %v1060_v2, %v1061_v39  ;;  %v1068_v56 = vrot.slane %v1067_v60, 1  ;;  %v1942_v19 = vsel %vm1182_vm4, %v1055_v54, %v1941_v7  ;;  %v5350_v38 = vld [vmem:[#allocation2 + $0x200] sm:$0xff]  ;;  %v5351_v54 = vld [vmem:[#allocation2 + $0x208] sm:$0xff] }
  0xd5   :  { %5022 = vmatprep.subr.mxu0 %v5827_v9  ;;  %5033 = vmatprep.subr.mxu1 %v5675_v62  ;;  %v980_v4 = vrot.slane %v979_v46, 4  ;;  %v963_v28 = vrot.slane %v962_v47, 1  ;;  %v969_v48 = vmax.f32 %v967_v37, %v968_v49  ;;  %v986_v10 = vmax.f32 %v5342_v31, %v5343_v5  ;;  %v5352_v49 = vld [vmem:[#allocation2 + $0x210] sm:$0xff]  ;;  %v5354_v31 = vld [vmem:[#allocation2 + $0x220] sm:$0xff]  ;;  %v5355_v5 = vld [vmem:[#allocation2 + $0x228] sm:$0xff] }
  0xd6   :  { %5023 = vmatpush3.msra.mxu0 %v5827_v9  ;;  %5034 = vmatpush3.msra.mxu1 %v5675_v62  ;;  %v975_v58 = vrot.slane %v974_v50, 2  ;;  %v5933_v55 = vand.u32 4294901760, %v5899_v57  ;;  %v1069_v24 = vmax.f32 %v1067_v60, %v1068_v56  ;;  %v1943_v1 = vsel %vm1184_vm6, %v1062_v51, %v1942_v19 }
  0xd7   :  { %5024 = vmatprep.subr.mxu0 %v5836_v41  ;;  %5035 = vmatprep.subr.mxu1 %v5689_v30  ;;  %v981_v59 = vmax.f32 %v979_v46, %v980_v4  ;;  %v964_v62 = vmax.f32 %v962_v47, %v963_v28  ;;  %v970_v9 = vrot.slane %v969_v48, 1  ;;  %v987_v11 = vrot.slane %v986_v10, 4 }
  0xd8   :  { %5025 = vmatpush3.msra.mxu0 %v5836_v41  ;;  %5036 = vmatpush3.msra.mxu1 %v5689_v30  ;;  %v976_v26 = vmax.f32 %v974_v50, %v975_v58  ;;  %v5941_v3 = vsel %vm1186_vm7, %v1069_v24, %v1943_v1  ;;  %v993_v17 = vmax.f32 %v5344_v14, %v5345_v12  ;;  %v5353_v50 = vld [vmem:[#allocation2 + $0x218] sm:$0xff] }
  0xd9   :  { %5026 = vmatprep.subr.mxu0 %v5860_v8  ;;  %5037 = vmatprep.subr.mxu1 %v5703_v0  ;;  %v982_v13 = vrot.slane %v981_v59, 2  ;;  %v1000_v41 = vmax.f32 %v5346_v18, %v5347_v63  ;;  %v5946_v30 = vand.u32 4294901760, %v5941_v3  ;;  %v971_v21 = vmax.f32 %v969_v48, %v970_v9  ;;  %v5357_v18 = vld [vmem:[#allocation2 + $0x238] sm:$0xff] }
  0xda   :  { %5027 = vmatpush3.msra.mxu0 %v5860_v8  ;;  %5028 = vmatprep.mubr.f32.mxu0 %v5795_v15  ;;  %v977_v27 = vrot.slane %v976_v26, 1  ;;  %v988_v53 = vmax.f32 %v986_v10, %v987_v11  ;;  %v994_v25 = vrot.slane %v993_v17, 4  ;;  %v1007_v36 = vmax.f32 %v5348_v33, %v5349_v34 }
  0xdb   :  { %5038 = vmatpush3.msra.mxu1 %v5703_v0  ;;  %5029 = vmatmul.mubr.f32.vlgmr.msra.gmra.mxu0 %v5798_v20  ;;  %v983_v22 = vmax.f32 %v981_v59, %v982_v13  ;;  %v1001_v2 = vrot.slane %v1000_v41, 4  ;;  %v1931_v37 = vsel %vm1174_vm0, %v971_v21, %v964_v62  ;;  %v902_v39 = vmax.f32 %v5350_v38, %v5351_v54  ;;  %v5360_v54 = vld [vmem:[#allocation2 + $0x250] sm:$0xff] }
  0xdc   :  { %5039 = vmatprep.subr.mxu1 %v5726_v35  ;;  %5050 = vmatprep.subr.mxu0 %v5933_v55  ;;  %v978_v8 = vmax.f32 %v976_v26, %v977_v27  ;;  %v989_v44 = vrot.slane %v988_v53, 2  ;;  %v995_v60 = vmax.f32 %v993_v17, %v994_v25  ;;  %v1008_v45 = vrot.slane %v1007_v36, 4  ;;  %v5356_v17 = vld [vmem:[#allocation2 + $0x230] sm:$0xff] }
  0xdd   :  { %5040 = vmatpush3.msra.mxu1 %v5726_v35  ;;  %5051 = vmatpush3.msra.mxu0 %v5933_v55  ;;  %v984_v0 = vrot.slane %v983_v22, 1  ;;  %v1002_v43 = vmax.f32 %v1000_v41, %v1001_v2  ;;  %v903_v47 = vrot.slane %v902_v39, 4  ;;  %v909_v51 = vmax.f32 %v5352_v49, %v5353_v50 }
  0xde   :  { %5041 = vmatprep.subr.mxu1 %v5749_v16  ;;  %5052 = vmatprep.subr.mxu0 %v5946_v30  ;;  %v990_v46 = vmax.f32 %v988_v53, %v989_v44  ;;  %v1932_v7 = vsel %vm1176_vm1, %v978_v8, %v1931_v37  ;;  %v996_v56 = vrot.slane %v995_v60, 2  ;;  %v1009_v4 = vmax.f32 %v1007_v36, %v1008_v45  ;;  %v5358_v36 = vld [vmem:[#allocation2 + $0x240] sm:$0xff]  ;;  %v5359_v8 = vld [vmem:[#allocation2 + $0x248] sm:$0xff] }
  0xdf   :  { %5042 = vmatpush3.msra.mxu1 %v5749_v16  ;;  %5053 = vmatpush3.msra.mxu0 %v5946_v30  ;;  %v985_v35 = vmax.f32 %v983_v22, %v984_v0  ;;  %v1003_v19 = vrot.slane %v1002_v43, 2  ;;  %v904_v48 = vmax.f32 %v902_v39, %v903_v47  ;;  %v910_v58 = vrot.slane %v909_v51, 4  ;;  %v5361_v39 = vld [vmem:[#allocation2 + $0x258] sm:$0xff] }
  0xe0   :  { %5043 = vmatprep.subr.mxu1 %v5772_v6  ;;  %v991_v28 = vrot.slane %v990_v46, 1  ;;  %v916_v10 = vmax.f32 %v5354_v31, %v5355_v5  ;;  %5047 = vmatprep.mubr.f32.mxu1 %v5795_v15  ;;  %v997_v24 = vmax.f32 %v995_v60, %v996_v56  ;;  %v1010_v59 = vrot.slane %v1009_v4, 2  ;;  %v5364_v5 = vld [vmem:[#allocation2 + $0x270] sm:$0xff] }
  0xe1   :  { %v1004_v1 = vmax.f32 %v1002_v43, %v1003_v19  ;;  %v1933_v16 = vsel %vm1178_vm2, %v985_v35, %v1932_v7  ;;  %5044 = vmatpush3.msra.mxu1 %v5772_v6  ;;  %5066 = vmatprep.mubr.f32.mxu0 %v5849_v52  ;;  %v905_v9 = vrot.slane %v904_v48, 2  ;;  %v911_v26 = vmax.f32 %v909_v51, %v910_v58  ;;  %v5362_v19 = vld [vmem:[#allocation2 + $0x260] sm:$0xff] }
  0xe2   :  { %v992_v62 = vmax.f32 %v990_v46, %v991_v28  ;;  %5045 = vmatprep.subr.mxu1 %v5838_v42  ;;  %v917_v11 = vrot.slane %v916_v10, 4  ;;  %v998_v13 = vrot.slane %v997_v24, 1  ;;  %v1011_v12 = vmax.f32 %v1009_v4, %v1010_v59  ;;  %v5363_v4 = vld [vmem:[#allocation2 + $0x268] sm:$0xff] }
  0xe3   :  { %v1005_v14 = vrot.slane %v1004_v1, 1  ;;  %v923_v63 = vmax.f32 %v5356_v17, %v5357_v18  ;;  %5046 = vmatpush3.msra.mxu1 %v5838_v42  ;;  %v906_v21 = vmax.f32 %v904_v48, %v905_v9  ;;  %v912_v6 = vrot.slane %v911_v26, 2  ;;  %v5367_v9 = vld [vmem:[#allocation2 + $0x188] sm:$0xff] }
  0xe4   :  { %v1934_v41 = vsel %vm1180_vm3, %v992_v62, %v1933_v16  ;;  %v918_v27 = vmax.f32 %v916_v10, %v917_v11  ;;  %5048 = vmatmul.mubr.f32.vlgmr.msra.gmra.mxu1 %v5798_v20  ;;  %v999_v52 = vmax.f32 %v997_v24, %v998_v13  ;;  %v1012_v22 = vrot.slane %v1011_v12, 1  ;;  %v5365_v10 = vld [vmem:[#allocation2 + $0x278] sm:$0xff]  ;;  %v5366_v62 = vld [vmem:[#allocation2 + $0x180] sm:$0xff] }
  0xe5   :  { %v1006_v53 = vmax.f32 %v1004_v1, %v1005_v14  ;;  %v924_v25 = vrot.slane %v923_v63, 4  ;;  %5085 = vmatprep.mubr.f32.mxu1 %v5795_v15  ;;  %v907_v2 = vrot.slane %v906_v21, 1  ;;  %v913_v33 = vmax.f32 %v911_v26, %v912_v6 }
  0xe6   :  { %v919_v34 = vrot.slane %v918_v27, 2  ;;  %v930_v44 = vmax.f32 %v5358_v36, %v5359_v8  ;;  %v1013_v42 = vmax.f32 %v1011_v12, %v1012_v22  ;;  %v1935_v37 = vsel %vm1182_vm4, %v999_v52, %v1934_v41  ;;  %v5368_v41 = vld [vmem:[#allocation2 + $0x190] sm:$0xff]  ;;  %v5371_v36 = vld [vmem:[#allocation2 + $0x1a8] sm:$0xff] }
  0xe7   :  { %v925_v38 = vmax.f32 %v923_v63, %v924_v25  ;;  %v937_v0 = vmax.f32 %v5360_v54, %v5361_v39  ;;  %v1936_v60 = vsel %vm1184_vm6, %v1006_v53, %v1935_v37  ;;  %v908_v43 = vmax.f32 %v906_v21, %v907_v2  ;;  %v5369_v21 = vld [vmem:[#allocation2 + $0x198] sm:$0xff] }
  0xe8   :  { %v914_v45 = vrot.slane %v913_v33, 1  ;;  %v920_v46 = vmax.f32 %v918_v27, %v919_v34  ;;  %v5973_v7 = vsel %vm1186_vm7, %v1013_v42, %v1936_v60  ;;  %v931_v49 = vrot.slane %v930_v44, 4  ;;  %v5370_v34 = vld [vmem:[#allocation2 + $0x1a0] sm:$0xff] }
  0xe9   :  { %v926_v47 = vrot.slane %v925_v38, 2  ;;  %v938_v50 = vrot.slane %v937_v0, 4  ;;  %v5976_v51 = vand.u32 4294901760, %v5973_v7  ;;  %v944_v28 = vmax.f32 %v5362_v19, %v5363_v4 }
  0xea   :  { %v915_v35 = vmax.f32 %v913_v33, %v914_v45  ;;  %v921_v56 = vrot.slane %v920_v46, 1  ;;  %v932_v58 = vmax.f32 %v930_v44, %v931_v49  ;;  %v951_v24 = vmax.f32 %v5364_v5, %v5365_v10  ;;  %v5373_v49 = vld [vmem:[#allocation2 + $0x1b8] sm:$0xff]  ;;  %v5375_v5 = vld [vmem:[#allocation2 + $0x1c8] sm:$0xff] }
  0xeb   :  { %v927_v48 = vmax.f32 %v925_v38, %v926_v47  ;;  %v939_v31 = vmax.f32 %v937_v0, %v938_v50  ;;  %5054 = vmatprep.subr.mxu0 %v5976_v51  ;;  %v945_v59 = vrot.slane %v944_v28, 4  ;;  %v846_v26 = vmax.f32 %v5366_v62, %v5367_v9  ;;  %v5372_v47 = vld [vmem:[#allocation2 + $0x1b0] sm:$0xff] }
  0xec   :  { %v922_v1 = vmax.f32 %v920_v46, %v921_v56  ;;  %v1924_v16 = vsel %vm1174_vm0, %v915_v35, %v908_v43  ;;  %5055 = vmatpush3.msra.mxu0 %v5976_v51  ;;  %v933_v13 = vrot.slane %v932_v58, 2  ;;  %v952_v12 = vrot.slane %v951_v24, 4 }
  0xed   :  { %v928_v11 = vrot.slane %v927_v48, 1  ;;  %v940_v14 = vrot.slane %v939_v31, 2  ;;  %v946_v17 = vmax.f32 %v944_v28, %v945_v59  ;;  %v847_v63 = vrot.slane %v846_v26, 4 }
  0xee   :  { %v1925_v18 = vsel %vm1176_vm1, %v922_v1, %v1924_v16  ;;  %v853_v6 = vmax.f32 %v5368_v41, %v5369_v21  ;;  %v934_v52 = vmax.f32 %v932_v58, %v933_v13  ;;  %v953_v22 = vmax.f32 %v951_v24, %v952_v12 }
  0xef   :  { %v929_v27 = vmax.f32 %v927_v48, %v928_v11  ;;  %v941_v53 = vmax.f32 %v939_v31, %v940_v14  ;;  %v947_v25 = vrot.slane %v946_v17, 2  ;;  %v848_v2 = vmax.f32 %v846_v26, %v847_v63  ;;  %v5374_v31 = vld [vmem:[#allocation2 + $0x1c0] sm:$0xff] }
  0xf0   :  { %v854_v33 = vrot.slane %v853_v6, 4  ;;  %v860_v8 = vmax.f32 %v5370_v34, %v5371_v36  ;;  %v935_v44 = vrot.slane %v934_v52, 1  ;;  %v954_v37 = vrot.slane %v953_v22, 2 }
  0xf1   :  { %v942_v42 = vrot.slane %v941_v53, 1  ;;  %v1926_v38 = vsel %vm1178_vm2, %v929_v27, %v1925_v18  ;;  %v948_v54 = vmax.f32 %v946_v17, %v947_v25  ;;  %v849_v39 = vrot.slane %v848_v2, 2  ;;  %v5376_v17 = vld [vmem:[#allocation2 + $0x1d0] sm:$0xff]  ;;  %v5377_v18 = vld [vmem:[#allocation2 + $0x1d8] sm:$0xff]  ;;  %v5378_v25 = vld [vmem:[#allocation2 + $0x1e0] sm:$0xff] }
  0xf2   :  { %v855_v0 = vmax.f32 %v853_v6, %v854_v33  ;;  %v861_v60 = vrot.slane %v860_v8, 4  ;;  %v936_v43 = vmax.f32 %v934_v52, %v935_v44  ;;  %v955_v46 = vmax.f32 %v953_v22, %v954_v37  ;;  %v5380_v44 = vld [vmem:[#allocation2 + $0x1f0] sm:$0xff] }
  0xf3   :  { %v943_v45 = vmax.f32 %v941_v53, %v942_v42  ;;  %v867_v50 = vmax.f32 %v5372_v47, %v5373_v49  ;;  %v949_v35 = vrot.slane %v948_v54, 1  ;;  %v850_v56 = vmax.f32 %v848_v2, %v849_v39  ;;  %v5379_v2 = vld [vmem:[#allocation2 + $0x1e8] sm:$0xff]  ;;  %v5381_v42 = vld [vmem:[#allocation2 + $0x1f8] sm:$0xff] }
  0xf4   :  { %v856_v19 = vrot.slane %v855_v0, 2  ;;  %v862_v4 = vmax.f32 %v860_v8, %v861_v60  ;;  %v956_v28 = vrot.slane %v955_v46, 1  ;;  %v1927_v48 = vsel %vm1180_vm3, %v936_v43, %v1926_v38 }
  0xf5   :  { %v868_v58 = vrot.slane %v867_v50, 4  ;;  %v874_v10 = vmax.f32 %v5374_v31, %v5375_v5  ;;  %v950_v24 = vmax.f32 %v948_v54, %v949_v35  ;;  %v1928_v1 = vsel %vm1182_vm4, %v943_v45, %v1927_v48  ;;  %v5382_v35 = vld [vmem:[#allocation2 + $0x100] sm:$0xff] }
  0xf6   :  { %v851_v59 = vrot.slane %v850_v56, 1  ;;  %v857_v16 = vmax.f32 %v855_v0, %v856_v19  ;;  %v957_v62 = vmax.f32 %v955_v46, %v956_v28  ;;  %v863_v9 = vrot.slane %v862_v4, 2 }
  0xf7   :  { %v869_v26 = vmax.f32 %v867_v50, %v868_v58  ;;  %v875_v11 = vrot.slane %v874_v10, 4  ;;  %v1929_v13 = vsel %vm1184_vm6, %v950_v24, %v1928_v1  ;;  %v881_v63 = vmax.f32 %v5376_v17, %v5377_v18 }
  0xf8   :  { %v852_v14 = vmax.f32 %v850_v56, %v851_v59  ;;  %v858_v12 = vrot.slane %v857_v16, 1  ;;  %v5987_v41 = vsel %vm1186_vm7, %v957_v62, %v1929_v13  ;;  %v864_v21 = vmax.f32 %v862_v4, %v863_v9  ;;  %v5383_v56 = vld [vmem:[#allocation2 + $0x108] sm:$0xff]  ;;  %v5385_v62 = vld [vmem:[#allocation2 + $0x118] sm:$0xff] }
  0xf9   :  { %v870_v6 = vrot.slane %v869_v26, 2  ;;  %v876_v27 = vmax.f32 %v874_v10, %v875_v11  ;;  %v5990_v52 = vand.u32 4294901760, %v5987_v41  ;;  %v882_v22 = vrot.slane %v881_v63, 4 }
  0xfa   :  { %v859_v53 = vmax.f32 %v857_v16, %v858_v12  ;;  %v888_v33 = vmax.f32 %v5378_v25, %v5379_v2  ;;  %v865_v34 = vrot.slane %v864_v21, 1  ;;  %v895_v37 = vmax.f32 %v5380_v44, %v5381_v42  ;;  %v5384_v16 = vld [vmem:[#allocation2 + $0x110] sm:$0xff]  ;;  %v5389_v2 = vld [vmem:[#allocation2 + $0x138] sm:$0xff]  ;;  %v5390_v44 = vld [vmem:[#allocation2 + $0x140] sm:$0xff] }
  0xfb   :  { %v871_v36 = vmax.f32 %v869_v26, %v870_v6  ;;  %v877_v8 = vrot.slane %v876_v27, 2  ;;  %5056 = vmatprep.subr.mxu0 %v5990_v52  ;;  %v883_v38 = vmax.f32 %v881_v63, %v882_v22  ;;  %v5996_v0 = vsub.f32 %v5899_v57, %v5933_v55  ;;  %v5386_v63 = vld [vmem:[#allocation2 + $0x120] sm:$0xff]  ;;  %v5388_v25 = vld [vmem:[#allocation2 + $0x130] sm:$0xff]  ;;  %v5391_v42 = vld [vmem:[#allocation2 + $0x148] sm:$0xff] }
  0xfc   :  { %v889_v54 = vrot.slane %v888_v33, 4  ;;  %v1917_v39 = vsel %vm1174_vm0, %v859_v53, %v852_v14  ;;  %5057 = vmatpush3.msra.mxu0 %v5990_v52  ;;  %v866_v60 = vmax.f32 %v864_v21, %v865_v34  ;;  %v896_v46 = vrot.slane %v895_v37, 4  ;;  %v5387_v21 = vld [vmem:[#allocation2 + $0x128] sm:$0xff] }
  0xfd   :  { %v872_v43 = vrot.slane %v871_v36, 1  ;;  %v878_v45 = vmax.f32 %v876_v27, %v877_v8  ;;  %v884_v47 = vrot.slane %v883_v38, 2  ;;  %v6000_v50 = vand.u32 4294901760, %v5996_v0 }
  0xfe   :  { %v890_v49 = vmax.f32 %v888_v33, %v889_v54  ;;  %v790_v19 = vmax.f32 %v5382_v35, %v5383_v56  ;;  %v897_v48 = vmax.f32 %v895_v37, %v896_v46  ;;  %v1918_v57 = vsel %vm1176_vm1, %v866_v60, %v1917_v39 }
  0xff   :  { %v873_v4 = vmax.f32 %v871_v36, %v872_v43  ;;  %v879_v28 = vrot.slane %v878_v45, 1  ;;  %v885_v58 = vmax.f32 %v883_v38, %v884_v47  ;;  %v2072_v5 = vsub.f32 %v5996_v0, %v6000_v50 }
 0x100   :  { %v891_v31 = vrot.slane %v890_v49, 2  ;;  %v791_v10 = vrot.slane %v790_v19, 4  ;;  %v898_v1 = vrot.slane %v897_v48, 2  ;;  %v797_v9 = vmax.f32 %v5384_v16, %v5385_v62 }
 0x101   :  { %v880_v24 = vmax.f32 %v878_v45, %v879_v28  ;;  %v1919_v59 = vsel %vm1178_vm2, %v873_v4, %v1918_v57  ;;  %v886_v26 = vrot.slane %v885_v58, 1  ;;  %v2073_v13 = vand.u32 4294901760, %v2072_v5  ;;  %v5393_v4 = vld [vmem:[#allocation2 + $0x158] sm:$0xff] }
 0x102   :  { %v892_v11 = vmax.f32 %v890_v49, %v891_v31  ;;  %v792_v14 = vmax.f32 %v790_v19, %v791_v10  ;;  %v899_v12 = vmax.f32 %v897_v48, %v898_v1  ;;  %v798_v18 = vrot.slane %v797_v9, 4  ;;  %v5392_v19 = vld [vmem:[#allocation2 + $0x150] sm:$0xff] }
 0x103   :  { %v1920_v17 = vsel %vm1180_vm3, %v880_v24, %v1919_v59  ;;  %v804_v6 = vmax.f32 %v5386_v63, %v5387_v21  ;;  %v887_v27 = vmax.f32 %v885_v58, %v886_v26  ;;  %5069 = vmatprep.subr.mxu1 %v2073_v13  ;;  %v811_v33 = vmax.f32 %v5388_v25, %v5389_v2  ;;  %v5395_v26 = vld [vmem:[#allocation2 + $0x168] sm:$0xff] }
 0x104   :  { %v893_v53 = vrot.slane %v892_v11, 1  ;;  %v793_v22 = vrot.slane %v792_v14, 2  ;;  %v900_v34 = vrot.slane %v899_v12, 1  ;;  %5070 = vmatpush3.msra.mxu1 %v2073_v13  ;;  %v799_v36 = vmax.f32 %v797_v9, %v798_v18  ;;  %v5394_v9 = vld [vmem:[#allocation2 + $0x160] sm:$0xff] }
 0x105   :  { %v805_v8 = vrot.slane %v804_v6, 4  ;;  %v818_v37 = vmax.f32 %v5390_v44, %v5391_v42  ;;  %v1921_v54 = vsel %vm1182_vm4, %v887_v27, %v1920_v17  ;;  %v812_v60 = vrot.slane %v811_v33, 4  ;;  %v5397_v17 = vld [vmem:[#allocation2 + $0x178] sm:$0xff] }
 0x106   :  { %v894_v38 = vmax.f32 %v892_v11, %v893_v53  ;;  %v794_v39 = vmax.f32 %v792_v14, %v793_v22  ;;  %v901_v43 = vmax.f32 %v899_v12, %v900_v34  ;;  %v800_v45 = vrot.slane %v799_v36, 2  ;;  %v5396_v12 = vld [vmem:[#allocation2 + $0x170] sm:$0xff] }
 0x107   :  { %v806_v46 = vmax.f32 %v804_v6, %v805_v8  ;;  %v819_v47 = vrot.slane %v818_v37, 4  ;;  %v813_v56 = vmax.f32 %v811_v33, %v812_v60  ;;  %v825_v28 = vmax.f32 %v5392_v19, %v5393_v4 }
 0x108   :  { %v1922_v49 = vsel %vm1184_vm6, %v894_v38, %v1921_v54  ;;  %v795_v35 = vrot.slane %v794_v39, 1  ;;  %v801_v57 = vmax.f32 %v799_v36, %v800_v45  ;;  %v832_v11 = vmax.f32 %v5394_v9, %v5395_v26  ;;  %v5399_v45 = vld [vmem:[#allocation2 + $0x88] sm:$0xff]  ;;  %v5405_v9 = vld [vmem:[#allocation2 + $0xb8] sm:$0xff] }
 0x109   :  { %v6010_v48 = vsel %vm1186_vm7, %v901_v43, %v1922_v49  ;;  %v807_v58 = vrot.slane %v806_v46, 2  ;;  %v820_v31 = vmax.f32 %v818_v37, %v819_v47  ;;  %v814_v24 = vrot.slane %v813_v56, 2  ;;  %v5398_v43 = vld [vmem:[#allocation2 + $0x80] sm:$0xff] }
 0x10a   :  { %v6013_v5 = vand.u32 4294901760, %v6010_v48  ;;  %v796_v10 = vmax.f32 %v794_v39, %v795_v35  ;;  %v826_v1 = vrot.slane %v825_v28, 4  ;;  %v802_v59 = vrot.slane %v801_v57, 1 }
 0x10b   :  { %v808_v16 = vmax.f32 %v806_v46, %v807_v58  ;;  %v821_v62 = vrot.slane %v820_v31, 2  ;;  %v815_v13 = vmax.f32 %v813_v56, %v814_v24  ;;  %v839_v18 = vmax.f32 %v5396_v12, %v5397_v17  ;;  %v5401_v58 = vld [vmem:[#allocation2 + $0x98] sm:$0xff]  ;;  %v5406_v12 = vld [vmem:[#allocation2 + $0xc0] sm:$0xff]  ;;  %v5407_v17 = vld [vmem:[#allocation2 + $0xc8] sm:$0xff] }
 0x10c   :  { %5058 = vmatprep.subr.mxu0 %v6013_v5  ;;  %v827_v14 = vmax.f32 %v825_v28, %v826_v1  ;;  %v6018_v63 = vsub.f32 %v5941_v3, %v5946_v30  ;;  %v803_v21 = vmax.f32 %v801_v57, %v802_v59  ;;  %v833_v53 = vrot.slane %v832_v11, 4  ;;  %v5400_v57 = vld [vmem:[#allocation2 + $0x90] sm:$0xff]  ;;  %v5402_v1 = vld [vmem:[#allocation2 + $0xa0] sm:$0xff]  ;;  %v5403_v59 = vld [vmem:[#allocation2 + $0xa8] sm:$0xff] }
 0x10d   :  { %5059 = vmatpush3.msra.mxu0 %v6013_v5  ;;  %v809_v6 = vrot.slane %v808_v16, 1  ;;  %v822_v27 = vmax.f32 %v820_v31, %v821_v62  ;;  %v816_v22 = vrot.slane %v815_v13, 1  ;;  %v840_v2 = vrot.slane %v839_v18, 4  ;;  %v5404_v62 = vld [vmem:[#allocation2 + $0xb0] sm:$0xff] }
 0x10e   :  { %v828_v25 = vrot.slane %v827_v14, 2  ;;  %v6022_v33 = vand.u32 4294901760, %v6018_v63  ;;  %v834_v8 = vmax.f32 %v832_v11, %v833_v53  ;;  %v1910_v44 = vsel %vm1174_vm0, %v803_v21, %v796_v10 }
 0x10f   :  { %v810_v34 = vmax.f32 %v808_v16, %v809_v6  ;;  %v823_v36 = vrot.slane %v822_v27, 1  ;;  %v817_v42 = vmax.f32 %v815_v13, %v816_v22  ;;  %v841_v37 = vmax.f32 %v839_v18, %v840_v2 }
 0x110   :  { %v829_v3 = vmax.f32 %v827_v14, %v828_v25  ;;  %v2079_v38 = vsub.f32 %v6018_v63, %v6022_v33  ;;  %v835_v39 = vrot.slane %v834_v8, 2  ;;  %v734_v46 = vmax.f32 %v5398_v43, %v5399_v45 }
 0x111   :  { %v824_v54 = vmax.f32 %v822_v27, %v823_v36  ;;  %v1911_v60 = vsel %vm1176_vm1, %v810_v34, %v1910_v44  ;;  %v842_v49 = vrot.slane %v841_v37, 2  ;;  %v741_v31 = vmax.f32 %v5400_v57, %v5401_v58  ;;  %v5410_v58 = vld [vmem:[#allocation2 + $0xe0] sm:$0xff] }
 0x112   :  { %v830_v47 = vrot.slane %v829_v3, 1  ;;  %v1912_v35 = vsel %vm1178_vm2, %v817_v42, %v1911_v60  ;;  %v2080_v56 = vand.u32 4294901760, %v2079_v38  ;;  %v836_v19 = vmax.f32 %v834_v8, %v835_v39  ;;  %v5408_v42 = vld [vmem:[#allocation2 + $0xd0] sm:$0xff] }
 0x113   :  { %v1913_v4 = vsel %vm1180_vm3, %v824_v54, %v1912_v35  ;;  %v735_v28 = vrot.slane %v734_v46, 4  ;;  %v843_v24 = vmax.f32 %v841_v37, %v842_v49  ;;  %v748_v16 = vmax.f32 %v5402_v1, %v5403_v59 }
 0x114   :  { %v831_v10 = vmax.f32 %v829_v3, %v830_v47  ;;  %5071 = vmatprep.subr.mxu1 %v2080_v56  ;;  %v755_v26 = vmax.f32 %v5404_v62, %v5405_v9  ;;  %v837_v11 = vrot.slane %v836_v19, 1  ;;  %v742_v14 = vrot.slane %v741_v31, 4  ;;  %v5409_v3 = vld [vmem:[#allocation2 + $0xd8] sm:$0xff] }
 0x115   :  { %5072 = vmatpush3.msra.mxu1 %v2080_v56  ;;  %v736_v13 = vmax.f32 %v734_v46, %v735_v28  ;;  %v762_v18 = vmax.f32 %v5406_v12, %v5407_v17  ;;  %v844_v21 = vrot.slane %v843_v24, 1  ;;  %v749_v27 = vrot.slane %v748_v16, 4  ;;  %v5413_v62 = vld [vmem:[#allocation2 + $0xf8] sm:$0xff] }
 0x116   :  { %v1914_v6 = vsel %vm1182_vm4, %v831_v10, %v1913_v4  ;;  %v756_v53 = vrot.slane %v755_v26, 4  ;;  %v838_v22 = vmax.f32 %v836_v19, %v837_v11  ;;  %v743_v2 = vmax.f32 %v741_v31, %v742_v14  ;;  %v5411_v31 = vld [vmem:[#allocation2 + $0xe8] sm:$0xff] }
 0x117   :  { %v737_v25 = vrot.slane %v736_v13, 2  ;;  %v763_v34 = vrot.slane %v762_v18, 4  ;;  %v845_v36 = vmax.f32 %v843_v24, %v844_v21  ;;  %v750_v8 = vmax.f32 %v748_v16, %v749_v27  ;;  %v5412_v16 = vld [vmem:[#allocation2 + $0xf0] sm:$0xff] }
 0x118   :  { %v757_v44 = vmax.f32 %v755_v26, %v756_v53  ;;  %v769_v37 = vmax.f32 %v5408_v42, %v5409_v3  ;;  %v1915_v38 = vsel %vm1184_vm6, %v838_v22, %v1914_v6  ;;  %v744_v39 = vrot.slane %v743_v2, 2  ;;  %v5414_v3 = vld [vmem:[#allocation2] sm:$0xff] }
 0x119   :  { %v738_v54 = vmax.f32 %v736_v13, %v737_v25  ;;  %v764_v60 = vmax.f32 %v762_v18, %v763_v34  ;;  %v6033_v43 = vsel %vm1186_vm7, %v845_v36, %v1915_v38  ;;  %v751_v45 = vrot.slane %v750_v8, 2 }
 0x11a   :  { %v758_v46 = vrot.slane %v757_v44, 2  ;;  %v770_v47 = vrot.slane %v769_v37, 4  ;;  %v6036_v49 = vand.u32 4294901760, %v6033_v43  ;;  %v745_v56 = vmax.f32 %v743_v2, %v744_v39 }
 0x11b   :  { %v739_v35 = vrot.slane %v738_v54, 1  ;;  %v765_v19 = vrot.slane %v764_v60, 2  ;;  %v752_v4 = vmax.f32 %v750_v8, %v751_v45  ;;  %v776_v10 = vmax.f32 %v5410_v58, %v5411_v31  ;;  %v5417_v45 = vld [vmem:[#allocation2 + $0x18] sm:$0xff]  ;;  %v5418_v58 = vld [vmem:[#allocation2 + $0x20] sm:$0xff]  ;;  %v5419_v31 = vld [vmem:[#allocation2 + $0x28] sm:$0xff] }
 0x11c   :  { %v759_v28 = vmax.f32 %v757_v44, %v758_v46  ;;  %v771_v57 = vmax.f32 %v769_v37, %v770_v47  ;;  %5060 = vmatprep.subr.mxu0 %v6036_v49  ;;  %v746_v1 = vrot.slane %v745_v56, 1  ;;  %v783_v9 = vmax.f32 %v5412_v16, %v5413_v62  ;;  %v5415_v37 = vld [vmem:[#allocation2 + $0x8] sm:$0xff]  ;;  %v5420_v16 = vld [vmem:[#allocation2 + $0x30] sm:$0xff]  ;;  %v5421_v62 = vld [vmem:[#allocation2 + $0x38] sm:$0xff] }
 0x11d   :  { %v740_v24 = vmax.f32 %v738_v54, %v739_v35  ;;  %v766_v59 = vmax.f32 %v764_v60, %v765_v19  ;;  %5061 = vmatpush3.msra.mxu0 %v6036_v49  ;;  %v753_v26 = vrot.slane %v752_v4, 1  ;;  %v777_v14 = vrot.slane %v776_v10, 4  ;;  %v5416_v60 = vld [vmem:[#allocation2 + $0x10] sm:$0xff] }
 0x11e   :  { %v760_v11 = vrot.slane %v759_v28, 1  ;;  %v772_v13 = vrot.slane %v771_v57, 2  ;;  %v747_v12 = vmax.f32 %v745_v56, %v746_v1  ;;  %v784_v18 = vrot.slane %v783_v9, 4 }
 0x11f   :  { %v767_v17 = vrot.slane %v766_v59, 1  ;;  %v6042_v21 = vsub.f32 %v5973_v7, %v5976_v51  ;;  %v754_v6 = vmax.f32 %v752_v4, %v753_v26  ;;  %v778_v22 = vmax.f32 %v776_v10, %v777_v14  ;;  %v5422_v14 = vld [vmem:[#allocation2 + $0x40] sm:$0xff] }
 0x120   :  { %v761_v27 = vmax.f32 %v759_v28, %v760_v11  ;;  %v773_v53 = vmax.f32 %v771_v57, %v772_v13  ;;  %v785_v2 = vmax.f32 %v783_v9, %v784_v18  ;;  %v1903_v34 = vsel %vm1174_vm0, %v747_v12, %v740_v24  ;;  %v5423_v12 = vld [vmem:[#allocation2 + $0x48] sm:$0xff] }
 0x121   :  { %v768_v25 = vmax.f32 %v766_v59, %v767_v17  ;;  %v6046_v36 = vand.u32 4294901760, %v6042_v21  ;;  %v779_v44 = vrot.slane %v778_v22, 2  ;;  %v1904_v42 = vsel %vm1176_vm1, %v754_v6, %v1903_v34 }
 0x122   :  { %v774_v8 = vrot.slane %v773_v53, 1  ;;  %v678_v38 = vmax.f32 %v5414_v3, %v5415_v37  ;;  %v786_v7 = vrot.slane %v785_v2, 2  ;;  %v1905_v54 = vsel %vm1178_vm2, %v761_v27, %v1904_v42 }
 0x123   :  { %v2086_v39 = vsub.f32 %v6042_v21, %v6046_v36  ;;  %v685_v46 = vmax.f32 %v5416_v60, %v5417_v45  ;;  %v780_v35 = vmax.f32 %v778_v22, %v779_v44  ;;  %v1906_v56 = vsel %vm1180_vm3, %v768_v25, %v1905_v54  ;;  %v5425_v22 = vld [vmem:[#allocation2 + $0x58] sm:$0xff] }
 0x124   :  { %v775_v47 = vmax.f32 %v773_v53, %v774_v8  ;;  %v679_v19 = vrot.slane %v678_v38, 4  ;;  %v787_v4 = vmax.f32 %v785_v2, %v786_v7  ;;  %v692_v10 = vmax.f32 %v5418_v58, %v5419_v31  ;;  %v5424_v53 = vld [vmem:[#allocation2 + $0x50] sm:$0xff] }
 0x125   :  { %v2087_v28 = vand.u32 4294901760, %v2086_v39  ;;  %v686_v57 = vrot.slane %v685_v46, 4  ;;  %v781_v24 = vrot.slane %v780_v35, 1  ;;  %v699_v9 = vmax.f32 %v5420_v16, %v5421_v62 }
 0x126   :  { %v1907_v1 = vsel %vm1182_vm4, %v775_v47, %v1906_v56  ;;  %v680_v59 = vmax.f32 %v678_v38, %v679_v19  ;;  %v788_v26 = vrot.slane %v787_v4, 1  ;;  %v693_v13 = vrot.slane %v692_v10, 4 }
 0x127   :  { %5073 = vmatprep.subr.mxu1 %v2087_v28  ;;  %v687_v11 = vmax.f32 %v685_v46, %v686_v57  ;;  %v706_v17 = vmax.f32 %v5422_v14, %v5423_v12  ;;  %v782_v18 = vmax.f32 %v780_v35, %v781_v24  ;;  %v700_v27 = vrot.slane %v699_v9, 4  ;;  %v5427_v57 = vld [vmem:[#allocation2 + $0x68] sm:$0xff] }
 0x128   :  { %5074 = vmatpush3.msra.mxu1 %v2087_v28  ;;  %v681_v6 = vrot.slane %v680_v59, 2  ;;  %v713_v25 = vmax.f32 %v5424_v53, %v5425_v22  ;;  %v789_v2 = vmax.f32 %v787_v4, %v788_v26  ;;  %v694_v8 = vmax.f32 %v692_v10, %v693_v13  ;;  %v5426_v28 = vld [vmem:[#allocation2 + $0x60] sm:$0xff] }
 0x129   :  { %v688_v34 = vrot.slane %v687_v11, 2  ;;  %v707_v44 = vrot.slane %v706_v17, 4  ;;  %v1908_v42 = vsel %vm1184_vm6, %v782_v18, %v1907_v1  ;;  %v701_v37 = vmax.f32 %v699_v9, %v700_v27  ;;  %v5428_v1 = vld [vmem:[#allocation2 + $0x70] sm:$0xff] }
 0x12a   :  { %v682_v3 = vmax.f32 %v680_v59, %v681_v6  ;;  %v714_v38 = vrot.slane %v713_v25, 4  ;;  %v1909_v7 = vsel %vm1186_vm7, %v789_v2, %v1908_v42  ;;  %v695_v39 = vrot.slane %v694_v8, 2  ;;  %v5429_v59 = vld [vmem:[#allocation2 + $0x78] sm:$0xff] }
 0x12b   :  { %v689_v54 = vmax.f32 %v687_v11, %v688_v34  ;;  %v708_v60 = vmax.f32 %v706_v17, %v707_v44  ;;  %v6056_v45 = vand.u32 4294901760, %v1909_v7  ;;  %v702_v47 = vrot.slane %v701_v37, 2 }
 0x12c   :  { %v683_v46 = vrot.slane %v682_v3, 1  ;;  %v715_v35 = vmax.f32 %v713_v25, %v714_v38  ;;  %v696_v19 = vmax.f32 %v694_v8, %v695_v39  ;;  %v720_v58 = vmax.f32 %v5426_v28, %v5427_v57 }
 0x12d   :  { %v690_v56 = vrot.slane %v689_v54, 1  ;;  %v709_v4 = vrot.slane %v708_v60, 2  ;;  %5062 = vmatprep.subr.mxu0 %v6056_v45  ;;  %v703_v10 = vmax.f32 %v701_v37, %v702_v47  ;;  %v727_v16 = vmax.f32 %v5428_v1, %v5429_v59 }
 0x12e   :  { %v684_v31 = vmax.f32 %v682_v3, %v683_v46  ;;  %v716_v24 = vrot.slane %v715_v35, 2  ;;  %5063 = vmatpush3.msra.mxu0 %v6056_v45  ;;  %v697_v9 = vrot.slane %v696_v19, 1  ;;  %v721_v11 = vrot.slane %v720_v58, 4 }
 0x12f   :  { %v691_v62 = vmax.f32 %v689_v54, %v690_v56  ;;  %v710_v26 = vmax.f32 %v708_v60, %v709_v4  ;;  %v704_v13 = vrot.slane %v703_v10, 1  ;;  %v728_v12 = vrot.slane %v727_v16, 4 }
 0x130   :  { %v717_v14 = vmax.f32 %v715_v35, %v716_v24  ;;  %v6062_v17 = vsub.f32 %v5987_v41, %v5990_v52  ;;  %v698_v18 = vmax.f32 %v696_v19, %v697_v9  ;;  %v722_v27 = vmax.f32 %v720_v58, %v721_v11 }
 0x131   :  { %v711_v6 = vrot.slane %v710_v26, 1  ;;  %v1896_v53 = vsel %vm1174_vm0, %v691_v62, %v684_v31  ;;  %v705_v22 = vmax.f32 %v703_v10, %v704_v13  ;;  %v729_v2 = vmax.f32 %v727_v16, %v728_v12 }
 0x132   :  { %v718_v25 = vrot.slane %v717_v14, 1  ;;  %v6066_v34 = vand.u32 4294901760, %v6062_v17  ;;  %v723_v44 = vrot.slane %v722_v27, 2  ;;  %v1897_v42 = vsel %vm1176_vm1, %v698_v18, %v1896_v53  ;;  %v173_v53 = vld [vmem:[%s7235_s2 + $0x10] sm:$0xff] }
 0x133   :  { %v712_v8 = vmax.f32 %v710_v26, %v711_v6  ;;  %v2098_v3 = vsub.f32 %v6010_v48, %v6013_v5  ;;  %v730_v37 = vrot.slane %v729_v2, 2  ;;  %v1898_v38 = vsel %vm1178_vm2, %v705_v22, %v1897_v42  ;;  %v172_v6 = vld [vmem:[%s7235_s2 + $0x8] sm:$0xff] }
 0x134   :  { %v719_v41 = vmax.f32 %v717_v14, %v718_v25  ;;  %v2093_v54 = vsub.f32 %v6062_v17, %v6066_v34  ;;  %v724_v39 = vmax.f32 %v722_v27, %v723_v44  ;;  %v2105_v47 = vsub.f32 %v6033_v43, %v6036_v49 }
 0x135   :  { %v1899_v60 = vsel %vm1180_vm3, %v712_v8, %v1898_v38  ;;  %v6075_v46 = vand.u32 4294901760, %v2098_v3  ;;  %v731_v35 = vmax.f32 %v729_v2, %v730_v37  ;;  %v2112_v19 = vsub.f32 %v1909_v7, %v6056_v45 }
 0x136   :  { %v2094_v56 = vand.u32 4294901760, %v2093_v54  ;;  %v725_v48 = vrot.slane %v724_v39, 1  ;;  %v6081_v28 = vand.u32 4294901760, %v2105_v47  ;;  %v1900_v58 = vsel %vm1182_vm4, %v719_v41, %v1899_v60  ;;  %v174_v41 = vld [vmem:[%s7235_s2 + $0x18] sm:$0xff] }
 0x137   :  { %v2100_v4 = vsub.f32 %v2098_v3, %v6075_v46  ;;  %v732_v57 = vrot.slane %v731_v35, 1  ;;  %v6084_v31 = vand.u32 4294901760, %v2112_v19  ;;  %v2548_v2 = vsel %vm2543_vm9, %v172_v6, 0 }
 0x138   :  { %5075 = vmatprep.subr.mxu1 %v2094_v56  ;;  %v726_v10 = vmax.f32 %v724_v39, %v725_v48  ;;  %v2107_v43 = vsub.f32 %v2105_v47, %v6081_v28  ;;  %v6184_v38 = vand.u32 4294901760, %v2548_v2 }
 0x139   :  { %5076 = vmatpush3.msra.mxu1 %v2094_v56  ;;  %v2101_v24 = vand.u32 4294901760, %v2100_v4  ;;  %v733_v1 = vmax.f32 %v731_v35, %v732_v57  ;;  %v2114_v59 = vsub.f32 %v2112_v19, %v6084_v31  ;;  %v176_v57 = vld [vmem:[%s7235_s2 + $0x28] sm:$0xff] }
 0x13a   :  { %v1901_v7 = vsel %vm1184_vm6, %v726_v10, %v1900_v58  ;;  %v2108_v16 = vand.u32 4294901760, %v2107_v43  ;;  %v6196_v10 = vsub.f32 %v2548_v2, %v6184_v38  ;;  %v177_v43 = vld [vmem:[%s7235_s2 + $0x30] sm:$0xff] }
 0x13b   :  { %5077 = vmatprep.subr.mxu1 %v2101_v24  ;;  %v1902_v62 = vsel %vm1186_vm7, %v733_v1, %v1901_v7  ;;  %v2115_v9 = vand.u32 4294901760, %v2114_v59 }
 0x13c   :  { %5078 = vmatpush3.msra.mxu1 %v2101_v24  ;;  %v6090_v26 = vand.u32 4294901760, %v1902_v62 }
 0x13d   :  { %5079 = vmatprep.subr.mxu1 %v2108_v16 }
 0x13e   :  { %5080 = vmatpush3.msra.mxu1 %v2108_v16  ;;  %5064 = vmatprep.subr.mxu0 %v6090_v26  ;;  %v2119_v11 = vsub.f32 %v1902_v62, %v6090_v26 }
 0x13f   :  { %5081 = vmatprep.subr.mxu1 %v2115_v9  ;;  %5065 = vmatpush3.msra.mxu0 %v6090_v26 }
 0x140   :  { %5082 = vmatpush3.msra.mxu1 %v2115_v9  ;;  %5088 = vmatprep.subr.mxu0 %v5996_v0  ;;  %v2120_v13 = vand.u32 4294901760, %v2119_v11 }
 0x141   :  { %5067 = vmatmul.mubr.f32.vlgmr.msra.gmra.mxu0 %v5855_v61 }
 0x142   :  { %5089 = vmatpush3.msra.mxu0 %v5996_v0  ;;  %5104 = vmatprep.mubr.f32.mxu0 %v5806_v23  ;;  %v2121_v14 = vsub.f32 %v2119_v11, %v2120_v13 }
 0x143   :  { %5090 = vmatprep.subr.mxu0 %v6018_v63 }
 0x144   :  { %5091 = vmatpush3.msra.mxu0 %v6018_v63  ;;  %v2122_v12 = vand.u32 4294901760, %v2121_v14 }
 0x145   :  { %5092 = vmatprep.subr.mxu0 %v6042_v21 }
 0x146   :  { %5093 = vmatpush3.msra.mxu0 %v6042_v21  ;;  %5083 = vmatprep.subr.mxu1 %v2122_v12 }
 0x147   :  { %5094 = vmatprep.subr.mxu0 %v6062_v17  ;;  %5084 = vmatpush3.msra.mxu1 %v2122_v12  ;;  %v2563_v12 = vsel %vm2543_vm9, %v177_v43, 0 }
 0x148   :  { %5095 = vmatpush3.msra.mxu0 %v6062_v17  ;;  %5086 = vmatmul.mubr.f32.vlgmr.msra.gmra.mxu1 %v5798_v20 }
 0x149   :  { %5096 = vmatprep.subr.mxu0 %v2098_v3  ;;  %5107 = vmatprep.subr.mxu1 %v5933_v55 }
 0x14a   :  { %5097 = vmatpush3.msra.mxu0 %v2098_v3  ;;  %5108 = vmatpush3.msra.mxu1 %v5933_v55 }
 0x14b   :  { %5098 = vmatprep.subr.mxu0 %v2105_v47  ;;  %5109 = vmatprep.subr.mxu1 %v5946_v30 }
 0x14c   :  { %5099 = vmatpush3.msra.mxu0 %v2105_v47  ;;  %5110 = vmatpush3.msra.mxu1 %v5946_v30  ;;  %v175_v47 = vld [vmem:[%s7235_s2 + $0x20] sm:$0xff] }
 0x14d   :  { %5100 = vmatprep.subr.mxu0 %v2112_v19  ;;  %5111 = vmatprep.subr.mxu1 %v5976_v51  ;;  %v2557_v24 = vsel %vm2543_vm9, %v175_v47, 0 }
 0x14e   :  { %5101 = vmatpush3.msra.mxu0 %v2112_v19  ;;  %5112 = vmatpush3.msra.mxu1 %v5976_v51  ;;  %v2554_v19 = vsel %vm2543_vm9, %v174_v41, 0  ;;  %v6208_v14 = vand.u32 4294901760, %v2557_v24 }
 0x14f   :  { %5102 = vmatprep.subr.mxu0 %v2119_v11  ;;  %5113 = vmatprep.subr.mxu1 %v5990_v52  ;;  %v6205_v16 = vand.u32 4294901760, %v2554_v19 }
 0x150   :  { %5103 = vmatpush3.msra.mxu0 %v2119_v11  ;;  %5114 = vmatpush3.msra.mxu1 %v5990_v52  ;;  %v2560_v11 = vsel %vm2543_vm9, %v176_v57, 0 }
 0x151   :  { %5105 = vmatmul.mubr.f32.vlgmr.msra.gmra.mxu0 %v5817_v29  ;;  %5115 = vmatprep.subr.mxu1 %v6013_v5 }
 0x152   :  { %5126 = vmatprep.subr.mxu0 %v6000_v50  ;;  %5116 = vmatpush3.msra.mxu1 %v6013_v5 }
 0x153   :  { %5127 = vmatpush3.msra.mxu0 %v6000_v50  ;;  %5117 = vmatprep.subr.mxu1 %v6036_v49 }
 0x154   :  { %5128 = vmatprep.subr.mxu0 %v6022_v33  ;;  %5118 = vmatpush3.msra.mxu1 %v6036_v49 }
 0x155   :  { %5129 = vmatpush3.msra.mxu0 %v6022_v33  ;;  %5119 = vmatprep.subr.mxu1 %v6056_v45 }
 0x156   :  { %5130 = vmatprep.subr.mxu0 %v6046_v36  ;;  %5120 = vmatpush3.msra.mxu1 %v6056_v45 }
 0x157   :  { %5131 = vmatpush3.msra.mxu0 %v6046_v36  ;;  %5121 = vmatprep.subr.mxu1 %v6090_v26 }
 0x158   :  { %5132 = vmatprep.subr.mxu0 %v6066_v34  ;;  %5122 = vmatpush3.msra.mxu1 %v6090_v26 }
 0x159   :  { %5123 = vmatprep.mubr.f32.mxu1 %v5824_v32  ;;  %5133 = vmatpush3.msra.mxu0 %v6066_v34  ;;  %v2551_v34 = vsel %vm2543_vm9, %v173_v53, 0 }
 0x15a   :  { %5124 = vmatmul.mubr.f32.vlgmr.msra.gmra.mxu1 %v5833_v40  ;;  %5134 = vmatprep.subr.mxu0 %v6075_v46 }
 0x15b   :  { %5145 = vmatprep.subr.mxu1 %v5933_v55  ;;  %5135 = vmatpush3.msra.mxu0 %v6075_v46  ;;  %v6186_v46 = vand.u32 4294901760, %v2551_v34 }
 0x15c   :  { %5146 = vmatpush3.msra.mxu1 %v5933_v55  ;;  %5136 = vmatprep.subr.mxu0 %v6081_v28 }
 0x15d   :  { %5147 = vmatprep.subr.mxu1 %v5946_v30  ;;  %5137 = vmatpush3.msra.mxu0 %v6081_v28  ;;  %v6203_v7 = vsub.f32 %v2551_v34, %v6186_v46 }
 0x15e   :  { %5148 = vmatpush3.msra.mxu1 %v5946_v30  ;;  %5138 = vmatprep.subr.mxu0 %v6084_v31 }
 0x15f   :  { %5149 = vmatprep.subr.mxu1 %v5976_v51  ;;  %5139 = vmatpush3.msra.mxu0 %v6084_v31 }
 0x160   :  { %5150 = vmatpush3.msra.mxu1 %v5976_v51  ;;  %5140 = vmatprep.subr.mxu0 %v2120_v13 }
 0x161   :  { %5151 = vmatprep.subr.mxu1 %v5990_v52  ;;  %5141 = vmatpush3.msra.mxu0 %v2120_v13 }
 0x162   :  { %5142 = vmatprep.mubr.f32.mxu0 %v5795_v15  ;;  %5152 = vmatpush3.msra.mxu1 %v5990_v52 }
 0x163   :  { %5143 = vmatmul.mubr.f32.vlgmr.msra.gmra.mxu0 %v5798_v20  ;;  %5153 = vmatprep.subr.mxu1 %v6013_v5 }
 0x164   :  { %5161 = vmatprep.mubr.f32.mxu1 %v5795_v15  ;;  %5154 = vmatpush3.msra.mxu1 %v6013_v5  ;;  %v171_v15 = vld [vmem:[%s7235_s2] sm:$0xff] }
 0x165   :  { %5155 = vmatprep.subr.mxu1 %v6036_v49  ;;  %v2545_v23 = vsel %vm2543_vm9, %v171_v15, 0  ;;  %v178_v15 = vld [vmem:[%s7235_s2 + $0x38] sm:$0x3f]  ;;  %s179_s2 = sld [smem:[#allocation6]] }
 0x166   :  { %5156 = vmatpush3.msra.mxu1 %v6036_v49  ;;  %v6163_v29 = vand.u32 4294901760, %v2545_v23 }
 0x167   :  { %5157 = vmatprep.subr.mxu1 %v6056_v45 }
 0x168   :  { %5158 = vmatpush3.msra.mxu1 %v6056_v45  ;;  %v6166_v32 = vsub.f32 %v2545_v23, %v6163_v29 }
 0x169   :  { %5159 = vmatprep.subr.mxu1 %v6090_v26 }
 0x16a   :  { %5160 = vmatpush3.msra.mxu1 %v6090_v26  ;;  %v2641_v40 = vand.u32 4294901760, %v6166_v32 }
 0x16b   :  { %5162 = vmatmul.mubr.f32.vlgmr.msra.gmra.mxu1 %v5798_v20 }
 0x16c   :  { %5184 = vmatprep.mubr.f32.mxu1 %v6163_v29  ;;  %v2642_v20 = vsub.f32 %v6166_v32, %v2641_v40 }
 0x16e   :  { %v2643_v61 = vand.u32 4294901760, %v2642_v20 }
 0x170   :  { %5168 = vmatprep.mubr.f32.mxu0 %v2643_v61 }
 0x179   :  { %v4954_v55 = vpop.f32.mrf.mxu0 }
 0x17b   :  { %v1331_v30 = vpop.f32.mrf.mxu0 }
 0x180   :  { %v4973_v51 = vpop.f32.mrf.mxu1 }
 0x181   :  { %v1459_v22 = vadd.f32 %v4973_v51, %v4954_v55  ;;  %v2651_v55 = vand.u32 4294901760, %v6196_v10 }
 0x182   :  { %v1452_v0 = vpop.f32.mrf.mxu1 }
 0x183   :  { %v1453_v8 = vadd.f32 %v1452_v0, %v1331_v30  ;;  %v6217_v0 = vsub.f32 %v2554_v19, %v6205_v16 }
 0x185   :  { %v2671_v6 = vand.u32 4294901760, %v6217_v0 }
 0x189   :  { %v4992_v52 = vpop.f32.mrf.mxu0 }
 0x18a   :  { %v1554_v44 = vadd.f32 %v4992_v52, %v1459_v22  ;;  %v2661_v52 = vand.u32 4294901760, %v6203_v7 }
 0x18b   :  { %v1546_v50 = vpop.f32.mrf.mxu0 }
 0x18c   :  { %v1547_v54 = vadd.f32 %v1546_v50, %v1453_v8  ;;  %v6219_v50 = vand.u32 4294901760, %v2560_v11  ;;  %v2662_v2 = vsub.f32 %v6203_v7, %v2661_v52 }
 0x18e   :  { %v2663_v47 = vand.u32 4294901760, %v2662_v2 }
 0x192   :  { %v5011_v5 = vpop.f32.mrf.mxu1 }
 0x193   :  { %v1643_v39 = vadd.f32 %v5011_v5, %v1554_v44 }
 0x194   :  { %v1634_v33 = vpop.f32.mrf.mxu1 }
 0x195   :  { %v1635_v48 = vadd.f32 %v1634_v33, %v1547_v54  ;;  %v6221_v33 = vand.u32 4294901760, %v2563_v12 }
 0x197   :  { %v6240_v34 = vsub.f32 %v2563_v12, %v6221_v33 }
 0x19b   :  { %v5030_v63 = vpop.f32.mrf.mxu0 }
 0x19c   :  { %v1744_v4 = vadd.f32 %v5030_v63, %v1643_v39 }
 0x19d   :  { %v1737_v49 = vpop.f32.mrf.mxu0 }
 0x19e   :  { %v1738_v62 = vadd.f32 %v1737_v49, %v1635_v48  ;;  %v2566_v49 = vsel %vm2543_vm9, %v178_v15, 0 }
 0x19f   :  { %v6234_v53 = vand.u32 4294901760, %v2566_v49 }
 0x1a1   :  { %v6254_v39 = vsub.f32 %v2566_v49, %v6234_v53 }
 0x1a4   :  { %v5049_v21 = vpop.f32.mrf.mxu1 }
 0x1a5   :  { %v1829_v1 = vadd.f32 %v5049_v21, %v1744_v4  ;;  %v6225_v21 = vsub.f32 %v2557_v24, %v6208_v14 }
 0x1a6   :  { %v1822_v45 = vpop.f32.mrf.mxu1 }
 0x1a7   :  { %v1823_v23 = vadd.f32 %v1822_v45, %v1738_v62  ;;  %v1833_v30 = vmax.f32 %v1829_v1, 0.0  ;;  %v2681_v44 = vand.u32 4294901760, %v6225_v21 }
 0x1a9   :  { %v2682_v19 = vsub.f32 %v6225_v21, %v2681_v44 }
 0x1ab   :  { %v2683_v1 = vand.u32 4294901760, %v2682_v19 }
 0x201   :  { %v5068_v36 = vpop.f32.mrf.mxu0 }
 0x203   :  { %v2038_v17 = vpop.f32.mrf.mxu0 }
 0x208   :  { %v5087_v18 = vpop.f32.mrf.mxu1 }
 0x209   :  { %v2166_v37 = vadd.f32 %v5087_v18, %v5068_v36  ;;  %v1832_v36 = vmax.f32 %v1823_v23, 0.0  ;;  %v2652_v18 = vsub.f32 %v6196_v10, %v2651_v55 }
 0x20a   :  { %v2159_v25 = vpop.f32.mrf.mxu1 }
 0x20b   :  { %v2160_v35 = vadd.f32 %v2159_v25, %v2038_v17 }
 0x211   :  { %v5106_v27 = vpop.f32.mrf.mxu0 }
 0x212   :  { %v2261_v56 = vadd.f32 %v5106_v27, %v2166_v37  ;;  %v6232_v27 = vsub.f32 %v2560_v11, %v6219_v50  ;;  %v2672_v37 = vsub.f32 %v6217_v0, %v2671_v6 }
 0x213   :  { %v2253_v42 = vpop.f32.mrf.mxu0 }
 0x214   :  { %v2254_v58 = vadd.f32 %v2253_v42, %v2160_v35  ;;  %v2691_v54 = vand.u32 4294901760, %v6232_v27  ;;  %v2701_v35 = vand.u32 4294901760, %v6240_v34  ;;  %v2673_v4 = vand.u32 4294901760, %v2672_v37 }
 0x216   :  { %v2692_v57 = vsub.f32 %v6232_v27, %v2691_v54  ;;  %v2702_v24 = vsub.f32 %v6240_v34, %v2701_v35 }
 0x218   :  { %v2693_v62 = vand.u32 4294901760, %v2692_v57 }
 0x21a   :  { %v5125_v3 = vpop.f32.mrf.mxu1 }
 0x21b   :  { %v2350_v31 = vadd.f32 %v5125_v3, %v2261_v56  ;;  %v2653_v3 = vand.u32 4294901760, %v2652_v18 }
 0x21c   :  { %v2341_v28 = vpop.f32.mrf.mxu1 }
 0x21d   :  { %v2342_v9 = vadd.f32 %v2341_v28, %v2254_v58  ;;  %v2711_v58 = vand.u32 4294901760, %v6254_v39 }
 0x223   :  { %v5144_v60 = vpop.f32.mrf.mxu0 }
 0x224   :  { %v2451_v26 = vadd.f32 %v5144_v60, %v2350_v31 }
 0x225   :  { %v2444_v59 = vpop.f32.mrf.mxu0 }
 0x226   :  { %v2445_v20 = vadd.f32 %v2444_v59, %v2342_v9  ;;  %v2712_v9 = vsub.f32 %v6254_v39, %v2711_v58 }
 0x228   :  { %v2713_v11 = vand.u32 4294901760, %v2712_v9 }
 0x22b   :  { %v5163_v13 = vpop.f32.mrf.mxu1 }
 0x22c   :  { %v2536_v61 = vadd.f32 %v5163_v13, %v2451_v26  ;;  %v2703_v26 = vand.u32 4294901760, %v2702_v24 }
 0x22d   :  { %v2529_v51 = vpop.f32.mrf.mxu1 }
 0x22e   :  { %v2540_v5 = vmax.f32 %v2536_v61, 0.0  ;;  %v2530_v63 = vadd.f32 %v2529_v51, %v2445_v20 }
 0x230   :  { %v2542_v45 = vadd.f32 %v2540_v5, %v1833_v30  ;;  %v2539_v17 = vmax.f32 %v2530_v63, 0.0 }
 0x232   :  { %v2570_v22 = vsel %vm2568_vm10, %v2542_v45, 0  ;;  %v2541_v25 = vadd.f32 %v2539_v17, %v1832_v36 }
 0x233   :  { %v6242_v8 = vand.u32 4294901760, %v2570_v22 }
 0x234   :  { %v6245_v42 = vand.u32 4294901760, %v2541_v25 }
 0x235   :  { %v2749_v41 = vsub.f32 %v2570_v22, %v6242_v8  ;;  %5164 = vmatprep.subr.mxu0 %v6242_v8 }
 0x236   :  { %v2756_v60 = vsub.f32 %v2541_v25, %v6245_v42  ;;  %5165 = vmatpush3.msra.mxu0 %v6242_v8 }
 0x237   :  { %5166 = vmatprep.subr.mxu0 %v6245_v42  ;;  %v2750_v56 = vand.u32 4294901760, %v2749_v41 }
 0x238   :  { %5167 = vmatpush3.msra.mxu0 %v6245_v42  ;;  %v2757_v48 = vand.u32 4294901760, %v2756_v60 }
 0x239   :  { %5169 = vmatmul.mubr.f32.vlgmr.msra.gmra.mxu0 %v2653_v3  ;;  %5196 = vmatprep.subr.mxu0 %v2749_v41  ;;  %v2751_v28 = vsub.f32 %v2749_v41, %v2750_v56 }
 0x23a   :  { %5197 = vmatpush3.msra.mxu0 %v2749_v41  ;;  %5171 = vmatprep.mubr.f32.mxu0 %v2663_v47  ;;  %v2758_v31 = vsub.f32 %v2756_v60, %v2757_v48 }
 0x23b   :  { %5198 = vmatprep.subr.mxu0 %v2756_v60  ;;  %v2752_v43 = vand.u32 4294901760, %v2751_v28 }
 0x23c   :  { %5199 = vmatpush3.msra.mxu0 %v2756_v60  ;;  %v2759_v59 = vand.u32 4294901760, %v2758_v31 }
 0x23d   :  { %5172 = vmatmul.mubr.f32.gmra.mxu0 %v2673_v4  ;;  %5180 = vmatprep.subr.mxu1 %v2752_v43 }
 0x23e   :  { %5228 = vmatprep.subr.mxu0 %v2750_v56  ;;  %5181 = vmatpush3.msra.mxu1 %v2752_v43 }
 0x23f   :  { %5182 = vmatprep.subr.mxu1 %v2759_v59  ;;  %5174 = vmatprep.mubr.f32.mxu0 %v2683_v1 }
 0x240   :  { %5183 = vmatpush3.msra.mxu1 %v2759_v59 }
 0x241   :  { %5175 = vmatmul.mubr.f32.gmra.mxu0 %v2693_v62  ;;  %5185 = vmatmul.mubr.f32.vlgmr.msra.gmra.mxu1 %v6184_v38 }
 0x242   :  { %5212 = vmatprep.subr.mxu1 %v6242_v8  ;;  %5177 = vmatprep.mubr.f32.mxu0 %v2703_v26 }
 0x243   :  { %5213 = vmatpush3.msra.mxu1 %v6242_v8  ;;  %5187 = vmatprep.mubr.f32.mxu1 %v6186_v46 }
 0x244   :  { %5214 = vmatprep.subr.mxu1 %v6245_v42 }
 0x245   :  { %5215 = vmatpush3.msra.mxu1 %v6245_v42  ;;  %5178 = vmatmul.mubr.f32.gmra.mxu0 %v2713_v11 }
 0x246   :  { %5188 = vmatmul.mubr.f32.gmra.mxu1 %v6205_v16  ;;  %5244 = vmatprep.subr.mxu1 %v6242_v8 }
 0x247   :  { %5190 = vmatprep.mubr.f32.mxu1 %v6208_v14  ;;  %5200 = vmatprep.mubr.f32.mxu0 %v6166_v32 }
 0x249   :  { %5201 = vmatmul.mubr.f32.vlgmr.msra.gmra.mxu0 %v6196_v10 }
 0x24a   :  { %5191 = vmatmul.mubr.f32.gmra.mxu1 %v6219_v50  ;;  %5229 = vmatpush3.msra.mxu0 %v2750_v56 }
 0x24b   :  { %5230 = vmatprep.subr.mxu0 %v2757_v48  ;;  %5193 = vmatprep.mubr.f32.mxu1 %v6221_v33 }
 0x24c   :  { %5231 = vmatpush3.msra.mxu0 %v2757_v48  ;;  %5203 = vmatprep.mubr.f32.mxu0 %v6203_v7 }
 0x24d   :  { %5204 = vmatmul.mubr.f32.gmra.mxu0 %v6217_v0 }
 0x24e   :  { %5194 = vmatmul.mubr.f32.gmra.mxu1 %v6234_v53  ;;  %5206 = vmatprep.mubr.f32.mxu0 %v6225_v21 }
 0x24f   :  { %5216 = vmatprep.mubr.f32.mxu1 %v2641_v40 }
 0x251   :  { %5207 = vmatmul.mubr.f32.gmra.mxu0 %v6232_v27 }
 0x252   :  { %5217 = vmatmul.mubr.f32.vlgmr.msra.gmra.mxu1 %v2651_v55  ;;  %5209 = vmatprep.mubr.f32.mxu0 %v6240_v34 }
 0x253   :  { %5245 = vmatpush3.msra.mxu1 %v6242_v8  ;;  %5219 = vmatprep.mubr.f32.mxu1 %v2661_v52 }
 0x254   :  { %5246 = vmatprep.subr.mxu1 %v6245_v42 }
 0x255   :  { %5247 = vmatpush3.msra.mxu1 %v6245_v42  ;;  %5210 = vmatmul.mubr.f32.gmra.mxu0 %v6254_v39 }
 0x256   :  { %5220 = vmatmul.mubr.f32.gmra.mxu1 %v2671_v6  ;;  %5232 = vmatprep.mubr.f32.mxu0 %v6163_v29 }
 0x257   :  { %5222 = vmatprep.mubr.f32.mxu1 %v2681_v44 }
 0x259   :  { %5233 = vmatmul.mubr.f32.vlgmr.msra.gmra.mxu0 %v6184_v38 }
 0x25a   :  { %5223 = vmatmul.mubr.f32.gmra.mxu1 %v2691_v54  ;;  %5235 = vmatprep.mubr.f32.mxu0 %v6186_v46 }
 0x25b   :  { %5225 = vmatprep.mubr.f32.mxu1 %v2701_v35 }
 0x25d   :  { %5236 = vmatmul.mubr.f32.gmra.mxu0 %v6205_v16 }
 0x25e   :  { %5226 = vmatmul.mubr.f32.gmra.mxu1 %v2711_v58  ;;  %5238 = vmatprep.mubr.f32.mxu0 %v6208_v14 }
 0x25f   :  { %5248 = vmatprep.mubr.f32.mxu1 %v6163_v29 }
 0x261   :  { %5239 = vmatmul.mubr.f32.gmra.mxu0 %v6219_v50 }
 0x262   :  { %5249 = vmatmul.mubr.f32.vlgmr.msra.gmra.mxu1 %v6184_v38  ;;  %5241 = vmatprep.mubr.f32.mxu0 %v6221_v33 }
 0x263   :  { %5251 = vmatprep.mubr.f32.mxu1 %v6186_v46 }
 0x265   :  { %5242 = vmatmul.mubr.f32.gmra.mxu0 %v6234_v53 }
 0x266   :  { %5252 = vmatmul.mubr.f32.gmra.mxu1 %v6205_v16 }
 0x267   :  { %5254 = vmatprep.mubr.f32.mxu1 %v6208_v14 }
 0x26a   :  { %5255 = vmatmul.mubr.f32.gmra.mxu1 %v6219_v50 }
 0x26b   :  { %5257 = vmatprep.mubr.f32.mxu1 %v6221_v33 }
 0x26e   :  { %5258 = vmatmul.mubr.f32.gmra.mxu1 %v6234_v53 }
 0x2f9   :  { %v5170_v29 = vpop.f32.mrf.mxu0 }
 0x2fb   :  { %v2645_v32 = vpop.f32.mrf.mxu0 }
 0x2fd   :  { %v5173_v40 = vpop.f32.mrf.mxu0 }
 0x2ff   :  { %v2665_v38 = vpop.f32.mrf.mxu0 }
 0x301   :  { %v5176_v10 = vpop.f32.mrf.mxu0  ;;  %v5186_v7 = vpop.f32.mrf.mxu1 }
 0x302   :  { %v2803_v44 = vadd.f32 %v5186_v7, %v5170_v29 }
 0x303   :  { %v2685_v13 = vpop.f32.mrf.mxu0  ;;  %v2796_v46 = vpop.f32.mrf.mxu1 }
 0x304   :  { %v2797_v41 = vadd.f32 %v2796_v46, %v2645_v32 }
 0x305   :  { %v5179_v12 = vpop.f32.mrf.mxu0 }
 0x306   :  { %v5189_v15 = vpop.f32.mrf.mxu1 }
 0x307   :  { %v2705_v23 = vpop.f32.mrf.mxu0  ;;  %v2815_v31 = vadd.f32 %v5189_v15, %v5173_v40 }
 0x308   :  { %v2808_v16 = vpop.f32.mrf.mxu1 }
 0x309   :  { %v5202_v20 = vpop.f32.mrf.mxu0  ;;  %v2809_v1 = vadd.f32 %v2808_v16, %v2665_v38 }
 0x30a   :  { %v5192_v14 = vpop.f32.mrf.mxu1  ;;  %v2922_v37 = vadd.f32 %v5202_v20, %v2803_v44 }
 0x30b   :  { %v2827_v61 = vadd.f32 %v5192_v14, %v5176_v10  ;;  %v2914_v55 = vpop.f32.mrf.mxu0 }
 0x30c   :  { %v2820_v30 = vpop.f32.mrf.mxu1  ;;  %v2915_v47 = vadd.f32 %v2914_v55, %v2797_v41 }
 0x30d   :  { %v2821_v51 = vadd.f32 %v2820_v30, %v2685_v13  ;;  %v5205_v52 = vpop.f32.mrf.mxu0 }
 0x30e   :  { %v5195_v0 = vpop.f32.mrf.mxu1  ;;  %v2936_v62 = vadd.f32 %v5205_v52, %v2815_v31 }
 0x30f   :  { %v2839_v50 = vadd.f32 %v5195_v0, %v5179_v12  ;;  %v2928_v5 = vpop.f32.mrf.mxu0 }
 0x310   :  { %v2832_v63 = vpop.f32.mrf.mxu1  ;;  %v2929_v29 = vadd.f32 %v2928_v5, %v2809_v1 }
 0x311   :  { %v2833_v33 = vadd.f32 %v2832_v63, %v2705_v23  ;;  %v5208_v49 = vpop.f32.mrf.mxu0 }
 0x312   :  { %v2950_v21 = vadd.f32 %v5208_v49, %v2827_v61  ;;  %v5218_v36 = vpop.f32.mrf.mxu1 }
 0x313   :  { %v2942_v45 = vpop.f32.mrf.mxu0  ;;  %v3047_v35 = vadd.f32 %v5218_v36, %v2922_v37  ;;  %v5616_v36 = vmov 1966171168  }
 0x314   :  { %v2943_v17 = vadd.f32 %v2942_v45, %v2821_v51  ;;  %v3038_v18 = vpop.f32.mrf.mxu1  ;;  %v3390_v45 = vunpack.c.l.s4 %v5616_v36 }
 0x315   :  { %v5211_v6 = vpop.f32.mrf.mxu0  ;;  %v3039_v48 = vadd.f32 %v3038_v18, %v2915_v47 }
 0x316   :  { %v2964_v27 = vadd.f32 %v5211_v6, %v2839_v50  ;;  %v5221_v53 = vpop.f32.mrf.mxu1 }
 0x317   :  { %v2956_v22 = vpop.f32.mrf.mxu0  ;;  %v3063_v10 = vadd.f32 %v5221_v53, %v2936_v62  ;;  %v3391_v53 = vunpack.c.0.s8 %v3390_v45 }
 0x318   :  { %v2957_v25 = vadd.f32 %v2956_v22, %v2833_v33  ;;  %v3054_v2 = vpop.f32.mrf.mxu1 }
 0x319   :  { %v5234_v34 = vpop.f32.mrf.mxu0  ;;  %v3055_v13 = vadd.f32 %v3054_v2, %v2929_v29 }
 0x31a   :  { %v5224_v8 = vpop.f32.mrf.mxu1  ;;  %v3178_v4 = vadd.f32 %v5234_v34, %v3047_v35 }
 0x31b   :  { %v3079_v42 = vadd.f32 %v5224_v8, %v2950_v21  ;;  %v3171_v39 = vpop.f32.mrf.mxu0 }
 0x31c   :  { %v3070_v3 = vpop.f32.mrf.mxu1  ;;  %v3172_v24 = vadd.f32 %v3171_v39, %v3039_v48 }
 0x31d   :  { %v3071_v54 = vadd.f32 %v3070_v3, %v2943_v17  ;;  %v5237_v28 = vpop.f32.mrf.mxu0  ;;  %v3392_v17 = vlaneseq }
 0x31e   :  { %v5227_v60 = vpop.f32.mrf.mxu1  ;;  %v3190_v12 = vadd.f32 %v5237_v28, %v3063_v10 }
 0x31f   :  { %v3095_v56 = vadd.f32 %v5227_v60, %v2964_v27  ;;  %v3183_v9 = vpop.f32.mrf.mxu0  ;;  %v3393_v22 = vshrl.u32 %v3392_v17, 7 }
 0x320   :  { %v3086_v19 = vpop.f32.mrf.mxu1  ;;  %v3184_v20 = vadd.f32 %v3183_v9, %v3055_v13 }
 0x321   :  { %v6325_v57 = vadd.f32 %v3086_v19, %v2957_v25  ;;  %v5240_v23 = vpop.f32.mrf.mxu0  ;;  %v6327_v8 = vsub.s32 %v3391_v53, %v3393_v22  ;;  %v6331_v19 = vsub.s32 0, %v3393_v22  ;;  %v5438_v22 = vld [vmem:[#allocation2 + $0xc0] sm:$0xff] }
 0x322   :  { %v5250_v58 = vpop.f32.mrf.mxu1  ;;  %v3202_v14 = vadd.f32 %v5240_v23, %v3079_v42 }
 0x323   :  { %v3293_v43 = vadd.f32 %v5250_v58, %v3178_v4  ;;  %v3195_v61 = vpop.f32.mrf.mxu0 }
 0x324   :  { %v3286_v59 = vpop.f32.mrf.mxu1  ;;  %v3196_v52 = vadd.f32 %v3195_v61, %v3071_v54  ;;  %v5431_v61 = vld [vmem:[#allocation2 + $0x88] sm:$0xff] }
 0x325   :  { %v4747_v26 = vmul.f32 -1.442695, %v3293_v43  ;;  %v3287_v11 = vadd.f32 %v3286_v59, %v3172_v24  ;;  %v5243_v18 = vpop.f32.mrf.mxu0 }
 0x326   :  { %v5253_v32 = vpop.f32.mrf.mxu1  ;;  %v3214_v27 = vadd.f32 %v5243_v18, %v3095_v56  ;;  %v5436_v18 = vld [vmem:[#allocation2 + $0xb0] sm:$0xff] }
 0x327   :  { %5266 = vpow2.f32 %v4747_v26  ;;  %v4746_v7 = vmul.f32 -1.442695, %v3287_v11  ;;  %v3305_v40 = vadd.f32 %v5253_v32, %v3190_v12  ;;  %v3207_v44 = vpop.f32.mrf.mxu0 }
 0x328   :  { %v3298_v46 = vpop.f32.mrf.mxu1  ;;  %v3208_v39 = vadd.f32 %v3207_v44, %v6325_v57  ;;  %v5440_v44 = vld [vmem:[#allocation2 + $0xd0] sm:$0xff] }
 0x329   :  { %5268 = vpow2.f32 %v4746_v7  ;;  %v3299_v38 = vadd.f32 %v3298_v46, %v3184_v20  ;;  %v4749_v55 = vmul.f32 -1.442695, %v3305_v40 }
 0x32a   :  { %v5256_v15 = vpop.f32.mrf.mxu1 }
 0x32b   :  { %v3317_v16 = vadd.f32 %v5256_v15, %v3202_v14  ;;  %v4748_v30 = vmul.f32 -1.442695, %v3299_v38  ;;  %5270 = vpow2.f32 %v4749_v55  ;;  %v5430_v38 = vld [vmem:[#allocation2 + $0x80] sm:$0xff] }
 0x32c   :  { %v3310_v51 = vpop.f32.mrf.mxu1 }
 0x32d   :  { %v4751_v0 = vmul.f32 -1.442695, %v3317_v16  ;;  %5272 = vpow2.f32 %v4748_v30  ;;  %v3311_v5 = vadd.f32 %v3310_v51, %v3196_v52  ;;  %v5432_v30 = vld [vmem:[#allocation2 + $0x90] sm:$0xff]  ;;  %v5433_v52 = vld [vmem:[#allocation2 + $0x98] sm:$0xff] }
 0x32e   :  { %v5259_v6 = vpop.f32.mrf.mxu1 }
 0x32f   :  { %5274 = vpow2.f32 %v4751_v0  ;;  %v4750_v21 = vmul.f32 -1.442695, %v3311_v5  ;;  %v3329_v25 = vadd.f32 %v5259_v6, %v3214_v27  ;;  %v5434_v5 = vld [vmem:[#allocation2 + $0xa0] sm:$0xff]  ;;  %v5437_v27 = vld [vmem:[#allocation2 + $0xb8] sm:$0xff] }
 0x330   :  { %v3322_v37 = vpop.f32.mrf.mxu1 }
 0x331   :  { %v4753_v42 = vmul.f32 -1.442695, %v3329_v25  ;;  %v3323_v4 = vadd.f32 %v3322_v37, %v3208_v39  ;;  %v5441_v37 = vld [vmem:[#allocation2 + $0xd8] sm:$0xff] }
 0x333   :  { %v6339_v11 = vmul.f32 -1.442695, %v3323_v4 }
 0x334   :  { %v5267_v50 = vpop.eup %5266 }
 0x335   :  { %v3357_v63 = vadd.f32 1.0, %v5267_v50 }
 0x336   :  { %v5269_v33 = vpop.eup %5268 }
 0x337   :  { %5276 = vrcp.f32 %v3357_v63  ;;  %v3356_v49 = vadd.f32 1.0, %v5269_v33  ;;  %v5435_v33 = vld [vmem:[#allocation2 + $0xa8] sm:$0xff] }
 0x338   :  { %v5271_v2 = vpop.eup %5270 }
 0x339   :  { %5278 = vrcp.f32 %v3356_v49  ;;  %v3359_v41 = vadd.f32 1.0, %v5271_v2  ;;  %v5439_v2 = vld [vmem:[#allocation2 + $0xc8] sm:$0xff] }
 0x33a   :  { %5280 = vpow2.f32 %v4750_v21  ;;  %v5273_v34 = vpop.eup %5272 }
 0x33b   :  { %v3358_v60 = vadd.f32 1.0, %v5273_v34  ;;  %5282 = vpow2.f32 %v4753_v42 }
 0x33c   :  { %v5275_v3 = vpop.eup %5274  ;;  %5284 = vrcp.f32 %v3359_v41 }
 0x33d   :  { %v3361_v48 = vadd.f32 1.0, %v5275_v3  ;;  %5286 = vrcp.f32 %v3358_v60 }
 0x33f   :  { %5288 = vrcp.f32 %v3361_v48 }
 0x340   :  { %5290 = vpow2.f32 %v6339_v11 }
 0x344   :  { %v5277_v54 = vpop.eup %5276 }
 0x345   :  { %v3437_v47 = vcombine.high %v5277_v54, %v5277_v54  ;;  %v3444_v35 = vrot.slane %v5277_v54, %v6327_v8 }
 0x346   :  { %v5279_v56 = vpop.eup %5278 }
 0x347   :  { %v3451_v28 = vrot.slane %v3437_v47, %v6327_v8  ;;  %v3452_v58 = vcombine.high %v3444_v35, %v3444_v35  ;;  %v3460_v31 = vrot.slane %v3444_v35, %v6327_v8  ;;  %v3388_v24 = vcombine.high %v5279_v56, %v5279_v56  ;;  %v5281_v57 = vpop.eup %5280  ;;  %v5442_v47 = vld [vmem:[#allocation2 + $0xe0] sm:$0xff] }
 0x348   :  { %v3395_v43 = vrot.slane %v5279_v56, %v6327_v8  ;;  %v6345_v23 = vadd.f32 1.0, %v5281_v57  ;;  %v6383_v60 = vpop.eup %5282 }
 0x349   :  { %v3453_v1 = vcombine.high %v3451_v28, %v3451_v28  ;;  %v3467_v59 = vrot.slane %v3451_v28, %v6327_v8  ;;  %v3474_v62 = vrot.slane %v3452_v58, %v6327_v8  ;;  %v3482_v9 = vcombine.high %v3460_v31, %v3460_v31  ;;  %v6389_v28 = vpop.eup %5284 }
 0x34a   :  { %v3813_v26 = vrot.slane %v3460_v31, %v6331_v19  ;;  %v3402_v46 = vrot.slane %v3388_v24, %v6327_v8  ;;  %v3403_v12 = vcombine.high %v3395_v43, %v3395_v43  ;;  %v3411_v21 = vrot.slane %v3395_v43, %v6327_v8  ;;  %v5443_v24 = vld [vmem:[#allocation2 + $0xe8] sm:$0xff] }
 0x34b   :  { %v3481_v29 = vrot.slane %v3453_v1, %v6327_v8  ;;  %v3483_v32 = vcombine.high %v3467_v59, %v3467_v59  ;;  %v3484_v10 = vcombine.high %v3474_v62, %v3474_v62  ;;  %v3817_v7 = vrot.slane %v3474_v62, %v6331_v19  ;;  %v6396_v1 = vpop.eup %5286 }
 0x34c   :  { %v3821_v13 = vrot.slane %v3482_v9, %v6331_v19  ;;  %v3829_v15 = vrot.slane %v3467_v59, %v6331_v19  ;;  %v6350_v16 = vmul.f32 %v5430_v38, %v3813_v26  ;;  %v6352_v55 = vmul.f32 %v5431_v61, %v3813_v26  ;;  %v5444_v59 = vld [vmem:[#allocation2 + $0xf0] sm:$0xff] }
 0x34d   :  { %v3485_v20 = vcombine.high %v3481_v29, %v3481_v29  ;;  %v3825_v40 = vrot.slane %v3484_v10, %v6331_v19  ;;  %v3833_v14 = vrot.slane %v3481_v29, %v6331_v19  ;;  %v6354_v51 = vmul.f32 %v5432_v30, %v3817_v7 }
 0x34e   :  { %7319 = vst [vmem:[#allocation11_spill] sm:$0xff] %v6350_v16  ;;  %7320 = vst [vmem:[#allocation12_spill] sm:$0xff] %v6352_v55  ;;  %v6356_v0 = vmul.f32 %v5433_v52, %v3817_v7  ;;  %v3837_v50 = vrot.slane %v3483_v32, %v6331_v19  ;;  %v6359_v63 = vmul.f32 %v5434_v5, %v3821_v13  ;;  %v5445_v7 = vld [vmem:[#allocation2 + $0xf8] sm:$0xff]  ;;  %5292 = vrcp.f32 %v6345_v23 }
 0x34f   :  { %7321 = vst [vmem:[#allocation13_spill] sm:$0xff] %v6354_v51  ;;  %v6361_v49 = vmul.f32 %v5435_v33, %v3821_v13  ;;  %v3841_v36 = vrot.slane %v3485_v20, %v6331_v19  ;;  %v4343_v45 = vmax.f32 %v6354_v51, %v6350_v16  ;;  %v6369_v6 = vmul.f32 %v5436_v18, %v3825_v40  ;;  %v5447_v33 = vld [vmem:[#allocation2 + $0x18] sm:$0xff] }
 0x350   :  { %7322 = vst [vmem:[#allocation14_spill] sm:$0xff] %v6356_v0  ;;  %7323 = vst [vmem:[#allocation15_spill] sm:$0xff] %v6359_v63  ;;  %v4404_v17 = vmax.f32 %v6356_v0, %v6352_v55  ;;  %v6371_v53 = vmul.f32 %v5437_v27, %v3825_v40  ;;  %v6373_v25 = vmul.f32 %v5438_v22, %v3829_v15 }
 0x351   :  { %7324 = vst [vmem:[#allocation16_spill] sm:$0xff] %v6361_v49  ;;  %7325 = vst [vmem:[#allocation17_spill] sm:$0xff] %v6369_v6  ;;  %v6375_v34 = vmul.f32 %v5439_v2, %v3829_v15  ;;  %v6377_v42 = vmul.f32 %v5440_v44, %v3833_v14  ;;  %v4344_v3 = vmax.f32 %v6359_v63, %v4343_v45  ;;  %v5450_v2 = vld [vmem:[#allocation2 + $0x30] sm:$0xff] }
 0x352   :  { %7326 = vst [vmem:[#allocation18_spill] sm:$0xff] %v6371_v53  ;;  %7327 = vst [vmem:[#allocation19_spill] sm:$0xff] %v6373_v25  ;;  %v4405_v41 = vmax.f32 %v6361_v49, %v4404_v17  ;;  %v6381_v54 = vmul.f32 %v5441_v37, %v3833_v14  ;;  %v3404_v39 = vcombine.high %v3402_v46, %v3402_v46  ;;  %v5449_v17 = vld [vmem:[#allocation2 + $0x28] sm:$0xff] }
 0x353   :  { %7328 = vst [vmem:[#allocation20_spill] sm:$0xff] %v6375_v34  ;;  %7329 = vst [vmem:[#allocation21_spill] sm:$0xff] %v6377_v42  ;;  %v6385_v35 = vmul.f32 %v5442_v47, %v3837_v50  ;;  %v3418_v56 = vrot.slane %v3402_v46, %v6327_v8  ;;  %v3425_v48 = vrot.slane %v3403_v12, %v6327_v8  ;;  %v6407_v12 = vpop.eup %5288  ;;  %v5452_v47 = vld [vmem:[#allocation2] sm:$0xff] }
 0x354   :  { %7330 = vst [vmem:[#allocation22_spill] sm:$0xff] %v6381_v54  ;;  %v3433_v4 = vcombine.high %v3411_v21, %v3411_v21  ;;  %v4345_v58 = vmax.f32 %v6369_v6, %v4344_v3  ;;  %v4406_v31 = vmax.f32 %v6371_v53, %v4405_v41  ;;  %v6393_v43 = vmul.f32 %v5443_v24, %v3837_v50  ;;  %v5446_v50 = vld [vmem:[#allocation2 + $0x10] sm:$0xff]  ;;  %v5451_v3 = vld [vmem:[#allocation2 + $0x38] sm:$0xff]  ;;  %v5455_v24 = vld [vmem:[#allocation2 + $0x48] sm:$0xff] }
 0x355   :  { %7331 = vst [vmem:[#allocation23_spill] sm:$0xff] %v6385_v35  ;;  %v3432_v57 = vrot.slane %v3404_v39, %v6327_v8  ;;  %v6398_v62 = vmul.f32 %v5444_v59, %v3841_v36  ;;  %v3435_v9 = vcombine.high %v3425_v48, %v3425_v48  ;;  %v3785_v26 = vrot.slane %v3425_v48, %v6331_v19  ;;  %v5453_v48 = vld [vmem:[#allocation2 + $0x8] sm:$0xff]  ;;  %v5456_v59 = vld [vmem:[#allocation2 + $0x50] sm:$0xff] }
 0x356   :  { %7332 = vst [vmem:[#allocation24_spill] sm:$0xff] %v6393_v43  ;;  %v3789_v29 = vrot.slane %v3433_v4, %v6331_v19  ;;  %v4346_v32 = vmax.f32 %v6373_v25, %v4345_v58  ;;  %v4407_v10 = vmax.f32 %v6375_v34, %v4406_v31  ;;  %v6404_v13 = vmul.f32 %v5445_v7, %v3841_v36  ;;  %v5448_v36 = vld [vmem:[#allocation2 + $0x20] sm:$0xff] }
 0x357   :  { %7333 = vst [vmem:[#allocation25_spill] sm:$0xff] %v6398_v62  ;;  %v3781_v46 = vrot.slane %v3411_v21, %v6331_v19  ;;  %v3434_v20 = vcombine.high %v3418_v56, %v3418_v56  ;;  %v3436_v40 = vcombine.high %v3432_v57, %v3432_v57  ;;  %v3793_v15 = vrot.slane %v3435_v9, %v6331_v19  ;;  %v5454_v58 = vld [vmem:[#allocation2 + $0x40] sm:$0xff] }
 0x358   :  { %7334 = vst [vmem:[#allocation26_spill] sm:$0xff] %v6404_v13  ;;  %v3535_v14 = vcombine.high %v6389_v28, %v6389_v28  ;;  %v4347_v38 = vmax.f32 %v6377_v42, %v4346_v32  ;;  %v4408_v61 = vmax.f32 %v6381_v54, %v4407_v10  ;;  %v3797_v30 = vrot.slane %v3418_v56, %v6331_v19 }
 0x359   :  { %v3801_v52 = vrot.slane %v3432_v57, %v6331_v19  ;;  %v6416_v5 = vmul.f32 %v5446_v50, %v3785_v26  ;;  %v6418_v21 = vmul.f32 %v5447_v33, %v3785_v26  ;;  %v6420_v45 = vmul.f32 %v5448_v36, %v3789_v29  ;;  %v5457_v26 = vld [vmem:[#allocation2 + $0x58] sm:$0xff]  ;;  %v5458_v33 = vld [vmem:[#allocation2 + $0x60] sm:$0xff] }
 0x35a   :  { %v6422_v18 = vmul.f32 %v5449_v17, %v3789_v29  ;;  %v4348_v27 = vmax.f32 %v6385_v35, %v4347_v38  ;;  %v4409_v22 = vmax.f32 %v6393_v43, %v4408_v61  ;;  %v6426_v44 = vmul.f32 %v5450_v2, %v3793_v15  ;;  %v5459_v17 = vld [vmem:[#allocation2 + $0x68] sm:$0xff] }
 0x35b   :  { %v6428_v41 = vmul.f32 %v5451_v3, %v3793_v15  ;;  %v3805_v37 = vrot.slane %v3434_v20, %v6331_v19  ;;  %v3809_v39 = vrot.slane %v3436_v40, %v6331_v19  ;;  %v6432_v56 = vmul.f32 %v5452_v47, %v3781_v46 }
 0x35c   :  { %7335 = vst [vmem:[#allocation27_spill] sm:$0xff] %v6422_v18  ;;  %7336 = vst [vmem:[#allocation28_spill] sm:$0xff] %v6426_v44  ;;  %v6434_v4 = vmul.f32 %v5453_v48, %v3781_v46  ;;  %v6436_v31 = vmul.f32 %v5454_v58, %v3797_v30  ;;  %v6438_v57 = vmul.f32 %v5455_v24, %v3797_v30 }
 0x35d   :  { %7337 = vst [vmem:[#allocation29_spill] sm:$0xff] %v6428_v41  ;;  %v6440_v9 = vmul.f32 %v5456_v59, %v3801_v52  ;;  %v6442_v29 = vmul.f32 %v5457_v26, %v3801_v52  ;;  %v4349_v32 = vmax.f32 %v6398_v62, %v4348_v27  ;;  %v4410_v10 = vmax.f32 %v6404_v13, %v4409_v22 }
 0x35e   :  { %7338 = vst [vmem:[#allocation30_spill] sm:$0xff] %v6436_v31  ;;  %7339 = vst [vmem:[#allocation31_spill] sm:$0xff] %v6438_v57  ;;  %v4212_v7 = vadd.f32 %v6416_v5, %v6432_v56  ;;  %v4273_v46 = vadd.f32 %v6418_v21, %v6434_v4  ;;  %v4337_v20 = vmax.f32 %v6432_v56, %v6420_v45 }
 0x35f   :  { %7340 = vst [vmem:[#allocation32_spill] sm:$0xff] %v6440_v9  ;;  %7341 = vst [vmem:[#allocation33_spill] sm:$0xff] %v6442_v29  ;;  %v4338_v40 = vmax.f32 %v6416_v5, %v6426_v44  ;;  %v4398_v15 = vmax.f32 %v6434_v4, %v6422_v18  ;;  %v4399_v38 = vmax.f32 %v6418_v21, %v6428_v41 }
 0x360   :  { %v4213_v61 = vadd.f32 %v4212_v7, %v6420_v45  ;;  %v4274_v30 = vadd.f32 %v4273_v46, %v6422_v18  ;;  %v3542_v52 = vrot.slane %v6389_v28, %v6327_v8  ;;  %v3549_v50 = vrot.slane %v3535_v14, %v6327_v8  ;;  %v5490_v18 = vld [vmem:[#allocation2 + $0x160] sm:$0xff] }
 0x361   :  { %v6463_v36 = vmul.f32 %v5458_v33, %v3805_v37  ;;  %v6465_v27 = vmul.f32 %v5459_v17, %v3805_v37  ;;  %v4339_v22 = vmax.f32 %v4337_v20, %v6436_v31  ;;  %v4400_v2 = vmax.f32 %v4398_v15, %v6438_v57  ;;  %v5460_v37 = vld [vmem:[#allocation2 + $0x70] sm:$0xff]  ;;  %v5461_v15 = vld [vmem:[#allocation2 + $0x78] sm:$0xff] }
 0x362   :  { %v4214_v3 = vadd.f32 %v4213_v61, %v6426_v44  ;;  %v4275_v47 = vadd.f32 %v4274_v30, %v6428_v41  ;;  %v3550_v48 = vcombine.high %v3542_v52, %v3542_v52  ;;  %v3551_v58 = vcombine.high %v3549_v50, %v3549_v50  ;;  %v5486_v44 = vld [vmem:[#allocation2 + $0x140] sm:$0xff] }
 0x363   :  { %7342 = vst [vmem:[#allocation34_spill] sm:$0xff] %v6463_v36  ;;  %7343 = vst [vmem:[#allocation35_spill] sm:$0xff] %v6465_v27  ;;  %v4340_v28 = vmax.f32 %v4338_v40, %v6440_v9  ;;  %v4341_v14 = vmax.f32 %v4339_v22, %v6463_v36  ;;  %v4401_v24 = vmax.f32 %v4399_v38, %v6442_v29 }
 0x364   :  { %v4402_v59 = vmax.f32 %v4400_v2, %v6465_v27  ;;  %v6475_v26 = vmul.f32 %v5460_v37, %v3809_v39  ;;  %v4215_v7 = vadd.f32 %v4214_v3, %v6436_v31  ;;  %v4276_v46 = vadd.f32 %v4275_v47, %v6438_v57  ;;  %v5480_v31 = vld [vmem:[#allocation2 + $0x110] sm:$0xff] }
 0x365   :  { %v3558_v20 = vrot.slane %v3542_v52, %v6327_v8  ;;  %v6480_v61 = vmul.f32 %v5461_v15, %v3809_v39  ;;  %v4350_v30 = vmax.f32 %v4341_v14, %v4349_v32  ;;  %v3572_v33 = vrot.slane %v3550_v48, %v6327_v8 }
 0x366   :  { %7344 = vst [vmem:[#allocation36_spill] sm:$0xff] %v6475_v26  ;;  %v4411_v40 = vmax.f32 %v4402_v59, %v4410_v10  ;;  %v4216_v38 = vadd.f32 %v4215_v7, %v6440_v9  ;;  %v4277_v17 = vadd.f32 %v4276_v46, %v6442_v29  ;;  %v3565_v22 = vrot.slane %v3549_v50, %v6327_v8  ;;  %v5462_v46 = vld [vmem:[#allocation2 + $0x180] sm:$0xff] }
 0x367   :  { %7345 = vst [vmem:[#allocation37_spill] sm:$0xff] %v6480_v61  ;;  %v3579_v2 = vrot.slane %v3551_v58, %v6327_v8  ;;  %v4342_v3 = vmax.f32 %v4340_v28, %v6475_v26  ;;  %v4403_v47 = vmax.f32 %v4401_v24, %v6480_v61  ;;  %v3580_v52 = vcombine.high %v3558_v20, %v3558_v20  ;;  %v5478_v29 = vld [vmem:[#allocation2 + $0x100] sm:$0xff] }
 0x368   :  { %v3363_v39 = vadd.f32 1.0, %v6383_v60  ;;  %v4217_v32 = vadd.f32 %v4216_v38, %v6463_v36  ;;  %v4278_v10 = vadd.f32 %v4277_v17, %v6465_v27  ;;  %v3582_v48 = vcombine.high %v3572_v33, %v3572_v33  ;;  %v5463_v38 = vld [vmem:[#allocation2 + $0x188] sm:$0xff] }
 0x369   :  { %v3877_v14 = vrot.slane %v3558_v20, %v6331_v19  ;;  %v4351_v59 = vmax.f32 %v4342_v3, %v4350_v30  ;;  %v4412_v37 = vmax.f32 %v4403_v47, %v4411_v40  ;;  %v3881_v50 = vrot.slane %v3572_v33, %v6331_v19  ;;  %v5464_v3 = vld [vmem:[#allocation2 + $0x190] sm:$0xff] }
 0x36a   :  { %v4218_v58 = vadd.f32 %v4217_v32, %v6475_v26  ;;  %v4279_v28 = vadd.f32 %v4278_v10, %v6480_v61  ;;  %v3581_v24 = vcombine.high %v3565_v22, %v3565_v22  ;;  %v3583_v7 = vcombine.high %v3579_v2, %v3579_v2  ;;  %v5477_v61 = vld [vmem:[#allocation2 + $0x1f8] sm:$0xff] }
 0x36b   :  { %v3885_v60 = vrot.slane %v3580_v52, %v6331_v19  ;;  %v6498_v15 = vmul.f32 %v5462_v46, %v3877_v14  ;;  %v6500_v17 = vmul.f32 %v5463_v38, %v3877_v14  ;;  %v3889_v30 = vrot.slane %v3582_v48, %v6331_v19  ;;  %v5465_v52 = vld [vmem:[#allocation2 + $0x198] sm:$0xff]  ;;  %v5468_v38 = vld [vmem:[#allocation2 + $0x1b0] sm:$0xff] }
 0x36c   :  { %v4219_v20 = vadd.f32 %v4218_v58, %v6350_v16  ;;  %v4280_v11 = vadd.f32 %v4279_v28, %v6352_v55  ;;  %5294 = vrcp.f32 %v3363_v39  ;;  %v6508_v47 = vmul.f32 %v5464_v3, %v3881_v50  ;;  %v5467_v28 = vld [vmem:[#allocation2 + $0x1a8] sm:$0xff] }
 0x36d   :  { %7346 = vst [vmem:[#allocation38_spill] sm:$0xff] %v6498_v15  ;;  %7347 = vst [vmem:[#allocation39_spill] sm:$0xff] %v6500_v17  ;;  %v4352_v40 = vmax.f32 %v6498_v15, %v4351_v59  ;;  %v4413_v33 = vmax.f32 %v6500_v17, %v4412_v37  ;;  %v6510_v32 = vmul.f32 %v5465_v52, %v3881_v50  ;;  %v5466_v59 = vld [vmem:[#allocation2 + $0x1a0] sm:$0xff] }
 0x36e   :  { %7348 = vst [vmem:[#allocation40_spill] sm:$0xff] %v6508_v47  ;;  %v3893_v10 = vrot.slane %v3565_v22, %v6331_v19  ;;  %v3897_v23 = vrot.slane %v3579_v2, %v6331_v19  ;;  %v3901_v14 = vrot.slane %v3581_v24, %v6331_v19  ;;  %v3905_v58 = vrot.slane %v3583_v7, %v6331_v19  ;;  %v5469_v24 = vld [vmem:[#allocation2 + $0x1b8] sm:$0xff]  ;;  %v5470_v52 = vld [vmem:[#allocation2 + $0x1c0] sm:$0xff] }
 0x36f   :  { %7349 = vst [vmem:[#allocation41_spill] sm:$0xff] %v6510_v32  ;;  %v4353_v39 = vmax.f32 %v6508_v47, %v4352_v40  ;;  %v4414_v48 = vmax.f32 %v6510_v32, %v4413_v33  ;;  %v6518_v37 = vmul.f32 %v5466_v59, %v3885_v60  ;;  %v6520_v46 = vmul.f32 %v5467_v28, %v3885_v60  ;;  %v5472_v28 = vld [vmem:[#allocation2 + $0x1d0] sm:$0xff] }
 0x370   :  { %v4220_v50 = vadd.f32 %v4219_v20, %v6354_v51  ;;  %v4281_v22 = vadd.f32 %v4280_v11, %v6356_v0  ;;  %v6524_v2 = vmul.f32 %v5468_v38, %v3889_v30  ;;  %v6526_v3 = vmul.f32 %v5469_v24, %v3889_v30  ;;  %v5471_v11 = vld [vmem:[#allocation2 + $0x1c8] sm:$0xff]  ;;  %v5473_v30 = vld [vmem:[#allocation2 + $0x1d8] sm:$0xff] }
 0x371   :  { %7350 = vst [vmem:[#allocation42_spill] sm:$0xff] %v6518_v37  ;;  %7351 = vst [vmem:[#allocation43_spill] sm:$0xff] %v6520_v46  ;;  %v4354_v7 = vmax.f32 %v6518_v37, %v4353_v39  ;;  %v4415_v40 = vmax.f32 %v6520_v46, %v4414_v48  ;;  %v3486_v33 = vcombine.high %v6396_v1, %v6396_v1 }
 0x372   :  { %7352 = vst [vmem:[#allocation44_spill] sm:$0xff] %v6526_v3  ;;  %v3493_v60 = vrot.slane %v6396_v1, %v6327_v8  ;;  %v6534_v20 = vmul.f32 %v5470_v52, %v3893_v10  ;;  %v6536_v59 = vmul.f32 %v5471_v11, %v3893_v10  ;;  %v6538_v38 = vmul.f32 %v5472_v28, %v3897_v23  ;;  %v5474_v1 = vld [vmem:[#allocation2 + $0x1e0] sm:$0xff]  ;;  %v5475_v52 = vld [vmem:[#allocation2 + $0x1e8] sm:$0xff] }
 0x373   :  { %v6540_v24 = vmul.f32 %v5473_v30, %v3897_v23  ;;  %v4355_v39 = vmax.f32 %v6524_v2, %v4354_v7  ;;  %v4416_v48 = vmax.f32 %v6526_v3, %v4415_v40  ;;  %v3500_v0 = vrot.slane %v3486_v33, %v6327_v8  ;;  %v5476_v7 = vld [vmem:[#allocation2 + $0x1f0] sm:$0xff]  ;;  %v6555_v33 = vpop.eup %5290 }
 0x374   :  { %7353 = vst [vmem:[#allocation45_spill] sm:$0xff] %v6534_v20  ;;  %7354 = vst [vmem:[#allocation46_spill] sm:$0xff] %v6536_v59  ;;  %v3501_v51 = vcombine.high %v3493_v60, %v3493_v60  ;;  %v6545_v55 = vmul.f32 %v5474_v1, %v3901_v14  ;;  %v6547_v16 = vmul.f32 %v5475_v52, %v3901_v14 }
 0x375   :  { %v3509_v10 = vrot.slane %v3493_v60, %v6327_v8  ;;  %v4221_v11 = vadd.f32 %v4220_v50, %v6359_v63  ;;  %v4356_v23 = vmax.f32 %v6534_v20, %v4355_v39  ;;  %v4417_v28 = vmax.f32 %v6536_v59, %v4416_v48  ;;  %v6565_v63 = vpop.eup %5292 }
 0x376   :  { %v6553_v30 = vmul.f32 %v5476_v7, %v3905_v58  ;;  %v3502_v40 = vcombine.high %v3500_v0, %v3500_v0  ;;  %v6557_v1 = vmul.f32 %v5477_v61, %v3905_v58  ;;  %v3516_v14 = vrot.slane %v3500_v0, %v6327_v8 }
 0x377   :  { %v3523_v52 = vrot.slane %v3501_v51, %v6327_v8  ;;  %v3531_v60 = vcombine.high %v3509_v10, %v3509_v10  ;;  %v4357_v50 = vmax.f32 %v6538_v38, %v4356_v23  ;;  %v4418_v39 = vmax.f32 %v6540_v24, %v4417_v28 }
 0x378   :  { %v3530_v48 = vrot.slane %v3502_v40, %v6327_v8  ;;  %v3845_v7 = vrot.slane %v3509_v10, %v6331_v19  ;;  %v4222_v27 = vadd.f32 %v4221_v11, %v6369_v6  ;;  %v4282_v61 = vadd.f32 %v4281_v22, %v6361_v49 }
 0x379   :  { %v3533_v26 = vcombine.high %v3523_v52, %v3523_v52  ;;  %v3633_v0 = vcombine.high %v6407_v12, %v6407_v12  ;;  %v6571_v51 = vpop.eup %5294  ;;  %v4358_v58 = vmax.f32 %v6545_v55, %v4357_v50  ;;  %v4419_v23 = vmax.f32 %v6547_v16, %v4418_v39  ;;  %v5479_v50 = vld [vmem:[#allocation2 + $0x108] sm:$0xff] }
 0x37a   :  { %v3849_v28 = vrot.slane %v3523_v52, %v6331_v19  ;;  %v3640_v10 = vrot.slane %v6407_v12, %v6327_v8  ;;  %v3532_v40 = vcombine.high %v3516_v14, %v3516_v14  ;;  %v3534_v36 = vcombine.high %v3530_v48, %v3530_v48 }
 0x37b   :  { %v3853_v11 = vrot.slane %v3531_v60, %v6331_v19  ;;  %v3857_v22 = vrot.slane %v3533_v26, %v6331_v19  ;;  %v4359_v6 = vmax.f32 %v6553_v30, %v4358_v58  ;;  %v4420_v49 = vmax.f32 %v6557_v1, %v4419_v23 }
 0x37c   :  { %v6582_v9 = vmul.f32 %v5478_v29, %v3845_v7  ;;  %v6584_v39 = vmul.f32 %v5479_v50, %v3845_v7  ;;  %v3861_v52 = vrot.slane %v3516_v14, %v6331_v19  ;;  %v4223_v12 = vadd.f32 %v4222_v27, %v6373_v25  ;;  %v5481_v29 = vld [vmem:[#allocation2 + $0x118] sm:$0xff]  ;;  %v5482_v50 = vld [vmem:[#allocation2 + $0x120] sm:$0xff] }
 0x37d   :  { %v4283_v57 = vadd.f32 %v4282_v61, %v6371_v53  ;;  %v3647_v60 = vrot.slane %v3633_v0, %v6327_v8  ;;  %v6592_v23 = vmul.f32 %v5480_v31, %v3849_v28  ;;  %v6594_v41 = vmul.f32 %v5481_v29, %v3849_v28  ;;  %v5484_v31 = vld [vmem:[#allocation2 + $0x130] sm:$0xff]  ;;  %v5485_v28 = vld [vmem:[#allocation2 + $0x138] sm:$0xff] }
 0x37e   :  { %7355 = vst [vmem:[#allocation47_spill] sm:$0xff] %v6582_v9  ;;  %7356 = vst [vmem:[#allocation48_spill] sm:$0xff] %v6584_v39  ;;  %v4360_v26 = vmax.f32 %v6582_v9, %v4359_v6  ;;  %v4421_v58 = vmax.f32 %v6584_v39, %v4420_v49  ;;  %v3865_v7 = vrot.slane %v3530_v48, %v6331_v19  ;;  %v5483_v49 = vld [vmem:[#allocation2 + $0x128] sm:$0xff] }
 0x37f   :  { %7357 = vst [vmem:[#allocation49_spill] sm:$0xff] %v6592_v23  ;;  %7358 = vst [vmem:[#allocation50_spill] sm:$0xff] %v6594_v41  ;;  %v3869_v14 = vrot.slane %v3532_v40, %v6331_v19  ;;  %v3873_v27 = vrot.slane %v3534_v36, %v6331_v19  ;;  %v6599_v61 = vmul.f32 %v5482_v50, %v3853_v11 }
 0x380   :  { %v4361_v0 = vmax.f32 %v6592_v23, %v4360_v26  ;;  %v4422_v6 = vmax.f32 %v6594_v41, %v4421_v58  ;;  %v6603_v25 = vmul.f32 %v5483_v49, %v3853_v11  ;;  %v6605_v53 = vmul.f32 %v5484_v31, %v3857_v22  ;;  %v5487_v11 = vld [vmem:[#allocation2 + $0x148] sm:$0xff] }
 0x381   :  { %7359 = vst [vmem:[#allocation51_spill] sm:$0xff] %v6599_v61  ;;  %v6607_v29 = vmul.f32 %v5485_v28, %v3857_v22  ;;  %v4224_v48 = vadd.f32 %v4223_v12, %v6377_v42  ;;  %v4284_v36 = vadd.f32 %v4283_v57, %v6375_v34  ;;  %v3648_v40 = vcombine.high %v3640_v10, %v3640_v10 }
 0x382   :  { %7360 = vst [vmem:[#allocation52_spill] sm:$0xff] %v6603_v25  ;;  %7361 = vst [vmem:[#allocation53_spill] sm:$0xff] %v6605_v53  ;;  %v4362_v50 = vmax.f32 %v6599_v61, %v4361_v0  ;;  %v4423_v26 = vmax.f32 %v6603_v25, %v4422_v6  ;;  %v6613_v58 = vmul.f32 %v5486_v44, %v3861_v52  ;;  %v5488_v0 = vld [vmem:[#allocation2 + $0x150] sm:$0xff]  ;;  %v5489_v6 = vld [vmem:[#allocation2 + $0x158] sm:$0xff] }
 0x383   :  { %7362 = vst [vmem:[#allocation54_spill] sm:$0xff] %v6607_v29  ;;  %v6615_v49 = vmul.f32 %v5487_v11, %v3861_v52  ;;  %v4225_v31 = vadd.f32 %v4224_v48, %v6385_v35  ;;  %v4285_v22 = vadd.f32 %v4284_v36, %v6381_v54  ;;  %v3649_v28 = vcombine.high %v3647_v60, %v3647_v60 }
 0x384   :  { %7363 = vst [vmem:[#allocation55_spill] sm:$0xff] %v6613_v58  ;;  %v3656_v12 = vrot.slane %v3640_v10, %v6327_v8  ;;  %v4363_v57 = vmax.f32 %v6605_v53, %v4362_v50  ;;  %v4424_v42 = vmax.f32 %v6607_v29, %v4423_v26  ;;  %v6622_v34 = vmul.f32 %v5488_v0, %v3865_v7  ;;  %v5491_v26 = vld [vmem:[#allocation2 + $0x168] sm:$0xff] }
 0x385   :  { %7364 = vst [vmem:[#allocation56_spill] sm:$0xff] %v6615_v49  ;;  %v6624_v44 = vmul.f32 %v5489_v6, %v3865_v7  ;;  %v6626_v52 = vmul.f32 %v5490_v18, %v3869_v14  ;;  %v4226_v48 = vadd.f32 %v4225_v31, %v6398_v62  ;;  %v4286_v36 = vadd.f32 %v4285_v22, %v6393_v43  ;;  %v5492_v62 = vld [vmem:[#allocation2 + $0x170] sm:$0xff] }
 0x386   :  { %7365 = vst [vmem:[#allocation57_spill] sm:$0xff] %v6622_v34  ;;  %v3670_v11 = vrot.slane %v3648_v40, %v6327_v8  ;;  %v4364_v10 = vmax.f32 %v6613_v58, %v4363_v57  ;;  %v4425_v50 = vmax.f32 %v6615_v49, %v4424_v42  ;;  %v6633_v35 = vmul.f32 %v5491_v26, %v3869_v14  ;;  %v5493_v14 = vld [vmem:[#allocation2 + $0x178] sm:$0xff] }
 0x387   :  { %7366 = vst [vmem:[#allocation58_spill] sm:$0xff] %v6624_v44  ;;  %7367 = vst [vmem:[#allocation59_spill] sm:$0xff] %v6626_v52  ;;  %v3663_v0 = vrot.slane %v3647_v60, %v6327_v8  ;;  %v4227_v7 = vadd.f32 %v4226_v48, %v6582_v9  ;;  %v4287_v18 = vadd.f32 %v4286_v36, %v6404_v13 }
 0x388   :  { %7368 = vst [vmem:[#allocation60_spill] sm:$0xff] %v6633_v35  ;;  %v3677_v6 = vrot.slane %v3649_v28, %v6327_v8  ;;  %v3678_v31 = vcombine.high %v3656_v12, %v3656_v12  ;;  %v4365_v22 = vmax.f32 %v6622_v34, %v4364_v10  ;;  %v4426_v40 = vmax.f32 %v6624_v44, %v4425_v50 }
 0x389   :  { %v6641_v57 = vmul.f32 %v5492_v62, %v3873_v27  ;;  %v3941_v42 = vrot.slane %v3656_v12, %v6331_v19  ;;  %v6644_v26 = vmul.f32 %v5493_v14, %v3873_v27  ;;  %v4228_v60 = vadd.f32 %v4227_v7, %v6592_v23 }
 0x38a   :  { %v4288_v48 = vadd.f32 %v4287_v18, %v6584_v39  ;;  %v3680_v36 = vcombine.high %v3670_v11, %v3670_v11  ;;  %v4366_v28 = vmax.f32 %v6626_v52, %v4365_v22  ;;  %v4427_v9 = vmax.f32 %v6633_v35, %v4426_v40  ;;  %v5494_v18 = vld [vmem:[#allocation2 + $0x280] sm:$0xff]  ;;  %v5495_v22 = vld [vmem:[#allocation2 + $0x288] sm:$0xff] }
 0x38b   :  { %7369 = vst [vmem:[#allocation61_spill] sm:$0xff] %v6641_v57  ;;  %7370 = vst [vmem:[#allocation62_spill] sm:$0xff] %v6644_v26  ;;  %v3679_v10 = vcombine.high %v3663_v0, %v3663_v0  ;;  %v3945_v50 = vrot.slane %v3670_v11, %v6331_v19  ;;  %v4229_v62 = vadd.f32 %v4228_v60, %v6599_v61  ;;  %v5496_v61 = vld [vmem:[#allocation2 + $0x290] sm:$0xff] }
 0x38c   :  { %v4289_v13 = vadd.f32 %v4288_v48, %v6594_v41  ;;  %v3681_v12 = vcombine.high %v3677_v6, %v3677_v6  ;;  %v3949_v27 = vrot.slane %v3678_v31, %v6331_v19  ;;  %v4367_v14 = vmax.f32 %v6641_v57, %v4366_v28 }
 0x38d   :  { %v4428_v7 = vmax.f32 %v6644_v26, %v4427_v9  ;;  %v6656_v23 = vmul.f32 %v5494_v18, %v3941_v42  ;;  %v6658_v39 = vmul.f32 %v5495_v22, %v3941_v42  ;;  %v4230_v40 = vadd.f32 %v4229_v62, %v6605_v53  ;;  %v5497_v18 = vld [vmem:[#allocation2 + $0x298] sm:$0xff]  ;;  %v5498_v22 = vld [vmem:[#allocation2 + $0x2a0] sm:$0xff] }
 0x38e   :  { %v4290_v11 = vadd.f32 %v4289_v13, %v6603_v25  ;;  %v3953_v60 = vrot.slane %v3680_v36, %v6331_v19  ;;  %v3957_v48 = vrot.slane %v3663_v0, %v6331_v19  ;;  %v6666_v9 = vmul.f32 %v5496_v61, %v3945_v50  ;;  %v5499_v61 = vld [vmem:[#allocation2 + $0x2a8] sm:$0xff] }
 0x38f   :  { %7371 = vst [vmem:[#allocation63_spill] sm:$0xff] %v6656_v23  ;;  %7372 = vst [vmem:[#allocation64_spill] sm:$0xff] %v6658_v39  ;;  %v4368_v31 = vmax.f32 %v6656_v23, %v4367_v14  ;;  %v4429_v28 = vmax.f32 %v6658_v39, %v4428_v7  ;;  %v6668_v41 = vmul.f32 %v5497_v18, %v3945_v50  ;;  %v5500_v18 = vld [vmem:[#allocation2 + $0x2b0] sm:$0xff] }
 0x390   :  { %v4231_v42 = vadd.f32 %v4230_v40, %v6613_v58  ;;  %v4291_v62 = vadd.f32 %v4290_v11, %v6607_v29  ;;  %v3961_v13 = vrot.slane %v3677_v6, %v6331_v19  ;;  %v3965_v36 = vrot.slane %v3679_v10, %v6331_v19 }
 0x391   :  { %7373 = vst [vmem:[#allocation65_spill] sm:$0xff] %v6668_v41  ;;  %v4369_v0 = vmax.f32 %v6666_v9, %v4368_v31  ;;  %v4430_v14 = vmax.f32 %v6668_v41, %v4429_v28  ;;  %v6676_v7 = vmul.f32 %v5498_v22, %v3949_v27  ;;  %v6678_v53 = vmul.f32 %v5499_v61, %v3949_v27  ;;  %v5501_v28 = vld [vmem:[#allocation2 + $0x2b8] sm:$0xff] }
 0x392   :  { %v4232_v50 = vadd.f32 %v4231_v42, %v6622_v34  ;;  %v4292_v40 = vadd.f32 %v4291_v62, %v6615_v49  ;;  %v3969_v11 = vrot.slane %v3681_v12, %v6331_v19  ;;  %v6683_v6 = vmul.f32 %v5500_v18, %v3953_v60  ;;  %v5502_v62 = vld [vmem:[#allocation2 + $0x2c0] sm:$0xff]  ;;  %v5503_v18 = vld [vmem:[#allocation2 + $0x2c8] sm:$0xff] }
 0x393   :  { %7374 = vst [vmem:[#allocation66_spill] sm:$0xff] %v6678_v53  ;;  %v4370_v10 = vmax.f32 %v6676_v7, %v4369_v0  ;;  %v4431_v31 = vmax.f32 %v6678_v53, %v4430_v14  ;;  %v6687_v58 = vmul.f32 %v5501_v28, %v3953_v60  ;;  %v3584_v27 = vcombine.high %v6565_v63, %v6565_v63 }
 0x394   :  { %7375 = vst [vmem:[#allocation67_spill] sm:$0xff] %v6683_v6  ;;  %v4233_v22 = vadd.f32 %v4232_v50, %v6626_v52  ;;  %v4293_v42 = vadd.f32 %v4292_v40, %v6624_v44  ;;  %v6693_v61 = vmul.f32 %v5502_v62, %v3957_v48  ;;  %v3591_v12 = vrot.slane %v6565_v63, %v6327_v8  ;;  %v5504_v44 = vld [vmem:[#allocation2 + $0x2d0] sm:$0xff] }
 0x395   :  { %7376 = vst [vmem:[#allocation68_spill] sm:$0xff] %v6687_v58  ;;  %v4371_v0 = vmax.f32 %v6683_v6, %v4370_v10  ;;  %v4432_v14 = vmax.f32 %v6687_v58, %v4431_v31  ;;  %v6699_v60 = vmul.f32 %v5503_v18, %v3957_v48  ;;  %v3598_v28 = vrot.slane %v3584_v27, %v6327_v8  ;;  %v5505_v31 = vld [vmem:[#allocation2 + $0x2d8] sm:$0xff]  ;;  %v5506_v27 = vld [vmem:[#allocation2 + $0x2e0] sm:$0xff] }
 0x396   :  { %7377 = vst [vmem:[#allocation69_spill] sm:$0xff] %v6693_v61  ;;  %v4234_v34 = vadd.f32 %v4233_v22, %v6641_v57  ;;  %v4294_v50 = vadd.f32 %v4293_v42, %v6633_v35  ;;  %v3599_v40 = vcombine.high %v3591_v12, %v3591_v12  ;;  %v3607_v62 = vrot.slane %v3591_v12, %v6327_v8  ;;  %v5507_v22 = vld [vmem:[#allocation2 + $0x2e8] sm:$0xff]  ;;  %v5508_v57 = vld [vmem:[#allocation2 + $0x2f0] sm:$0xff]  ;;  %v5509_v35 = vld [vmem:[#allocation2 + $0x2f8] sm:$0xff] }
 0x397   :  { %7378 = vst [vmem:[#allocation70_spill] sm:$0xff] %v6699_v60  ;;  %v4372_v52 = vmax.f32 %v6693_v61, %v4371_v0  ;;  %v4433_v63 = vmax.f32 %v6699_v60, %v4432_v14  ;;  %v6707_v10 = vmul.f32 %v5504_v44, %v3961_v13  ;;  %v6709_v49 = vmul.f32 %v5505_v31, %v3961_v13 }
 0x398   :  { %v4295_v48 = vadd.f32 %v4294_v50, %v6644_v26  ;;  %v6712_v18 = vmul.f32 %v5506_v27, %v3965_v36  ;;  %v6714_v42 = vmul.f32 %v5507_v22, %v3965_v36  ;;  %v3621_v12 = vrot.slane %v3599_v40, %v6327_v8 }
 0x399   :  { %7379 = vst [vmem:[#allocation71_spill] sm:$0xff] %v6707_v10  ;;  %7380 = vst [vmem:[#allocation72_spill] sm:$0xff] %v6709_v49  ;;  %v4373_v0 = vmax.f32 %v6707_v10, %v4372_v52  ;;  %v4434_v14 = vmax.f32 %v6709_v49, %v4433_v63  ;;  %v6719_v44 = vmul.f32 %v5508_v57, %v3969_v11 }
 0x39a   :  { %7381 = vst [vmem:[#allocation73_spill] sm:$0xff] %v6712_v18  ;;  %7382 = vst [vmem:[#allocation74_spill] sm:$0xff] %v6714_v42  ;;  %v6721_v13 = vmul.f32 %v5509_v35, %v3969_v11  ;;  %v4235_v50 = vadd.f32 %v4234_v34, %v6498_v15  ;;  %v3600_v31 = vcombine.high %v3598_v28, %v3598_v28  ;;  %v5510_v15 = vld [vmem:[#allocation2 + $0x200] sm:$0xff] }
 0x39b   :  { %7383 = vst [vmem:[#allocation75_spill] sm:$0xff] %v6719_v44  ;;  %v3629_v27 = vcombine.high %v3607_v62, %v3607_v62  ;;  %v3909_v26 = vrot.slane %v3607_v62, %v6331_v19  ;;  %v4296_v36 = vadd.f32 %v4295_v48, %v6500_v17  ;;  %v4374_v40 = vmax.f32 %v6712_v18, %v4373_v0  ;;  %v5511_v62 = vld [vmem:[#allocation2 + $0x208] sm:$0xff]  ;;  %v5512_v17 = vld [vmem:[#allocation2 + $0x210] sm:$0xff] }
 0x39c   :  { %7384 = vst [vmem:[#allocation76_spill] sm:$0xff] %v6721_v13  ;;  %v4435_v52 = vmax.f32 %v6714_v42, %v4434_v14  ;;  %v3631_v22 = vcombine.high %v3621_v12, %v3621_v12  ;;  %v3913_v63 = vrot.slane %v3621_v12, %v6331_v19  ;;  %v3614_v11 = vrot.slane %v3598_v28, %v6327_v8 }
 0x39d   :  { %v4375_v57 = vmax.f32 %v6719_v44, %v4374_v40  ;;  %v3917_v34 = vrot.slane %v3629_v27, %v6331_v19  ;;  %v6733_v29 = vmul.f32 %v5510_v15, %v3909_v26  ;;  %v6735_v48 = vmul.f32 %v5511_v62, %v3909_v26  ;;  %v5513_v15 = vld [vmem:[#allocation2 + $0x218] sm:$0xff] }
 0x39e   :  { %v4436_v35 = vmax.f32 %v6721_v13, %v4435_v52  ;;  %v4236_v0 = vadd.f32 %v4235_v50, %v6508_v47  ;;  %v4297_v14 = vadd.f32 %v4296_v36, %v6510_v32  ;;  %v3628_v12 = vrot.slane %v3600_v31, %v6327_v8  ;;  %v5514_v31 = vld [vmem:[#allocation2 + $0x220] sm:$0xff] }
 0x39f   :  { %7385 = vst [vmem:[#allocation77_spill] sm:$0xff] %v6733_v29  ;;  %7386 = vst [vmem:[#allocation78_spill] sm:$0xff] %v6735_v48  ;;  %v3921_v40 = vrot.slane %v3631_v22, %v6331_v19  ;;  %v4376_v52 = vmax.f32 %v6733_v29, %v4375_v57  ;;  %v6743_v27 = vmul.f32 %v5512_v17, %v3913_v63  ;;  %v5515_v22 = vld [vmem:[#allocation2 + $0x228] sm:$0xff] }
 0x3a0   :  { %v4437_v28 = vmax.f32 %v6735_v48, %v4436_v35  ;;  %v6745_v25 = vmul.f32 %v5513_v15, %v3913_v63  ;;  %v3630_v26 = vcombine.high %v3614_v11, %v3614_v11  ;;  %v3925_v62 = vrot.slane %v3614_v11, %v6331_v19 }
 0x3a1   :  { %v4377_v50 = vmax.f32 %v6743_v27, %v4376_v52  ;;  %v6750_v32 = vmul.f32 %v5514_v31, %v3917_v34  ;;  %v6752_v57 = vmul.f32 %v5515_v22, %v3917_v34  ;;  %v3929_v35 = vrot.slane %v3628_v12, %v6331_v19  ;;  %v5517_v31 = vld [vmem:[#allocation2 + $0x238] sm:$0xff] }
 0x3a2   :  { %7387 = vst [vmem:[#allocation79_spill] sm:$0xff] %v6745_v25  ;;  %v4438_v36 = vmax.f32 %v6745_v25, %v4437_v28  ;;  %v4237_v17 = vadd.f32 %v4236_v0, %v6518_v37  ;;  %v4298_v63 = vadd.f32 %v4297_v14, %v6520_v46  ;;  %v3738_v15 = vrot.slane %v6571_v51, %v6327_v8  ;;  %v5516_v28 = vld [vmem:[#allocation2 + $0x230] sm:$0xff] }
 0x3a3   :  { %7388 = vst [vmem:[#allocation80_spill] sm:$0xff] %v6752_v57  ;;  %v4378_v11 = vmax.f32 %v6750_v32, %v4377_v50  ;;  %v6761_v47 = vmul.f32 %v5516_v28, %v3921_v40  ;;  %v6763_v43 = vmul.f32 %v5517_v31, %v3921_v40  ;;  %v3632_v34 = vcombine.high %v3628_v12, %v3628_v12  ;;  %v5518_v50 = vld [vmem:[#allocation2 + $0x240] sm:$0xff]  ;;  %v5520_v31 = vld [vmem:[#allocation2 + $0x250] sm:$0xff] }
 0x3a4   :  { %v4439_v52 = vmax.f32 %v6752_v57, %v4438_v36  ;;  %v3933_v22 = vrot.slane %v3630_v26, %v6331_v19  ;;  %v4238_v0 = vadd.f32 %v4237_v17, %v6524_v2  ;;  %v4299_v14 = vadd.f32 %v4298_v63, %v6526_v3  ;;  %v5519_v36 = vld [vmem:[#allocation2 + $0x248] sm:$0xff] }
 0x3a5   :  { %v4379_v46 = vmax.f32 %v6761_v47, %v4378_v11  ;;  %v6770_v54 = vmul.f32 %v5518_v50, %v3925_v62  ;;  %v6772_v28 = vmul.f32 %v5519_v36, %v3925_v62  ;;  %v6778_v63 = vmul.f32 %v5520_v31, %v3929_v35  ;;  %v5521_v11 = vld [vmem:[#allocation2 + $0x258] sm:$0xff]  ;;  %v5522_v36 = vld [vmem:[#allocation2 + $0x260] sm:$0xff] }
 0x3a6   :  { %v4440_v37 = vmax.f32 %v6763_v43, %v4439_v52  ;;  %v4239_v40 = vadd.f32 %v4238_v0, %v6534_v20  ;;  %v4300_v12 = vadd.f32 %v4299_v14, %v6536_v59  ;;  %v6780_v3 = vmul.f32 %v5521_v11, %v3929_v35  ;;  %v5523_v59 = vld [vmem:[#allocation2 + $0x268] sm:$0xff]  ;;  %v5524_v11 = vld [vmem:[#allocation2 + $0x270] sm:$0xff] }
 0x3a7   :  { %7389 = vst [vmem:[#allocation81_spill] sm:$0xff] %v6772_v28  ;;  %v4380_v26 = vmax.f32 %v6770_v54, %v4379_v46  ;;  %7390 = vst [vmem:[#allocation82_spill] sm:$0xff] %v6778_v63  ;;  %v3937_v52 = vrot.slane %v3632_v34, %v6331_v19  ;;  %v3362_v0 = vadd.f32 1.0, %v6555_v33  ;;  %v3746_v31 = vcombine.high %v3738_v15, %v3738_v15 }
 0x3a8   :  { %v4441_v17 = vmax.f32 %v6772_v28, %v4440_v37  ;;  %v4240_v50 = vadd.f32 %v4239_v40, %v6538_v38  ;;  %v4301_v62 = vadd.f32 %v4300_v12, %v6540_v24  ;;  %v6788_v37 = vmul.f32 %v5522_v36, %v3933_v22 }
 0x3a9   :  { %v4381_v14 = vmax.f32 %v6778_v63, %v4380_v26  ;;  %v6790_v20 = vmul.f32 %v5523_v59, %v3933_v22  ;;  %v3754_v40 = vrot.slane %v3738_v15, %v6327_v8  ;;  %v6799_v36 = vmul.f32 %v5524_v11, %v3937_v52  ;;  %v5525_v22 = vld [vmem:[#allocation2 + $0x278] sm:$0xff] }
 0x3aa   :  { %v4442_v46 = vmax.f32 %v6780_v3, %v4441_v17  ;;  %v4241_v35 = vadd.f32 %v4240_v50, %v6545_v55  ;;  %v4302_v34 = vadd.f32 %v4301_v62, %v6547_v16  ;;  %v3768_v59 = vrot.slane %v3746_v31, %v6327_v8 }
 0x3ab   :  { %7391 = vst [vmem:[#allocation83_spill] sm:$0xff] %v6790_v20  ;;  %v4382_v12 = vmax.f32 %v6788_v37, %v4381_v14  ;;  %7392 = vst [vmem:[#allocation84_spill] sm:$0xff] %v6799_v36  ;;  %5296 = vrcp.f32 %v3362_v0  ;;  %v6802_v50 = vmul.f32 %v5525_v22, %v3937_v52  ;;  %v4005_v14 = vrot.slane %v3754_v40, %v6331_v19  ;;  %v5526_v22 = vld [vmem:[#allocation2 + $0x380] sm:$0xff] }
 0x3ac   :  { %v4443_v33 = vmax.f32 %v6790_v20, %v4442_v46  ;;  %v4242_v26 = vadd.f32 %v4241_v35, %v6553_v30  ;;  %v4303_v17 = vadd.f32 %v4302_v34, %v6557_v1  ;;  %v3731_v0 = vcombine.high %v6571_v51, %v6571_v51 }
 0x3ad   :  { %7393 = vst [vmem:[#allocation85_spill] sm:$0xff] %v6802_v50  ;;  %v4383_v46 = vmax.f32 %v6799_v36, %v4382_v12  ;;  %v3776_v31 = vcombine.high %v3754_v40, %v3754_v40  ;;  %v4009_v52 = vrot.slane %v3768_v59, %v6331_v19  ;;  %v5527_v12 = vld [vmem:[#allocation2 + $0x388] sm:$0xff] }
 0x3ae   :  { %v4243_v62 = vadd.f32 %v4242_v26, %v6733_v29  ;;  %v4304_v15 = vadd.f32 %v4303_v17, %v6735_v48  ;;  %v4444_v35 = vmax.f32 %v6802_v50, %v4443_v33  ;;  %v6816_v48 = vmul.f32 %v5526_v22, %v4005_v14 }
 0x3af   :  { %v6818_v29 = vmul.f32 %v5527_v12, %v4005_v14  ;;  %v3745_v40 = vrot.slane %v3731_v0, %v6327_v8  ;;  %v5529_v12 = vld [vmem:[#allocation2 + $0x398] sm:$0xff] }
 0x3b0   :  { %v4244_v34 = vadd.f32 %v4243_v62, %v6743_v27  ;;  %v4305_v11 = vadd.f32 %v4304_v15, %v6745_v25  ;;  %v4384_v15 = vmax.f32 %v6816_v48, %v4383_v46  ;;  %v3777_v25 = vcombine.high %v3768_v59, %v3768_v59 }
 0x3b1   :  { %v4445_v51 = vmax.f32 %v6818_v29, %v4444_v35  ;;  %v3747_v0 = vcombine.high %v3745_v40, %v3745_v40 }
 0x3b2   :  { %v4245_v26 = vadd.f32 %v4244_v34, %v6750_v32  ;;  %v4306_v17 = vadd.f32 %v4305_v11, %v6752_v57  ;;  %v4013_v34 = vrot.slane %v3776_v31, %v6331_v19  ;;  %v5528_v57 = vld [vmem:[#allocation2 + $0x390] sm:$0xff]  ;;  %v3761_v31 = vrot.slane %v3745_v40, %v6327_v8 }
 0x3b3   :  { %v6828_v14 = vmul.f32 %v5528_v57, %v4009_v52 }
 0x3b4   :  { %v4246_v33 = vadd.f32 %v4245_v26, %v6761_v47  ;;  %v4307_v62 = vadd.f32 %v4306_v17, %v6763_v43  ;;  %v6830_v26 = vmul.f32 %v5529_v12, %v4009_v52  ;;  %v5530_v52 = vld [vmem:[#allocation2 + $0x3a0] sm:$0xff] }
 0x3b5   :  { %v4385_v35 = vmax.f32 %v6828_v14, %v4384_v15  ;;  %v6840_v12 = vmul.f32 %v5530_v52, %v4013_v34 }
 0x3b6   :  { %v4247_v11 = vadd.f32 %v4246_v33, %v6770_v54  ;;  %v4308_v22 = vadd.f32 %v4307_v62, %v6772_v28  ;;  %v4446_v59 = vmax.f32 %v6830_v26, %v4445_v51  ;;  %v4017_v33 = vrot.slane %v3777_v25, %v6331_v19 }
 0x3b7   :  { %7394 = vst [vmem:[#allocation86_spill] sm:$0xff] %v6840_v12  ;;  %v3775_v25 = vrot.slane %v3747_v0, %v6327_v8 }
 0x3b8   :  { %v4248_v17 = vadd.f32 %v4247_v11, %v6778_v63  ;;  %v4309_v46 = vadd.f32 %v4308_v22, %v6780_v3  ;;  %v5297_v62 = vpop.eup %5296  ;;  %v5531_v11 = vld [vmem:[#allocation2 + $0x3a8] sm:$0xff]  ;;  %v4386_v22 = vmax.f32 %v6840_v12, %v4385_v35 }
 0x3b9   :  { %v6842_v63 = vmul.f32 %v5531_v11, %v4013_v34  ;;  %v5532_v34 = vld [vmem:[#allocation2 + $0x3b0] sm:$0xff] }
 0x3ba   :  { %v4249_v57 = vadd.f32 %v4248_v17, %v6788_v37  ;;  %v4310_v28 = vadd.f32 %v4309_v46, %v6790_v20  ;;  %v4021_v17 = vrot.slane %v3761_v31, %v6331_v19  ;;  %v3689_v46 = vrot.slane %v5297_v62, %v6327_v8 }
 0x3bb   :  { %7395 = vst [vmem:[#allocation87_spill] sm:$0xff] %v6842_v63  ;;  %v4447_v40 = vmax.f32 %v6842_v63, %v4446_v59  ;;  %v6853_v11 = vmul.f32 %v5532_v34, %v4017_v33  ;;  %v4025_v31 = vrot.slane %v3775_v25, %v6331_v19  ;;  %v5535_v34 = vld [vmem:[#allocation2 + $0x3c8] sm:$0xff] }
 0x3bc   :  { %v4250_v15 = vadd.f32 %v4249_v57, %v6799_v36  ;;  %v4311_v51 = vadd.f32 %v4310_v28, %v6802_v50  ;;  %v5533_v57 = vld [vmem:[#allocation2 + $0x3b8] sm:$0xff]  ;;  %v5534_v50 = vld [vmem:[#allocation2 + $0x3c0] sm:$0xff] }
 0x3bd   :  { %7396 = vst [vmem:[#allocation88_spill] sm:$0xff] %v6853_v11  ;;  %v6855_v36 = vmul.f32 %v5533_v57, %v4017_v33  ;;  %v4387_v59 = vmax.f32 %v6853_v11, %v4386_v22  ;;  %v3705_v33 = vrot.slane %v3689_v46, %v6327_v8  ;;  %v5536_v57 = vld [vmem:[#allocation2 + $0x3d0] sm:$0xff] }
 0x3be   :  { %v4251_v52 = vadd.f32 %v4250_v15, %v6656_v23  ;;  %v4312_v20 = vadd.f32 %v4311_v51, %v6658_v39  ;;  %v6862_v15 = vmul.f32 %v5534_v50, %v4021_v17  ;;  %v3682_v51 = vcombine.high %v5297_v62, %v5297_v62 }
 0x3bf   :  { %7397 = vst [vmem:[#allocation89_spill] sm:$0xff] %v6855_v36  ;;  %v4448_v0 = vmax.f32 %v6855_v36, %v4447_v40  ;;  %v3697_v39 = vcombine.high %v3689_v46, %v3689_v46  ;;  %v6864_v23 = vmul.f32 %v5535_v34, %v4021_v17  ;;  %v6873_v62 = vmul.f32 %v5536_v57, %v4025_v31  ;;  %v5537_v46 = vld [vmem:[#allocation2 + $0x3d8] sm:$0xff] }
 0x3c0   :  { %v4252_v28 = vadd.f32 %v4251_v52, %v6666_v9  ;;  %v4313_v35 = vadd.f32 %v4312_v20, %v6668_v41  ;;  %7398 = vst [vmem:[#allocation90_spill] sm:$0xff] %v6862_v15  ;;  %v4388_v22 = vmax.f32 %v6862_v15, %v4387_v59  ;;  %v3696_v17 = vrot.slane %v3682_v51, %v6327_v8 }
 0x3c1   :  { %7399 = vst [vmem:[#allocation91_spill] sm:$0xff] %v6864_v23  ;;  %v4449_v40 = vmax.f32 %v6864_v23, %v4448_v0  ;;  %v3719_v34 = vrot.slane %v3697_v39, %v6327_v8  ;;  %v6877_v41 = vmul.f32 %v5537_v46, %v4025_v31  ;;  %v3727_v0 = vcombine.high %v3705_v33, %v3705_v33  ;;  %v5538_v46 = vld [vmem:[#allocation2 + $0x300] sm:$0xff] }
 0x3c2   :  { %v4253_v52 = vadd.f32 %v4252_v28, %v6676_v7  ;;  %v4314_v20 = vadd.f32 %v4313_v35, %v6678_v53  ;;  %v3973_v28 = vrot.slane %v3705_v33, %v6331_v19  ;;  %v5539_v53 = vld [vmem:[#allocation2 + $0x308] sm:$0xff] }
 0x3c3   :  { %v3729_v39 = vcombine.high %v3719_v34, %v3719_v34  ;;  %v3977_v31 = vrot.slane %v3719_v34, %v6331_v19 }
 0x3c4   :  { %v4254_v25 = vadd.f32 %v4253_v52, %v6683_v6  ;;  %v4315_v50 = vadd.f32 %v4314_v20, %v6687_v58  ;;  %v4389_v52 = vmax.f32 %v6873_v62, %v4388_v22  ;;  %v4450_v20 = vmax.f32 %v6877_v41, %v4449_v40 }
 0x3c5   :  { %v3698_v58 = vcombine.high %v3696_v17, %v3696_v17  ;;  %v6887_v6 = vmul.f32 %v5538_v46, %v3973_v28  ;;  %v3712_v40 = vrot.slane %v3696_v17, %v6327_v8 }
 0x3c6   :  { %v4255_v35 = vadd.f32 %v4254_v25, %v6693_v61  ;;  %v4316_v59 = vadd.f32 %v4315_v50, %v6699_v60  ;;  %v6889_v25 = vmul.f32 %v5539_v53, %v3973_v28  ;;  %v3981_v50 = vrot.slane %v3727_v0, %v6331_v19  ;;  %v5540_v28 = vld [vmem:[#allocation2 + $0x310] sm:$0xff] }
 0x3c7   :  { %v3985_v53 = vrot.slane %v3729_v39, %v6331_v19 }
 0x3c8   :  { %v4256_v57 = vadd.f32 %v4255_v35, %v6707_v10  ;;  %v4317_v51 = vadd.f32 %v4316_v59, %v6709_v49  ;;  %v4390_v35 = vmax.f32 %v6887_v6, %v4389_v52  ;;  %v4451_v59 = vmax.f32 %v6889_v25, %v4450_v20 }
 0x3c9   :  { %v3726_v49 = vrot.slane %v3698_v58, %v6327_v8  ;;  %v3728_v52 = vcombine.high %v3712_v40, %v3712_v40  ;;  %v3989_v20 = vrot.slane %v3712_v40, %v6331_v19  ;;  %v5545_v40 = vld [vmem:[#allocation2 + $0x338] sm:$0xff] }
 0x3ca   :  { %v4257_v33 = vadd.f32 %v4256_v57, %v6712_v18  ;;  %v4318_v22 = vadd.f32 %v4317_v51, %v6714_v42  ;;  %v6901_v57 = vmul.f32 %v5540_v28, %v3977_v31  ;;  %v5541_v51 = vld [vmem:[#allocation2 + $0x318] sm:$0xff] }
 0x3cb   :  { %v6903_v42 = vmul.f32 %v5541_v51, %v3977_v31  ;;  %v5544_v51 = vld [vmem:[#allocation2 + $0x330] sm:$0xff] }
 0x3cc   :  { %v4258_v34 = vadd.f32 %v4257_v33, %v6719_v44  ;;  %v4319_v46 = vadd.f32 %v4318_v22, %v6721_v13  ;;  %v5542_v33 = vld [vmem:[#allocation2 + $0x320] sm:$0xff]  ;;  %v5543_v22 = vld [vmem:[#allocation2 + $0x328] sm:$0xff]  ;;  %v4391_v58 = vmax.f32 %v6901_v57, %v4390_v35  ;;  %v6917_v13 = vmul.f32 %v5544_v51, %v3985_v53 }
 0x3cd   :  { %v6908_v44 = vmul.f32 %v5542_v33, %v3981_v50  ;;  %v6910_v8 = vmul.f32 %v5543_v22, %v3981_v50  ;;  %v4452_v39 = vmax.f32 %v6903_v42, %v4451_v59  ;;  %v6919_v33 = vmul.f32 %v5545_v40, %v3985_v53  ;;  %v5546_v59 = vld [vmem:[#allocation2 + $0x340] sm:$0xff]  ;;  %v5548_v40 = vld [vmem:[#allocation2 + $0x350] sm:$0xff] }
 0x3ce   :  { %v4259_v17 = vadd.f32 %v4258_v34, %v6887_v6  ;;  %v4320_v0 = vadd.f32 %v4319_v46, %v6889_v25  ;;  %v3730_v34 = vcombine.high %v3726_v49, %v3726_v49  ;;  %v3993_v46 = vrot.slane %v3726_v49, %v6331_v19 }
 0x3cf   :  { %v3997_v35 = vrot.slane %v3728_v52, %v6331_v19  ;;  %v6924_v18 = vmul.f32 %v5546_v59, %v3989_v20  ;;  %v4392_v49 = vmax.f32 %v6908_v44, %v4391_v58  ;;  %v4453_v51 = vmax.f32 %v6910_v8, %v4452_v39  ;;  %v5549_v52 = vld [vmem:[#allocation2 + $0x358] sm:$0xff]  ;;  %v5551_v39 = vld [vmem:[#allocation2 + $0x368] sm:$0xff] }
 0x3d0   :  { %v4260_v31 = vadd.f32 %v4259_v17, %v6901_v57  ;;  %v4321_v28 = vadd.f32 %v4320_v0, %v6903_v42  ;;  %v5547_v17 = vld [vmem:[#allocation2 + $0x348] sm:$0xff]  ;;  %v6935_v60 = vmul.f32 %v5549_v52, %v3993_v46 }
 0x3d1   :  { %v6926_v0 = vmul.f32 %v5547_v17, %v3989_v20  ;;  %v5550_v17 = vld [vmem:[#allocation2 + $0x360] sm:$0xff]  ;;  %v6941_v61 = vmul.f32 %v5551_v39, %v3997_v35 }
 0x3d2   :  { %v4261_v50 = vadd.f32 %v4260_v31, %v6908_v44  ;;  %v4322_v22 = vadd.f32 %v4321_v28, %v6910_v8  ;;  %v4001_v31 = vrot.slane %v3730_v34, %v6331_v19  ;;  %v6933_v28 = vmul.f32 %v5548_v40, %v3993_v46  ;;  %v5552_v46 = vld [vmem:[#allocation2 + $0x370] sm:$0xff] }
 0x3d3   :  { %v6939_v58 = vmul.f32 %v5550_v17, %v3997_v35  ;;  %v4454_v19 = vmax.f32 %v6919_v33, %v4453_v51 }
 0x3d4   :  { %v4262_v10 = vadd.f32 %v4261_v50, %v6917_v13  ;;  %v4323_v53 = vadd.f32 %v4322_v22, %v6919_v33  ;;  %v4393_v50 = vmax.f32 %v6917_v13, %v4392_v49  ;;  %v6947_v40 = vmul.f32 %v5552_v46, %v4001_v31 }
 0x3d5   :  { %v4455_v49 = vmax.f32 %v6926_v0, %v4454_v19 }
 0x3d6   :  { %v4263_v59 = vadd.f32 %v4262_v10, %v6924_v18  ;;  %v4324_v20 = vadd.f32 %v4323_v53, %v6926_v0  ;;  %v5553_v10 = vld [vmem:[#allocation2 + $0x378] sm:$0xff]  ;;  %v4394_v35 = vmax.f32 %v6924_v18, %v4393_v50 }
 0x3d7   :  { %v6949_v52 = vmul.f32 %v5553_v10, %v4001_v31  ;;  %v4456_v46 = vmax.f32 %v6935_v60, %v4455_v49 }
 0x3d8   :  { %v4264_v34 = vadd.f32 %v4263_v59, %v6933_v28  ;;  %v4325_v22 = vadd.f32 %v4324_v20, %v6935_v60  ;;  %v4395_v31 = vmax.f32 %v6933_v28, %v4394_v35 }
 0x3da   :  { %v4265_v53 = vadd.f32 %v4264_v34, %v6939_v58  ;;  %v4326_v17 = vadd.f32 %v4325_v22, %v6941_v61  ;;  %v4396_v10 = vmax.f32 %v6939_v58, %v4395_v31  ;;  %v4462_v31 = vstv %s4745_s18 }
 0x3dc   :  { %v4266_v51 = vadd.f32 %v4265_v53, %v6947_v40  ;;  %v4327_v59 = vadd.f32 %v4326_v17, %v6949_v52  ;;  %v4457_v53 = vmax.f32 %v6941_v61, %v4456_v46 }
 0x3de   :  { %v4267_v20 = vadd.f32 %v4266_v51, %v6816_v48  ;;  %v4328_v39 = vadd.f32 %v4327_v59, %v6818_v29  ;;  %v4397_v59 = vmax.f32 %v6947_v40, %v4396_v10 }
 0x3e0   :  { %v4268_v34 = vadd.f32 %v4267_v20, %v6828_v14  ;;  %v4329_v22 = vadd.f32 %v4328_v39, %v6830_v26  ;;  %v4458_v20 = vmax.f32 %v6949_v52, %v4457_v53 }
 0x3e2   :  { %v4269_v50 = vadd.f32 %v4268_v34, %v6840_v12  ;;  %v4330_v19 = vadd.f32 %v4329_v22, %v6842_v63  ;;  %v4459_v22 = vstv %s179_s2 }
 0x3e4   :  { %v4270_v17 = vadd.f32 %v4269_v50, %v6853_v11  ;;  %v4331_v51 = vadd.f32 %v4330_v19, %v6855_v36  ;;  %v4463_v11 = vmul.f32 %v4462_v31, %v4397_v59  ;;  %v4464_v19 = vmul.f32 %v4462_v31, %v4458_v20 }
 0x3e6   :  { %v4271_v35 = vadd.f32 %v4270_v17, %v6862_v15  ;;  %v4332_v49 = vadd.f32 %v4331_v51, %v6864_v23 }
 0x3e8   :  { %v4272_v39 = vadd.f32 %v4271_v35, %v6873_v62  ;;  %v4333_v34 = vadd.f32 %v4332_v49, %v6877_v41 }
 0x3ea   :  { %v4335_v63 = vmul.f32 0.016129032, %v4272_v39  ;;  %v4336_v46 = vmul.f32 0.016129032, %v4333_v34 }
 0x3ec   :  { %v4460_v12 = vmul.f32 %v4459_v22, %v4335_v63  ;;  %v4461_v50 = vmul.f32 %v4459_v22, %v4336_v46  ;;  %v7405_v46 = vld [vmem:[#allocation32_spill] sm:$0xff] }
 0x3ee   :  { %v4465_v36 = vadd.f32 %v4463_v11, %v4460_v12  ;;  %v4466_v17 = vadd.f32 %v4464_v19, %v4461_v50  ;;  %v7406_v19 = vld [vmem:[#allocation33_spill] sm:$0xff] }
 0x3f0   :  { %v4754_v15 = vmul.f32 -1.442695, %v4465_v36  ;;  %v4755_v51 = vmul.f32 -1.442695, %v4466_v17  ;;  %v7407_v17 = vld [vmem:[#allocation34_spill] sm:$0xff] }
 0x3f2   :  { %5298 = vpow2.f32 %v4754_v15 }
 0x3f3   :  { %5300 = vpow2.f32 %v4755_v51 }
 0x3ff   :  { %v5299_v10 = vpop.eup %5298 }
 0x400   :  { %v5301_v53 = vpop.eup %5300  ;;  %v4473_v23 = vadd.f32 1.0, %v5299_v10  ;;  %v7408_v10 = vld [vmem:[#allocation35_spill] sm:$0xff] }
 0x401   :  { %v4474_v35 = vadd.f32 1.0, %v5301_v53 }
 0x402   :  { %5302 = vrcp.f32 %v4473_v23 }
 0x403   :  { %5304 = vrcp.f32 %v4474_v35  ;;  %v7409_v35 = vld [vmem:[#allocation36_spill] sm:$0xff] }
 0x40f   :  { %v6975_v49 = vpop.eup %5302 }
 0x410   :  { %v6977_v39 = vpop.eup %5304  ;;  %v4575_v63 = vmul.f32 %v6975_v49, %v6887_v6  ;;  %v4577_v12 = vmul.f32 %v6975_v49, %v6901_v57  ;;  %v4579_v36 = vmul.f32 %v6975_v49, %v6908_v44  ;;  %v4581_v11 = vmul.f32 %v6975_v49, %v6917_v13 }
 0x411   :  { %v4576_v23 = vmul.f32 %v6977_v39, %v6889_v25  ;;  %v4578_v15 = vmul.f32 %v6977_v39, %v6903_v42  ;;  %v4580_v59 = vmul.f32 %v6977_v39, %v6910_v8  ;;  %v4582_v6 = vmul.f32 %v6977_v39, %v6919_v33 }
 0x412   :  { %v4583_v57 = vmul.f32 %v6975_v49, %v6924_v18  ;;  %v4584_v44 = vmul.f32 %v6977_v39, %v6926_v0  ;;  %v4585_v13 = vmul.f32 %v6975_v49, %v6933_v28  ;;  %v4586_v25 = vmul.f32 %v6977_v39, %v6935_v60  ;;  %4699 = vst [vmem:[#allocation7 + $0x300] sm:$0xff] %v4575_v63 }
 0x413   :  { %4701 = vst [vmem:[#allocation7 + $0x310] sm:$0xff] %v4577_v12  ;;  %4703 = vst [vmem:[#allocation7 + $0x320] sm:$0xff] %v4579_v36  ;;  %v4587_v42 = vmul.f32 %v6975_v49, %v6939_v58  ;;  %v4588_v8 = vmul.f32 %v6977_v39, %v6941_v61  ;;  %v4589_v18 = vmul.f32 %v6975_v49, %v6947_v40  ;;  %v7400_v40 = vld [vmem:[#allocation27_spill] sm:$0xff]  ;;  %v7410_v12 = vld [vmem:[#allocation37_spill] sm:$0xff] }
 0x414   :  { %4705 = vst [vmem:[#allocation7 + $0x330] sm:$0xff] %v4581_v11  ;;  %v4590_v33 = vmul.f32 %v6977_v39, %v6949_v52  ;;  %4700 = vst [vmem:[#allocation7 + $0x308] sm:$0xff] %v4576_v23  ;;  %v4479_v60 = vmul.f32 %v6975_v49, %v6432_v56  ;;  %v4480_v61 = vmul.f32 %v6977_v39, %v6434_v4  ;;  %v7401_v56 = vld [vmem:[#allocation28_spill] sm:$0xff]  ;;  %v7402_v4 = vld [vmem:[#allocation29_spill] sm:$0xff] }
 0x415   :  { %4702 = vst [vmem:[#allocation7 + $0x318] sm:$0xff] %v4578_v15  ;;  %4704 = vst [vmem:[#allocation7 + $0x328] sm:$0xff] %v4580_v59  ;;  %v4481_v0 = vmul.f32 %v6975_v49, %v6416_v5  ;;  %v4482_v28 = vmul.f32 %v6977_v39, %v6418_v21  ;;  %v4483_v58 = vmul.f32 %v6975_v49, %v6420_v45  ;;  %v7403_v5 = vld [vmem:[#allocation30_spill] sm:$0xff]  ;;  %v7404_v21 = vld [vmem:[#allocation31_spill] sm:$0xff] }
 0x416   :  { %4706 = vst [vmem:[#allocation7 + $0x338] sm:$0xff] %v4582_v6  ;;  %4707 = vst [vmem:[#allocation7 + $0x340] sm:$0xff] %v4583_v57  ;;  %v4484_v52 = vmul.f32 %v6977_v39, %v7400_v40  ;;  %v4485_v20 = vmul.f32 %v6975_v49, %v7401_v56  ;;  %v4486_v34 = vmul.f32 %v6977_v39, %v7402_v4  ;;  %v7411_v11 = vld [vmem:[#allocation11_spill] sm:$0xff]  ;;  %v7412_v15 = vld [vmem:[#allocation12_spill] sm:$0xff] }
 0x417   :  { %4708 = vst [vmem:[#allocation7 + $0x348] sm:$0xff] %v4584_v44  ;;  %4709 = vst [vmem:[#allocation7 + $0x350] sm:$0xff] %v4585_v13  ;;  %v4487_v22 = vmul.f32 %v6975_v49, %v7403_v5  ;;  %v4488_v31 = vmul.f32 %v6977_v39, %v7404_v21  ;;  %v4489_v50 = vmul.f32 %v6975_v49, %v7405_v46  ;;  %v7413_v6 = vld [vmem:[#allocation13_spill] sm:$0xff]  ;;  %v7414_v44 = vld [vmem:[#allocation14_spill] sm:$0xff] }
 0x418   :  { %4710 = vst [vmem:[#allocation7 + $0x358] sm:$0xff] %v4586_v25  ;;  %4711 = vst [vmem:[#allocation7 + $0x360] sm:$0xff] %v4587_v42  ;;  %v4490_v45 = vmul.f32 %v6977_v39, %v7406_v19  ;;  %v4491_v51 = vmul.f32 %v6975_v49, %v7407_v17  ;;  %v4492_v53 = vmul.f32 %v6977_v39, %v7408_v10  ;;  %v7415_v25 = vld [vmem:[#allocation15_spill] sm:$0xff]  ;;  %v7420_v40 = vld [vmem:[#allocation20_spill] sm:$0xff] }
 0x419   :  { %4712 = vst [vmem:[#allocation7 + $0x368] sm:$0xff] %v4588_v8  ;;  %4713 = vst [vmem:[#allocation7 + $0x370] sm:$0xff] %v4589_v18  ;;  %v4493_v63 = vmul.f32 %v6975_v49, %v7409_v35  ;;  %v4494_v36 = vmul.f32 %v6977_v39, %v7410_v12  ;;  %v4495_v23 = vmul.f32 %v6975_v49, %v7411_v11  ;;  %v7416_v8 = vld [vmem:[#allocation16_spill] sm:$0xff]  ;;  %v7421_v56 = vld [vmem:[#allocation21_spill] sm:$0xff] }
 0x41a   :  { %4714 = vst [vmem:[#allocation7 + $0x378] sm:$0xff] %v4590_v33  ;;  %4603 = vst [vmem:[#allocation7] sm:$0xff] %v4479_v60  ;;  %v4496_v59 = vmul.f32 %v6977_v39, %v7412_v15  ;;  %v4497_v57 = vmul.f32 %v6975_v49, %v7413_v6  ;;  %v4498_v13 = vmul.f32 %v6977_v39, %v7414_v44  ;;  %v7417_v33 = vld [vmem:[#allocation17_spill] sm:$0xff]  ;;  %v7422_v4 = vld [vmem:[#allocation22_spill] sm:$0xff] }
 0x41b   :  { %4604 = vst [vmem:[#allocation7 + $0x8] sm:$0xff] %v4480_v61  ;;  %4605 = vst [vmem:[#allocation7 + $0x10] sm:$0xff] %v4481_v0  ;;  %v4499_v42 = vmul.f32 %v6975_v49, %v7415_v25  ;;  %v4500_v18 = vmul.f32 %v6977_v39, %v7416_v8  ;;  %v4501_v60 = vmul.f32 %v6975_v49, %v7417_v33  ;;  %v7418_v61 = vld [vmem:[#allocation18_spill] sm:$0xff]  ;;  %v7423_v5 = vld [vmem:[#allocation23_spill] sm:$0xff] }
 0x41c   :  { %4606 = vst [vmem:[#allocation7 + $0x18] sm:$0xff] %v4482_v28  ;;  %4607 = vst [vmem:[#allocation7 + $0x20] sm:$0xff] %v4483_v58  ;;  %v4502_v0 = vmul.f32 %v6977_v39, %v7418_v61  ;;  %v7419_v28 = vld [vmem:[#allocation19_spill] sm:$0xff]  ;;  %v7424_v21 = vld [vmem:[#allocation24_spill] sm:$0xff] }
 0x41d   :  { %4608 = vst [vmem:[#allocation7 + $0x28] sm:$0xff] %v4484_v52  ;;  %4609 = vst [vmem:[#allocation7 + $0x30] sm:$0xff] %v4485_v20  ;;  %v4503_v58 = vmul.f32 %v6975_v49, %v7419_v28  ;;  %v4504_v52 = vmul.f32 %v6977_v39, %v7420_v40  ;;  %v4505_v20 = vmul.f32 %v6975_v49, %v7421_v56  ;;  %v7425_v46 = vld [vmem:[#allocation25_spill] sm:$0xff]  ;;  %v7426_v19 = vld [vmem:[#allocation26_spill] sm:$0xff] }
 0x41e   :  { %4610 = vst [vmem:[#allocation7 + $0x38] sm:$0xff] %v4486_v34  ;;  %4611 = vst [vmem:[#allocation7 + $0x40] sm:$0xff] %v4487_v22  ;;  %v4506_v34 = vmul.f32 %v6977_v39, %v7422_v4  ;;  %v4507_v22 = vmul.f32 %v6975_v49, %v7423_v5  ;;  %v7427_v17 = vld [vmem:[#allocation47_spill] sm:$0xff]  ;;  %v7428_v10 = vld [vmem:[#allocation48_spill] sm:$0xff] }
 0x41f   :  { %4612 = vst [vmem:[#allocation7 + $0x48] sm:$0xff] %v4488_v31  ;;  %4613 = vst [vmem:[#allocation7 + $0x50] sm:$0xff] %v4489_v50  ;;  %v4508_v31 = vmul.f32 %v6977_v39, %v7424_v21  ;;  %v4509_v50 = vmul.f32 %v6975_v49, %v7425_v46  ;;  %v7429_v35 = vld [vmem:[#allocation49_spill] sm:$0xff]  ;;  %v7430_v12 = vld [vmem:[#allocation50_spill] sm:$0xff] }
 0x420   :  { %4614 = vst [vmem:[#allocation7 + $0x58] sm:$0xff] %v4490_v45  ;;  %4615 = vst [vmem:[#allocation7 + $0x60] sm:$0xff] %v4491_v51  ;;  %v4510_v45 = vmul.f32 %v6977_v39, %v7426_v19  ;;  %v4511_v51 = vmul.f32 %v6975_v49, %v7427_v17  ;;  %v7431_v11 = vld [vmem:[#allocation51_spill] sm:$0xff]  ;;  %v7432_v15 = vld [vmem:[#allocation52_spill] sm:$0xff] }
 0x421   :  { %4616 = vst [vmem:[#allocation7 + $0x68] sm:$0xff] %v4492_v53  ;;  %4617 = vst [vmem:[#allocation7 + $0x70] sm:$0xff] %v4493_v63  ;;  %v4512_v53 = vmul.f32 %v6977_v39, %v7428_v10  ;;  %v4513_v63 = vmul.f32 %v6975_v49, %v7429_v35  ;;  %v7433_v6 = vld [vmem:[#allocation53_spill] sm:$0xff]  ;;  %v7434_v44 = vld [vmem:[#allocation54_spill] sm:$0xff]  ;;  %v4533_v35 = vmul.f32 %v6975_v49, %v6524_v2 }
 0x422   :  { %4618 = vst [vmem:[#allocation7 + $0x78] sm:$0xff] %v4494_v36  ;;  %4619 = vst [vmem:[#allocation7 + $0x80] sm:$0xff] %v4495_v23  ;;  %v4514_v36 = vmul.f32 %v6977_v39, %v7430_v12  ;;  %v4515_v23 = vmul.f32 %v6975_v49, %v7431_v11  ;;  %v7435_v25 = vld [vmem:[#allocation55_spill] sm:$0xff]  ;;  %v7436_v8 = vld [vmem:[#allocation56_spill] sm:$0xff]  ;;  %v4539_v2 = vmul.f32 %v6975_v49, %v6545_v55 }
 0x423   :  { %4620 = vst [vmem:[#allocation7 + $0x88] sm:$0xff] %v4496_v59  ;;  %4621 = vst [vmem:[#allocation7 + $0x90] sm:$0xff] %v4497_v57  ;;  %v4516_v59 = vmul.f32 %v6977_v39, %v7432_v15  ;;  %v4517_v57 = vmul.f32 %v6975_v49, %v7433_v6  ;;  %v7437_v33 = vld [vmem:[#allocation57_spill] sm:$0xff]  ;;  %v7438_v61 = vld [vmem:[#allocation58_spill] sm:$0xff]  ;;  %v4538_v6 = vmul.f32 %v6977_v39, %v6540_v24 }
 0x424   :  { %4622 = vst [vmem:[#allocation7 + $0x98] sm:$0xff] %v4498_v13  ;;  %4623 = vst [vmem:[#allocation7 + $0xa0] sm:$0xff] %v4499_v42  ;;  %v4518_v13 = vmul.f32 %v6977_v39, %v7434_v44  ;;  %v4519_v42 = vmul.f32 %v6975_v49, %v7435_v25  ;;  %v7439_v28 = vld [vmem:[#allocation59_spill] sm:$0xff]  ;;  %v7440_v40 = vld [vmem:[#allocation60_spill] sm:$0xff]  ;;  %v4541_v44 = vmul.f32 %v6975_v49, %v6553_v30 }
 0x425   :  { %4624 = vst [vmem:[#allocation7 + $0xa8] sm:$0xff] %v4500_v18  ;;  %4625 = vst [vmem:[#allocation7 + $0xb0] sm:$0xff] %v4501_v60  ;;  %v4520_v18 = vmul.f32 %v6977_v39, %v7436_v8  ;;  %v4521_v60 = vmul.f32 %v6975_v49, %v7437_v33  ;;  %v7441_v56 = vld [vmem:[#allocation61_spill] sm:$0xff]  ;;  %v7442_v4 = vld [vmem:[#allocation62_spill] sm:$0xff]  ;;  %v4545_v55 = vmul.f32 %v6975_v49, %v6743_v27 }
 0x426   :  { %4626 = vst [vmem:[#allocation7 + $0xb8] sm:$0xff] %v4502_v0  ;;  %4627 = vst [vmem:[#allocation7 + $0xc0] sm:$0xff] %v4503_v58  ;;  %v4522_v0 = vmul.f32 %v6977_v39, %v7438_v61  ;;  %v4523_v58 = vmul.f32 %v6975_v49, %v7439_v28  ;;  %v7443_v5 = vld [vmem:[#allocation38_spill] sm:$0xff]  ;;  %v7444_v21 = vld [vmem:[#allocation39_spill] sm:$0xff]  ;;  %v4547_v30 = vmul.f32 %v6975_v49, %v6750_v32 }
 0x427   :  { %4628 = vst [vmem:[#allocation7 + $0xc8] sm:$0xff] %v4504_v52  ;;  %4629 = vst [vmem:[#allocation7 + $0xd0] sm:$0xff] %v4505_v20  ;;  %v4524_v52 = vmul.f32 %v6977_v39, %v7440_v40  ;;  %v4525_v20 = vmul.f32 %v6975_v49, %v7441_v56  ;;  %v7445_v46 = vld [vmem:[#allocation40_spill] sm:$0xff]  ;;  %v7446_v19 = vld [vmem:[#allocation41_spill] sm:$0xff]  ;;  %v4549_v33 = vmul.f32 %v6975_v49, %v6761_v47 }
 0x428   :  { %4630 = vst [vmem:[#allocation7 + $0xd8] sm:$0xff] %v4506_v34  ;;  %4631 = vst [vmem:[#allocation7 + $0xe0] sm:$0xff] %v4507_v22  ;;  %v4526_v34 = vmul.f32 %v6977_v39, %v7442_v4  ;;  %v4527_v22 = vmul.f32 %v6975_v49, %v7443_v5  ;;  %v7447_v17 = vld [vmem:[#allocation42_spill] sm:$0xff]  ;;  %v7448_v10 = vld [vmem:[#allocation43_spill] sm:$0xff]  ;;  %v4551_v27 = vmul.f32 %v6975_v49, %v6770_v54 }
 0x429   :  { %4632 = vst [vmem:[#allocation7 + $0xe8] sm:$0xff] %v4508_v31  ;;  %4633 = vst [vmem:[#allocation7 + $0xf0] sm:$0xff] %v4509_v50  ;;  %v4528_v31 = vmul.f32 %v6977_v39, %v7444_v21  ;;  %v4529_v50 = vmul.f32 %v6975_v49, %v7445_v46  ;;  %v7453_v25 = vld [vmem:[#allocation78_spill] sm:$0xff]  ;;  %v7456_v61 = vld [vmem:[#allocation81_spill] sm:$0xff] }
 0x42a   :  { %4634 = vst [vmem:[#allocation7 + $0xf8] sm:$0xff] %v4510_v45  ;;  %4635 = vst [vmem:[#allocation7 + $0x100] sm:$0xff] %v4511_v51  ;;  %v4530_v45 = vmul.f32 %v6977_v39, %v7446_v19  ;;  %v4531_v51 = vmul.f32 %v6975_v49, %v7447_v17  ;;  %v7457_v32 = vld [vmem:[#allocation82_spill] sm:$0xff]  ;;  %v7458_v47 = vld [vmem:[#allocation83_spill] sm:$0xff] }
 0x42b   :  { %4636 = vst [vmem:[#allocation7 + $0x108] sm:$0xff] %v4512_v53  ;;  %4637 = vst [vmem:[#allocation7 + $0x110] sm:$0xff] %v4513_v63  ;;  %v4532_v53 = vmul.f32 %v6977_v39, %v7448_v10  ;;  %v7449_v63 = vld [vmem:[#allocation44_spill] sm:$0xff]  ;;  %v4553_v28 = vmul.f32 %v6975_v49, %v7457_v32  ;;  %v4556_v40 = vmul.f32 %v6977_v39, %v7458_v47  ;;  %v7460_v56 = vld [vmem:[#allocation85_spill] sm:$0xff] }
 0x42c   :  { %4638 = vst [vmem:[#allocation7 + $0x118] sm:$0xff] %v4514_v36  ;;  %4639 = vst [vmem:[#allocation7 + $0x120] sm:$0xff] %v4515_v23  ;;  %v4534_v12 = vmul.f32 %v6977_v39, %v7449_v63  ;;  %v7450_v36 = vld [vmem:[#allocation45_spill] sm:$0xff]  ;;  %v7451_v23 = vld [vmem:[#allocation46_spill] sm:$0xff] }
 0x42d   :  { %4640 = vst [vmem:[#allocation7 + $0x128] sm:$0xff] %v4516_v59  ;;  %4641 = vst [vmem:[#allocation7 + $0x130] sm:$0xff] %v4517_v57  ;;  %v4535_v11 = vmul.f32 %v6975_v49, %v7450_v36  ;;  %v4536_v15 = vmul.f32 %v6977_v39, %v7451_v23  ;;  %v4537_v59 = vmul.f32 %v6975_v49, %v6538_v38  ;;  %v7452_v38 = vld [vmem:[#allocation77_spill] sm:$0xff]  ;;  %v7459_v54 = vld [vmem:[#allocation84_spill] sm:$0xff] }
 0x42e   :  { %4642 = vst [vmem:[#allocation7 + $0x138] sm:$0xff] %v4518_v13  ;;  %4643 = vst [vmem:[#allocation7 + $0x140] sm:$0xff] %v4519_v42  ;;  %v4540_v57 = vmul.f32 %v6977_v39, %v6547_v16  ;;  %v4542_v13 = vmul.f32 %v6977_v39, %v6557_v1  ;;  %v4543_v24 = vmul.f32 %v6975_v49, %v7452_v38  ;;  %v7454_v16 = vld [vmem:[#allocation79_spill] sm:$0xff]  ;;  %v7455_v1 = vld [vmem:[#allocation80_spill] sm:$0xff] }
 0x42f   :  { %4644 = vst [vmem:[#allocation7 + $0x148] sm:$0xff] %v4520_v18  ;;  %4645 = vst [vmem:[#allocation7 + $0x150] sm:$0xff] %v4521_v60  ;;  %v4544_v42 = vmul.f32 %v6977_v39, %v7453_v25  ;;  %v4546_v8 = vmul.f32 %v6977_v39, %v7454_v16  ;;  %v4548_v18 = vmul.f32 %v6977_v39, %v7455_v1  ;;  %v7464_v46 = vld [vmem:[#allocation66_spill] sm:$0xff]  ;;  %v7465_v19 = vld [vmem:[#allocation67_spill] sm:$0xff] }
 0x430   :  { %4646 = vst [vmem:[#allocation7 + $0x158] sm:$0xff] %v4522_v0  ;;  %4647 = vst [vmem:[#allocation7 + $0x160] sm:$0xff] %v4523_v58  ;;  %v4550_v60 = vmul.f32 %v6977_v39, %v6763_v43  ;;  %v4552_v0 = vmul.f32 %v6977_v39, %v7456_v61  ;;  %v4554_v58 = vmul.f32 %v6977_v39, %v6780_v3  ;;  %v7461_v3 = vld [vmem:[#allocation63_spill] sm:$0xff]  ;;  %v7466_v17 = vld [vmem:[#allocation68_spill] sm:$0xff] }
 0x431   :  { %4648 = vst [vmem:[#allocation7 + $0x168] sm:$0xff] %v4524_v52  ;;  %4649 = vst [vmem:[#allocation7 + $0x170] sm:$0xff] %v4525_v20  ;;  %v4555_v43 = vmul.f32 %v6975_v49, %v6788_v37  ;;  %v4557_v52 = vmul.f32 %v6975_v49, %v7459_v54  ;;  %v4558_v20 = vmul.f32 %v6977_v39, %v7460_v56  ;;  %v7476_v16 = vld [vmem:[#allocation87_spill] sm:$0xff] }
 0x432   :  { %4650 = vst [vmem:[#allocation7 + $0x178] sm:$0xff] %v4526_v34  ;;  %4651 = vst [vmem:[#allocation7 + $0x180] sm:$0xff] %v4527_v22  ;;  %v4559_v4 = vmul.f32 %v6975_v49, %v7461_v3  ;;  %v7462_v34 = vld [vmem:[#allocation64_spill] sm:$0xff]  ;;  %v4561_v37 = vmul.f32 %v6975_v49, %v6666_v9  ;;  %v7463_v22 = vld [vmem:[#allocation65_spill] sm:$0xff]  ;;  %v4592_v38 = vmul.f32 %v6977_v39, %v6818_v29 }
 0x433   :  { %4652 = vst [vmem:[#allocation7 + $0x188] sm:$0xff] %v4528_v31  ;;  %4653 = vst [vmem:[#allocation7 + $0x190] sm:$0xff] %v4529_v50  ;;  %v4560_v5 = vmul.f32 %v6977_v39, %v7462_v34  ;;  %v4562_v21 = vmul.f32 %v6977_v39, %v7463_v22  ;;  %v4563_v31 = vmul.f32 %v6975_v49, %v6676_v7  ;;  %v7467_v9 = vld [vmem:[#allocation69_spill] sm:$0xff]  ;;  %v7469_v7 = vld [vmem:[#allocation71_spill] sm:$0xff] }
 0x434   :  { %4654 = vst [vmem:[#allocation7 + $0x198] sm:$0xff] %v4530_v45  ;;  %4655 = vst [vmem:[#allocation7 + $0x1a0] sm:$0xff] %v4531_v51  ;;  %v4564_v50 = vmul.f32 %v6977_v39, %v7464_v46  ;;  %v4565_v45 = vmul.f32 %v6975_v49, %v7465_v19  ;;  %v4566_v51 = vmul.f32 %v6977_v39, %v7466_v17  ;;  %v7478_v29 = vld [vmem:[#allocation89_spill] sm:$0xff] }
 0x435   :  { %4656 = vst [vmem:[#allocation7 + $0x1a8] sm:$0xff] %v4532_v53  ;;  %4657 = vst [vmem:[#allocation7 + $0x1b0] sm:$0xff] %v4533_v35  ;;  %v4567_v10 = vmul.f32 %v6975_v49, %v7467_v9  ;;  %v7468_v53 = vld [vmem:[#allocation70_spill] sm:$0xff]  ;;  %v4569_v63 = vmul.f32 %v6975_v49, %v7469_v7  ;;  %v4594_v25 = vmul.f32 %v6977_v39, %v6830_v26 }
 0x436   :  { %4658 = vst [vmem:[#allocation7 + $0x1b8] sm:$0xff] %v4534_v12  ;;  %4659 = vst [vmem:[#allocation7 + $0x1c0] sm:$0xff] %v4535_v11  ;;  %v4568_v35 = vmul.f32 %v6977_v39, %v7468_v53  ;;  %v7470_v12 = vld [vmem:[#allocation72_spill] sm:$0xff]  ;;  %v7471_v11 = vld [vmem:[#allocation73_spill] sm:$0xff]  ;;  %v4598_v1 = vmul.f32 %v6977_v39, %v7478_v29 }
 0x437   :  { %4660 = vst [vmem:[#allocation7 + $0x1c8] sm:$0xff] %v4536_v15  ;;  %4661 = vst [vmem:[#allocation7 + $0x1d0] sm:$0xff] %v4537_v59  ;;  %v4570_v36 = vmul.f32 %v6977_v39, %v7470_v12  ;;  %v4571_v23 = vmul.f32 %v6975_v49, %v7471_v11  ;;  %v7472_v15 = vld [vmem:[#allocation74_spill] sm:$0xff] }
 0x438   :  { %4662 = vst [vmem:[#allocation7 + $0x1d8] sm:$0xff] %v4538_v6  ;;  %4663 = vst [vmem:[#allocation7 + $0x1e0] sm:$0xff] %v4539_v2  ;;  %v4572_v59 = vmul.f32 %v6977_v39, %v7472_v15  ;;  %v7473_v6 = vld [vmem:[#allocation75_spill] sm:$0xff] }
 0x439   :  { %4664 = vst [vmem:[#allocation7 + $0x1e8] sm:$0xff] %v4540_v57  ;;  %4665 = vst [vmem:[#allocation7 + $0x1f0] sm:$0xff] %v4541_v44  ;;  %v4573_v2 = vmul.f32 %v6975_v49, %v7473_v6  ;;  %v7474_v57 = vld [vmem:[#allocation76_spill] sm:$0xff] }
 0x43a   :  { %4666 = vst [vmem:[#allocation7 + $0x1f8] sm:$0xff] %v4542_v13  ;;  %4667 = vst [vmem:[#allocation7 + $0x200] sm:$0xff] %v4543_v24  ;;  %v4574_v44 = vmul.f32 %v6977_v39, %v7474_v57  ;;  %v4591_v13 = vmul.f32 %v6975_v49, %v6816_v48  ;;  %v4593_v24 = vmul.f32 %v6975_v49, %v6828_v14  ;;  %v7477_v48 = vld [vmem:[#allocation88_spill] sm:$0xff]  ;;  %v7479_v14 = vld [vmem:[#allocation90_spill] sm:$0xff] }
 0x43b   :  { %4668 = vst [vmem:[#allocation7 + $0x208] sm:$0xff] %v4544_v42  ;;  %4669 = vst [vmem:[#allocation7 + $0x210] sm:$0xff] %v4545_v55  ;;  %v7475_v42 = vld [vmem:[#allocation86_spill] sm:$0xff]  ;;  %v4599_v26 = vmul.f32 %v6975_v49, %v7479_v14 }
 0x43c   :  { %4670 = vst [vmem:[#allocation7 + $0x218] sm:$0xff] %v4546_v8  ;;  %4671 = vst [vmem:[#allocation7 + $0x220] sm:$0xff] %v4547_v30  ;;  %v4595_v55 = vmul.f32 %v6975_v49, %v7475_v42  ;;  %v4596_v8 = vmul.f32 %v6977_v39, %v7476_v16  ;;  %v4597_v30 = vmul.f32 %v6975_v49, %v7477_v48 }
 0x43d   :  { %4672 = vst [vmem:[#allocation7 + $0x228] sm:$0xff] %v4548_v18  ;;  %4673 = vst [vmem:[#allocation7 + $0x230] sm:$0xff] %v4549_v33  ;;  %v7480_v18 = vld [vmem:[#allocation91_spill] sm:$0xff] }
 0x43e   :  { %4674 = vst [vmem:[#allocation7 + $0x238] sm:$0xff] %v4550_v60  ;;  %4675 = vst [vmem:[#allocation7 + $0x240] sm:$0xff] %v4551_v27  ;;  %v4600_v33 = vmul.f32 %v6977_v39, %v7480_v18  ;;  %v4601_v60 = vmul.f32 %v6975_v49, %v6873_v62  ;;  %v4602_v27 = vmul.f32 %v6977_v39, %v6877_v41 }
 0x43f   :  { %4676 = vst [vmem:[#allocation7 + $0x248] sm:$0xff] %v4552_v0  ;;  %4677 = vst [vmem:[#allocation7 + $0x250] sm:$0xff] %v4553_v28 }
 0x440   :  { %4678 = vst [vmem:[#allocation7 + $0x258] sm:$0xff] %v4554_v58  ;;  %4679 = vst [vmem:[#allocation7 + $0x260] sm:$0xff] %v4555_v43 }
 0x441   :  { %4680 = vst [vmem:[#allocation7 + $0x268] sm:$0xff] %v4556_v40  ;;  %4681 = vst [vmem:[#allocation7 + $0x270] sm:$0xff] %v4557_v52 }
 0x442   :  { %4682 = vst [vmem:[#allocation7 + $0x278] sm:$0xff] %v4558_v20  ;;  %4683 = vst [vmem:[#allocation7 + $0x280] sm:$0xff] %v4559_v4 }
 0x443   :  { %4684 = vst [vmem:[#allocation7 + $0x288] sm:$0xff] %v4560_v5  ;;  %4685 = vst [vmem:[#allocation7 + $0x290] sm:$0xff] %v4561_v37 }
 0x444   :  { %4686 = vst [vmem:[#allocation7 + $0x298] sm:$0xff] %v4562_v21  ;;  %4687 = vst [vmem:[#allocation7 + $0x2a0] sm:$0xff] %v4563_v31 }
 0x445   :  { %4688 = vst [vmem:[#allocation7 + $0x2a8] sm:$0xff] %v4564_v50  ;;  %4689 = vst [vmem:[#allocation7 + $0x2b0] sm:$0xff] %v4565_v45 }
 0x446   :  { %4690 = vst [vmem:[#allocation7 + $0x2b8] sm:$0xff] %v4566_v51  ;;  %4691 = vst [vmem:[#allocation7 + $0x2c0] sm:$0xff] %v4567_v10 }
 0x447   :  { %4692 = vst [vmem:[#allocation7 + $0x2c8] sm:$0xff] %v4568_v35  ;;  %4693 = vst [vmem:[#allocation7 + $0x2d0] sm:$0xff] %v4569_v63 }
 0x448   :  { %4694 = vst [vmem:[#allocation7 + $0x2d8] sm:$0xff] %v4570_v36  ;;  %4695 = vst [vmem:[#allocation7 + $0x2e0] sm:$0xff] %v4571_v23 }
 0x449   :  { %4696 = vst [vmem:[#allocation7 + $0x2e8] sm:$0xff] %v4572_v59  ;;  %4697 = vst [vmem:[#allocation7 + $0x2f0] sm:$0xff] %v4573_v2 }
 0x44a   :  { %4698 = vst [vmem:[#allocation7 + $0x2f8] sm:$0xff] %v4574_v44  ;;  %4715 = vst [vmem:[#allocation7 + $0x380] sm:$0xff] %v4591_v13 }
 0x44b   :  { %4716 = vst [vmem:[#allocation7 + $0x388] sm:$0xff] %v4592_v38  ;;  %4717 = vst [vmem:[#allocation7 + $0x390] sm:$0xff] %v4593_v24 }
 0x44c   :  { %4718 = vst [vmem:[#allocation7 + $0x398] sm:$0xff] %v4594_v25  ;;  %4719 = vst [vmem:[#allocation7 + $0x3a0] sm:$0xff] %v4595_v55 }
 0x44d   :  { %4720 = vst [vmem:[#allocation7 + $0x3a8] sm:$0xff] %v4596_v8  ;;  %4721 = vst [vmem:[#allocation7 + $0x3b0] sm:$0xff] %v4597_v30 }
 0x44e   :  { %4722 = vst [vmem:[#allocation7 + $0x3b8] sm:$0xff] %v4598_v1  ;;  %4723 = vst [vmem:[#allocation7 + $0x3c0] sm:$0xff] %v4599_v26 }
 0x44f   :  { %4724 = vst [vmem:[#allocation7 + $0x3c8] sm:$0xff] %v4600_v33  ;;  %4725 = vst [vmem:[#allocation7 + $0x3d0] sm:$0xff] %v4601_v60 }
 0x450   :  { %4726 = vst [vmem:[#allocation7 + $0x3d8] sm:$0xff] %v4602_v27 }
 0x451   :  { %5597 = shalt.err (!%p5594_p0)
}
 0x452   :  { %4738 = dma.vmem_to_hbm [thread:$0]  %s4733_s20, 15872, %s7237_s4, [#allocation4], %s5613_s21, %s5613_s21, %s5614_s22  }
 0x453   :  { %5610 = dma.done.wait [#allocation4], 15872  }
 0x454   :  { %5611 = vsyncadd [#allocation4], 4294951424 }
 0x455   :  { %4742 = vsyncpa [#allocation3], 1 }
 0x456   :  { %4743 = vsyncpa [#allocation4], 1 }
 0x457   :  { %4744 = vsyncpa [#allocation5], 1 }

</bundles_post_ra>
